<compile_context>
chip_gen: v6e
topology: v6e:2x2x1
jax: 0.10.0
libtpu: 0.0.40
codegen_flags: <defaults>
</compile_context>

<pallas_src>
import jax
import jax.numpy as jnp
from jax import lax
from jax.experimental import pallas as pl
from jax.experimental.pallas import tpu as pltpu


_BN_EPS = 1e-5
_VMEM_LIMIT = 32 * 1024 * 1024  # explicit scoped-VMEM budget (safe on v5e/v6e/v7x)


def _pick_tile_rows(h, target=8):
    """Largest divisor of h that is <= target (output row-tile height)."""
    for t in range(min(target, h), 0, -1):
        if h % t == 0:
            return t
    return 1


# --------------------------------------------------------------------------------
# Kernel A: conv1 (3x3) + identity conv (1x1) + partial BN stats for both branches.
# --------------------------------------------------------------------------------
def _make_conv1_identity_kernel(H, W, Cin, Cout, TR):
    K = 3

    def kernel(x_ref, w1_ref, wi_ref, y1_ref, yi_ref, s1_ref, si_ref, xpad_ref):
        r = pl.program_id(1)

        # Build the zero-padded image once per batch element (in-kernel padding;
        # the scratch persists across the row-tile axis).
        @pl.when(r == 0)
        def _():
            x = x_ref[0]                                              # (H, W, Cin)
            zc = jnp.zeros((H, 1, Cin), jnp.float32)
            zr = jnp.zeros((1, W + 2, Cin), jnp.float32)
            xpad_ref[...] = jnp.concatenate(
                [zr, jnp.concatenate([zc, x, zc], axis=1), zr], axis=0)

        r0 = pl.multiple_of(r * TR, TR)

        # im2col: one (TR*W, K*K*Cin) @ (K*K*Cin, Cout) bf16 matmul per tile.
        taps = [xpad_ref[pl.ds(r0 + dy, TR), dx:dx + W, :]
                for dy in range(K) for dx in range(K)]
        patches = jnp.concatenate(taps, axis=-1)                      # (TR, W, 9*Cin)
        patches = patches.reshape(TR * W, K * K * Cin).astype(jnp.bfloat16)
        y1 = jnp.dot(patches, w1_ref[...], preferred_element_type=jnp.float32)

        # identity branch: 1x1 conv on the same (un-padded centre) tile.
        xc = xpad_ref[pl.ds(r0 + 1, TR), 1:1 + W, :]
        xc = xc.reshape(TR * W, Cin).astype(jnp.bfloat16)
        yi = jnp.dot(xc, wi_ref[...], preferred_element_type=jnp.float32)

        y1_ref[...] = y1.reshape(1, TR, W, Cout)
        yi_ref[...] = yi.reshape(1, TR, W, Cout)

        # per-tile partial BatchNorm statistics (reduced to (2, Cout) in the wrapper).
        s1_ref[...] = jnp.concatenate(
            [jnp.sum(y1, axis=0, keepdims=True),
             jnp.sum(y1 * y1, axis=0, keepdims=True)], axis=0).reshape(1, 1, 2, Cout)
        si_ref[...] = jnp.concatenate(
            [jnp.sum(yi, axis=0, keepdims=True),
             jnp.sum(yi * yi, axis=0, keepdims=True)], axis=0).reshape(1, 1, 2, Cout)

    return kernel


# --------------------------------------------------------------------------------
# Kernel B: BN1 (folded scale/shift) + ReLU + conv2 (3x3) + partial BN stats.
# --------------------------------------------------------------------------------
def _make_bn_relu_conv2_kernel(H, W, Cout, TR):
    K = 3

    def kernel(h_ref, sc_ref, sh_ref, w2_ref, y2_ref, s2_ref, hpad_ref):
        r = pl.program_id(1)

        # Normalize + ReLU + zero-pad the whole image once per batch element.
        @pl.when(r == 0)
        def _():
            h = h_ref[0]                                              # raw conv1 (H, W, Cout)
            h = jnp.maximum(h * sc_ref[...].reshape(1, 1, Cout)
                            + sh_ref[...].reshape(1, 1, Cout), 0.0)
            zc = jnp.zeros((H, 1, Cout), jnp.float32)
            zr = jnp.zeros((1, W + 2, Cout), jnp.float32)
            hpad_ref[...] = jnp.concatenate(
                [zr, jnp.concatenate([zc, h, zc], axis=1), zr], axis=0)

        r0 = pl.multiple_of(r * TR, TR)
        taps = [hpad_ref[pl.ds(r0 + dy, TR), dx:dx + W, :]
                for dy in range(K) for dx in range(K)]
        patches = jnp.concatenate(taps, axis=-1)                      # (TR, W, 9*Cout)
        patches = patches.reshape(TR * W, K * K * Cout).astype(jnp.bfloat16)
        y2 = jnp.dot(patches, w2_ref[...], preferred_element_type=jnp.float32)

        y2_ref[...] = y2.reshape(1, TR, W, Cout)
        s2_ref[...] = jnp.concatenate(
            [jnp.sum(y2, axis=0, keepdims=True),
             jnp.sum(y2 * y2, axis=0, keepdims=True)], axis=0).reshape(1, 1, 2, Cout)

    return kernel


# --------------------------------------------------------------------------------
# Kernel C: BN2 + BN_identity + residual add + final ReLU, lane-dense store.
# --------------------------------------------------------------------------------
def _make_finalize_kernel(W, Cout, TR):
    def kernel(y2_ref, yi_ref, sc2_ref, sh2_ref, sci_ref, shi_ref, o_ref):
        sc2 = sc2_ref[...].reshape(1, 1, Cout)
        sh2 = sh2_ref[...].reshape(1, 1, Cout)
        sci = sci_ref[...].reshape(1, 1, Cout)
        shi = shi_ref[...].reshape(1, 1, Cout)
        y = (y2_ref[0] * sc2 + sh2) + (yi_ref[0] * sci + shi)
        y = jnp.maximum(y, 0.0)                                       # (TR, W, Cout)
        o_ref[...] = y.reshape(TR, W * Cout)                          # lane-dense store

    return kernel


# --------------------------------------------------------------------------------
# Wrapper
# --------------------------------------------------------------------------------
def _bn_affine(partial_stats, gamma, beta, count, eps=_BN_EPS):
    """Fold training-mode BN into per-channel (scale, shift) from partial sums."""
    s = jnp.sum(partial_stats, axis=(0, 1))                           # (2, Cout)
    mean = s[0] / count
    var = jnp.maximum(s[1] / count - mean * mean, 0.0)                # biased variance
    scale = gamma.reshape(-1) * lax.rsqrt(var + eps)
    shift = beta.reshape(-1) - mean * scale
    return (scale.reshape(1, -1).astype(jnp.float32),
            shift.reshape(1, -1).astype(jnp.float32))


@jax.jit
def double_conv_forward(x_nchw, params):
    """Forward pass of DoubleConv. Input/output in NCHW to match PyTorch."""
    x = jnp.transpose(x_nchw, (0, 2, 3, 1)).astype(jnp.float32)       # NHWC
    N, H, W, Cin = x.shape
    Cout = params["w1"].shape[-1]
    TR = _pick_tile_rows(H)
    R = H // TR
    count = N * H * W
    f32 = jnp.float32

    # Weights folded to 2-D im2col layout, bf16 for the MXU.  Conv biases are
    # intentionally dropped: training-mode BN mean subtraction cancels them exactly.
    w1 = params["w1"].reshape(9 * Cin, Cout).astype(jnp.bfloat16)
    w2 = params["w2"].reshape(9 * Cout, Cout).astype(jnp.bfloat16)
    wi = params["wi"].reshape(Cin, Cout).astype(jnp.bfloat16)

    const_spec = lambda shape: pl.BlockSpec(shape, lambda n, r: (0,) * len(shape))

    # ---- pass A: conv1(3x3) + identity conv(1x1) + partial BN stats ---------------
    conv1_raw, convi_raw, st1, sti = pl.pallas_call(
        _make_conv1_identity_kernel(H, W, Cin, Cout, TR),
        grid=(N, R),
        in_specs=[
            pl.BlockSpec((1, H, W, Cin), lambda n, r: (n, 0, 0, 0)),
            const_spec((9 * Cin, Cout)),
            const_spec((Cin, Cout)),
        ],
        out_specs=(
            pl.BlockSpec((1, TR, W, Cout), lambda n, r: (n, r, 0, 0)),
            pl.BlockSpec((1, TR, W, Cout), lambda n, r: (n, r, 0, 0)),
            pl.BlockSpec((1, 1, 2, Cout), lambda n, r: (n, r, 0, 0)),
            pl.BlockSpec((1, 1, 2, Cout), lambda n, r: (n, r, 0, 0)),
        ),
        out_shape=(
            jax.ShapeDtypeStruct((N, H, W, Cout), f32),
            jax.ShapeDtypeStruct((N, H, W, Cout), f32),
            jax.ShapeDtypeStruct((N, R, 2, Cout), f32),
            jax.ShapeDtypeStruct((N, R, 2, Cout), f32),
        ),
        scratch_shapes=[pltpu.VMEM((H + 2, W + 2, Cin), f32)],
        compiler_params=pltpu.CompilerParams(
            dimension_semantics=("parallel", "arbitrary"),
            vmem_limit_bytes=_VMEM_LIMIT),
    )(x, w1, wi)

    scale1, shift1 = _bn_affine(st1, params["g1"], params["beta1"], count)
    scalei, shifti = _bn_affine(sti, params["gi"], params["betai"], count)

    # ---- pass B: BN1 + ReLU + conv2(3x3) + partial BN stats ------------------------
    conv2_raw, st2 = pl.pallas_call(
        _make_bn_relu_conv2_kernel(H, W, Cout, TR),
        grid=(N, R),
        in_specs=[
            pl.BlockSpec((1, H, W, Cout), lambda n, r: (n, 0, 0, 0)),
            const_spec((1, Cout)),
            const_spec((1, Cout)),
            const_spec((9 * Cout, Cout)),
        ],
        out_specs=(
            pl.BlockSpec((1, TR, W, Cout), lambda n, r: (n, r, 0, 0)),
            pl.BlockSpec((1, 1, 2, Cout), lambda n, r: (n, r, 0, 0)),
        ),
        out_shape=(
            jax.ShapeDtypeStruct((N, H, W, Cout), f32),
            jax.ShapeDtypeStruct((N, R, 2, Cout), f32),
        ),
        scratch_shapes=[pltpu.VMEM((H + 2, W + 2, Cout), f32)],
        compiler_params=pltpu.CompilerParams(
            dimension_semantics=("parallel", "arbitrary"),
            vmem_limit_bytes=_VMEM_LIMIT),
    )(conv1_raw, scale1, shift1, w2)

    scale2, shift2 = _bn_affine(st2, params["g2"], params["beta2"], count)

    # ---- pass C: BN2 + BN_identity + residual add + ReLU, lane-dense output --------
    out2d = pl.pallas_call(
        _make_finalize_kernel(W, Cout, TR),
        grid=(N, R),
        in_specs=[
            pl.BlockSpec((1, TR, W, Cout), lambda n, r: (n, r, 0, 0)),
            pl.BlockSpec((1, TR, W, Cout), lambda n, r: (n, r, 0, 0)),
            const_spec((1, Cout)),
            const_spec((1, Cout)),
            const_spec((1, Cout)),
            const_spec((1, Cout)),
        ],
        out_specs=pl.BlockSpec((TR, W * Cout), lambda n, r: (n * R + r, 0)),
        out_shape=jax.ShapeDtypeStruct((N * H, W * Cout), f32),
        compiler_params=pltpu.CompilerParams(
            dimension_semantics=("parallel", "parallel"),
            vmem_limit_bytes=_VMEM_LIMIT),
    )(conv2_raw, convi_raw, scale2, shift2, scalei, shifti)

    out = out2d.reshape(N, H, W, Cout)
    return jnp.transpose(out, (0, 3, 1, 2))                           # back to NCHW


# ---------------- parameter init (deterministic, PyTorch-style shapes) ----------------
def _conv_params(key, cout, cin, k):
    kw, kb = jax.random.split(key)
    bound = (cin * k * k) ** -0.5
    w_oihw = jax.random.uniform(kw, (cout, cin, k, k), jnp.float32, -bound, bound)
    b = jax.random.uniform(kb, (cout,), jnp.float32, -bound, bound)
    w_hwio = jnp.transpose(w_oihw, (2, 3, 1, 0))                      # (K, K, Cin, Cout)
    return w_hwio, b.reshape(1, cout)


def init_params(key, in_channels, out_channels):
    k1, k2, k3, k4 = jax.random.split(key, 4)
    w1, b1 = _conv_params(k1, out_channels, in_channels, 3)
    w2, b2 = _conv_params(k2, out_channels, out_channels, 3)
    wi, bi = _conv_params(k3, out_channels, in_channels, 1)
    kg1, kb1, kg2, kb2, kgi, kbi = jax.random.split(k4, 6)
    g = lambda k: jax.random.uniform(k, (1, out_channels), jnp.float32, 0.5, 1.5)
    b = lambda k: jax.random.uniform(k, (1, out_channels), jnp.float32, -0.5, 0.5)
    return dict(
        w1=w1, b1=b1, g1=g(kg1), beta1=b(kb1),
        w2=w2, b2=b2, g2=g(kg2), beta2=b(kb2),
        wi=wi, bi=bi, gi=g(kgi), betai=b(kbi),
    )


# ---------------- pure-JAX reference (bf16 conv precision to match the kernel) --------
def _ref_conv_bn(x, w, b, g, beta, pad, relu, eps=_BN_EPS):
    y = lax.conv_general_dilated(
        x.astype(jnp.bfloat16), w.astype(jnp.bfloat16),
        window_strides=(1, 1), padding=pad,
        dimension_numbers=("NHWC", "HWIO", "NHWC"),
        preferred_element_type=jnp.float32,
    ) + b.reshape(1, 1, 1, -1)
    m = jnp.mean(y, axis=(0, 1, 2), keepdims=True)
    v = jnp.mean((y - m) ** 2, axis=(0, 1, 2), keepdims=True)
    y = (y - m) * lax.rsqrt(v + eps) * g.reshape(1, 1, 1, -1) + beta.reshape(1, 1, 1, -1)
    return jnp.maximum(y, 0.0) if relu else y


def double_conv_reference(x_nchw, p):
    x = jnp.transpose(x_nchw, (0, 2, 3, 1)).astype(jnp.float32)
    res = _ref_conv_bn(x, p["wi"], p["bi"], p["gi"], p["betai"], "VALID", False)
    h1 = _ref_conv_bn(x, p["w1"], p["b1"], p["g1"], p["beta1"], "SAME", True)
    h2 = _ref_conv_bn(h1, p["w2"], p["b2"], p["g2"], p["beta2"], "SAME", False)
    out = jnp.maximum(h2 + res, 0.0)
    return jnp.transpose(out, (0, 3, 1, 2))


if __name__ == "__main__":
    key = jax.random.PRNGKey(0)
    kx, kp = jax.random.split(key)

    N, Cin, Cout, H, W = 2, 4, 8, 16, 16
    x = jax.random.normal(kx, (N, Cin, H, W), jnp.float32)
    params = init_params(kp, Cin, Cout)

    out = double_conv_forward(x, params)
    out = jax.block_until_ready(out)

    ref = double_conv_reference(x, params)
    assert out.shape == (N, Cout, H, W)
    err = jnp.max(jnp.abs(out - ref))
    assert jnp.allclose(out, ref, atol=2e-2, rtol=2e-2), f"max abs err {err}"

    print("KERNEL_OK")
</pallas_src>

<mosaic_0001>
module attributes {stable_mosaic.version = 11 : i64} {
  func.func @kernel(%arg0: i32, %arg1: i32, %arg2: memref<1x16x16x4xf32, #tpu.memory_space<vmem>>, %arg3: memref<36x8xbf16, #tpu.memory_space<vmem>>, %arg4: memref<4x8xbf16, #tpu.memory_space<vmem>>, %arg5: memref<1x8x16x8xf32, #tpu.memory_space<vmem>>, %arg6: memref<1x8x16x8xf32, #tpu.memory_space<vmem>>, %arg7: memref<1x1x2x8xf32, #tpu.memory_space<vmem>>, %arg8: memref<1x1x2x8xf32, #tpu.memory_space<vmem>>, %arg9: memref<18x18x4xf32, #tpu.memory_space<vmem>>) attributes {dimension_semantics = [#tpu.dimension_semantics<parallel>, #tpu.dimension_semantics<arbitrary>], iteration_bounds = array<i64: 2, 2>, scalar_prefetch = 0 : i64, scratch_operands = 1 : i64, tpu.core_type = #tpu.core_type<tc>, window_params = [{transform_indices = @transform_0, window_bounds = array<i64: 1, 16, 16, 4>}, {pipeline_mode = #tpu.pipeline_mode<synchronous>, transform_indices = @transform_1, window_bounds = array<i64: 36, 8>}, {pipeline_mode = #tpu.pipeline_mode<synchronous>, transform_indices = @transform_2, window_bounds = array<i64: 4, 8>}, {transform_indices = @transform_3, window_bounds = array<i64: 1, 8, 16, 8>}, {transform_indices = @transform_4, window_bounds = array<i64: 1, 8, 16, 8>}, {transform_indices = @transform_5, window_bounds = array<i64: 1, 1, 2, 8>}, {transform_indices = @transform_6, window_bounds = array<i64: 1, 1, 2, 8>}]} {
    %c0_i32 = arith.constant 0 : i32
    %0 = arith.cmpi eq, %arg1, %c0_i32 : i32
    %1 = arith.extui %0 : i1 to i32
    %c0_i32_0 = arith.constant 0 : i32
    %2 = arith.cmpi ne, %1, %c0_i32_0 : i32
    scf.if %2 {
      %c0_51 = arith.constant 0 : index
      %c0_52 = arith.constant 0 : index
      %c0_53 = arith.constant 0 : index
      %c0_54 = arith.constant 0 : index
      %64 = vector.load %arg2[%c0_51, %c0_52, %c0_53, %c0_54] : memref<1x16x16x4xf32, #tpu.memory_space<vmem>>, vector<1x16x16x4xf32>
      %65 = vector.shape_cast %64 : vector<1x16x16x4xf32> to vector<16x16x4xf32>
      %cst_55 = arith.constant 0.000000e+00 : f32
      %66 = vector.broadcast %cst_55 : f32 to vector<16x1x4xf32>
      %cst_56 = arith.constant 0.000000e+00 : f32
      %67 = vector.broadcast %cst_56 : f32 to vector<1x18x4xf32>
      %68 = tpu.concatenate %66, %65, %66 in 1 : vector<16x1x4xf32>, vector<16x16x4xf32>, vector<16x1x4xf32> -> vector<16x18x4xf32>
      %69 = tpu.concatenate %67, %68, %67 in 0 : vector<1x18x4xf32>, vector<16x18x4xf32>, vector<1x18x4xf32> -> vector<18x18x4xf32>
      %c0_57 = arith.constant 0 : index
      %c0_58 = arith.constant 0 : index
      %c0_59 = arith.constant 0 : index
      %70 = vector.load %arg9[%c0_57, %c0_58, %c0_59] : memref<18x18x4xf32, #tpu.memory_space<vmem>>, vector<18x18x4xf32>
      tpu.vector_store %arg9[%c0_57, %c0_58, %c0_59], %69 {strides = array<i32>} : memref<18x18x4xf32, #tpu.memory_space<vmem>>, vector<18x18x4xf32>,
    } else {
    }
    %c8_i32 = arith.constant 8 : i32
    %3 = arith.muli %arg1, %c8_i32 : i32
    %4 = tpu.assume_multiple %3, 8 : i32
    %c0_i32_1 = arith.constant 0 : i32
    %5 = arith.addi %4, %c0_i32_1 : i32
    %6 = arith.index_cast %5 : i32 to index
    %c0 = arith.constant 0 : index
    %c0_2 = arith.constant 0 : index
    %7 = vector.load %arg9[%6, %c0, %c0_2] : memref<18x18x4xf32, #tpu.memory_space<vmem>>, vector<8x16x4xf32>
    %c0_i32_3 = arith.constant 0 : i32
    %8 = arith.addi %4, %c0_i32_3 : i32
    %9 = arith.index_cast %8 : i32 to index
    %c1 = arith.constant 1 : index
    %c0_4 = arith.constant 0 : index
    %10 = vector.load %arg9[%9, %c1, %c0_4] : memref<18x18x4xf32, #tpu.memory_space<vmem>>, vector<8x16x4xf32>
    %c0_i32_5 = arith.constant 0 : i32
    %11 = arith.addi %4, %c0_i32_5 : i32
    %12 = arith.index_cast %11 : i32 to index
    %c2 = arith.constant 2 : index
    %c0_6 = arith.constant 0 : index
    %13 = vector.load %arg9[%12, %c2, %c0_6] : memref<18x18x4xf32, #tpu.memory_space<vmem>>, vector<8x16x4xf32>
    %c1_i32 = arith.constant 1 : i32
    %14 = arith.addi %4, %c1_i32 : i32
    %15 = arith.index_cast %14 : i32 to index
    %c0_7 = arith.constant 0 : index
    %c0_8 = arith.constant 0 : index
    %16 = vector.load %arg9[%15, %c0_7, %c0_8] : memref<18x18x4xf32, #tpu.memory_space<vmem>>, vector<8x16x4xf32>
    %c1_i32_9 = arith.constant 1 : i32
    %17 = arith.addi %4, %c1_i32_9 : i32
    %18 = arith.index_cast %17 : i32 to index
    %c1_10 = arith.constant 1 : index
    %c0_11 = arith.constant 0 : index
    %19 = vector.load %arg9[%18, %c1_10, %c0_11] : memref<18x18x4xf32, #tpu.memory_space<vmem>>, vector<8x16x4xf32>
    %c1_i32_12 = arith.constant 1 : i32
    %20 = arith.addi %4, %c1_i32_12 : i32
    %21 = arith.index_cast %20 : i32 to index
    %c2_13 = arith.constant 2 : index
    %c0_14 = arith.constant 0 : index
    %22 = vector.load %arg9[%21, %c2_13, %c0_14] : memref<18x18x4xf32, #tpu.memory_space<vmem>>, vector<8x16x4xf32>
    %c2_i32 = arith.constant 2 : i32
    %23 = arith.addi %4, %c2_i32 : i32
    %24 = arith.index_cast %23 : i32 to index
    %c0_15 = arith.constant 0 : index
    %c0_16 = arith.constant 0 : index
    %25 = vector.load %arg9[%24, %c0_15, %c0_16] : memref<18x18x4xf32, #tpu.memory_space<vmem>>, vector<8x16x4xf32>
    %c2_i32_17 = arith.constant 2 : i32
    %26 = arith.addi %4, %c2_i32_17 : i32
    %27 = arith.index_cast %26 : i32 to index
    %c1_18 = arith.constant 1 : index
    %c0_19 = arith.constant 0 : index
    %28 = vector.load %arg9[%27, %c1_18, %c0_19] : memref<18x18x4xf32, #tpu.memory_space<vmem>>, vector<8x16x4xf32>
    %c2_i32_20 = arith.constant 2 : i32
    %29 = arith.addi %4, %c2_i32_20 : i32
    %30 = arith.index_cast %29 : i32 to index
    %c2_21 = arith.constant 2 : index
    %c0_22 = arith.constant 0 : index
    %31 = vector.load %arg9[%30, %c2_21, %c0_22] : memref<18x18x4xf32, #tpu.memory_space<vmem>>, vector<8x16x4xf32>
    %32 = tpu.concatenate %7, %10, %13, %16, %19, %22, %25, %28, %31 in 2 : vector<8x16x4xf32>, vector<8x16x4xf32>, vector<8x16x4xf32>, vector<8x16x4xf32>, vector<8x16x4xf32>, vector<8x16x4xf32>, vector<8x16x4xf32>, vector<8x16x4xf32>, vector<8x16x4xf32> -> vector<8x16x36xf32>
    %33 = vector.shape_cast %32 : vector<8x16x36xf32> to vector<128x36xf32>
    %34 = arith.truncf %33 : vector<128x36xf32> to vector<128x36xbf16>
    %c0_23 = arith.constant 0 : index
    %c0_24 = arith.constant 0 : index
    %35 = vector.load %arg3[%c0_23, %c0_24] : memref<36x8xbf16, #tpu.memory_space<vmem>>, vector<36x8xbf16>
    %cst = arith.constant dense<0.000000e+00> : vector<128x8xf32>
    %36 = tpu.matmul %34, %35, %cst {dimension_numbers = #tpu.dot_dimension_numbers<[1], [0], [0], [1], [0, 0, 1, 1], [], []>} : vector<128x36xbf16>, vector<36x8xbf16>, vector<128x8xf32> -> vector<128x8xf32>
    %c1_i32_25 = arith.constant 1 : i32
    %37 = arith.addi %4, %c1_i32_25 : i32
    %38 = arith.index_cast %37 : i32 to index
    %c1_26 = arith.constant 1 : index
    %c0_27 = arith.constant 0 : index
    %39 = vector.load %arg9[%38, %c1_26, %c0_27] : memref<18x18x4xf32, #tpu.memory_space<vmem>>, vector<8x16x4xf32>
    %40 = vector.shape_cast %39 : vector<8x16x4xf32> to vector<128x4xf32>
    %41 = arith.truncf %40 : vector<128x4xf32> to vector<128x4xbf16>
    %c0_28 = arith.constant 0 : index
    %c0_29 = arith.constant 0 : index
    %42 = vector.load %arg4[%c0_28, %c0_29] : memref<4x8xbf16, #tpu.memory_space<vmem>>, vector<4x8xbf16>
    %cst_30 = arith.constant dense<0.000000e+00> : vector<128x8xf32>
    %43 = tpu.matmul %41, %42, %cst_30 {dimension_numbers = #tpu.dot_dimension_numbers<[1], [0], [0], [1], [0, 0, 1, 1], [], []>} : vector<128x4xbf16>, vector<4x8xbf16>, vector<128x8xf32> -> vector<128x8xf32>
    %44 = vector.shape_cast %36 : vector<128x8xf32> to vector<1x8x16x8xf32>
    %c0_31 = arith.constant 0 : index
    %c0_32 = arith.constant 0 : index
    %c0_33 = arith.constant 0 : index
    %c0_34 = arith.constant 0 : index
    %45 = vector.load %arg5[%c0_31, %c0_32, %c0_33, %c0_34] : memref<1x8x16x8xf32, #tpu.memory_space<vmem>>, vector<1x8x16x8xf32>
    tpu.vector_store %arg5[%c0_31, %c0_32, %c0_33, %c0_34], %44 {strides = array<i32>} : memref<1x8x16x8xf32, #tpu.memory_space<vmem>>, vector<1x8x16x8xf32>,
    %46 = vector.shape_cast %43 : vector<128x8xf32> to vector<1x8x16x8xf32>
    %c0_35 = arith.constant 0 : index
    %c0_36 = arith.constant 0 : index
    %c0_37 = arith.constant 0 : index
    %c0_38 = arith.constant 0 : index
    %47 = vector.load %arg6[%c0_35, %c0_36, %c0_37, %c0_38] : memref<1x8x16x8xf32, #tpu.memory_space<vmem>>, vector<1x8x16x8xf32>
    tpu.vector_store %arg6[%c0_35, %c0_36, %c0_37, %c0_38], %46 {strides = array<i32>} : memref<1x8x16x8xf32, #tpu.memory_space<vmem>>, vector<1x8x16x8xf32>,
    %cst_39 = arith.constant dense<0.000000e+00> : vector<8xf32>
    %48 = vector.multi_reduction <add>, %36, %cst_39 [0] : vector<128x8xf32> to vector<8xf32>
    %49 = vector.shape_cast %48 : vector<8xf32> to vector<1x8xf32>
    %50 = arith.mulf %36, %36 : vector<128x8xf32>
    %cst_40 = arith.constant dense<0.000000e+00> : vector<8xf32>
    %51 = vector.multi_reduction <add>, %50, %cst_40 [0] : vector<128x8xf32> to vector<8xf32>
    %52 = vector.shape_cast %51 : vector<8xf32> to vector<1x8xf32>
    %53 = tpu.concatenate %49, %52 in 0 : vector<1x8xf32>, vector<1x8xf32> -> vector<2x8xf32>
    %54 = vector.shape_cast %53 : vector<2x8xf32> to vector<1x1x2x8xf32>
    %c0_41 = arith.constant 0 : index
    %c0_42 = arith.constant 0 : index
    %c0_43 = arith.constant 0 : index
    %c0_44 = arith.constant 0 : index
    %55 = vector.load %arg7[%c0_41, %c0_42, %c0_43, %c0_44] : memref<1x1x2x8xf32, #tpu.memory_space<vmem>>, vector<1x1x2x8xf32>
    tpu.vector_store %arg7[%c0_41, %c0_42, %c0_43, %c0_44], %54 {strides = array<i32>} : memref<1x1x2x8xf32, #tpu.memory_space<vmem>>, vector<1x1x2x8xf32>,
    %cst_45 = arith.constant dense<0.000000e+00> : vector<8xf32>
    %56 = vector.multi_reduction <add>, %43, %cst_45 [0] : vector<128x8xf32> to vector<8xf32>
    %57 = vector.shape_cast %56 : vector<8xf32> to vector<1x8xf32>
    %58 = arith.mulf %43, %43 : vector<128x8xf32>
    %cst_46 = arith.constant dense<0.000000e+00> : vector<8xf32>
    %59 = vector.multi_reduction <add>, %58, %cst_46 [0] : vector<128x8xf32> to vector<8xf32>
    %60 = vector.shape_cast %59 : vector<8xf32> to vector<1x8xf32>
    %61 = tpu.concatenate %57, %60 in 0 : vector<1x8xf32>, vector<1x8xf32> -> vector<2x8xf32>
    %62 = vector.shape_cast %61 : vector<2x8xf32> to vector<1x1x2x8xf32>
    %c0_47 = arith.constant 0 : index
    %c0_48 = arith.constant 0 : index
    %c0_49 = arith.constant 0 : index
    %c0_50 = arith.constant 0 : index
    %63 = vector.load %arg8[%c0_47, %c0_48, %c0_49, %c0_50] : memref<1x1x2x8xf32, #tpu.memory_space<vmem>>, vector<1x1x2x8xf32>
    tpu.vector_store %arg8[%c0_47, %c0_48, %c0_49, %c0_50], %62 {strides = array<i32>} : memref<1x1x2x8xf32, #tpu.memory_space<vmem>>, vector<1x1x2x8xf32>,
    return
  }
  func.func @transform_0(%arg0: i32, %arg1: i32) -> (i32, i32, i32, i32) {
    %c0_i32 = arith.constant 0 : i32
    %c0_i32_0 = arith.constant 0 : i32
    %c0_i32_1 = arith.constant 0 : i32
    %c0_i32_2 = arith.constant 0 : i32
    return %arg0, %c0_i32, %c0_i32_0, %c0_i32_1 : i32, i32, i32, i32
  }
  func.func @transform_1(%arg0: i32, %arg1: i32) -> (i32, i32) {
    %c0_i32 = arith.constant 0 : i32
    %c0_i32_0 = arith.constant 0 : i32
    %c0_i32_1 = arith.constant 0 : i32
    return %c0_i32, %c0_i32_0 : i32, i32
  }
  func.func @transform_2(%arg0: i32, %arg1: i32) -> (i32, i32) {
    %c0_i32 = arith.constant 0 : i32
    %c0_i32_0 = arith.constant 0 : i32
    %c0_i32_1 = arith.constant 0 : i32
    return %c0_i32, %c0_i32_0 : i32, i32
  }
  func.func @transform_3(%arg0: i32, %arg1: i32) -> (i32, i32, i32, i32) {
    %c0_i32 = arith.constant 0 : i32
    %c0_i32_0 = arith.constant 0 : i32
    %c0_i32_1 = arith.constant 0 : i32
    return %arg0, %arg1, %c0_i32, %c0_i32_0 : i32, i32, i32, i32
  }
  func.func @transform_4(%arg0: i32, %arg1: i32) -> (i32, i32, i32, i32) {
    %c0_i32 = arith.constant 0 : i32
    %c0_i32_0 = arith.constant 0 : i32
    %c0_i32_1 = arith.constant 0 : i32
    return %arg0, %arg1, %c0_i32, %c0_i32_0 : i32, i32, i32, i32
  }
  func.func @transform_5(%arg0: i32, %arg1: i32) -> (i32, i32, i32, i32) {
    %c0_i32 = arith.constant 0 : i32
    %c0_i32_0 = arith.constant 0 : i32
    %c0_i32_1 = arith.constant 0 : i32
    return %arg0, %arg1, %c0_i32, %c0_i32_0 : i32, i32, i32, i32
  }
  func.func @transform_6(%arg0: i32, %arg1: i32) -> (i32, i32, i32, i32) {
    %c0_i32 = arith.constant 0 : i32
    %c0_i32_0 = arith.constant 0 : i32
    %c0_i32_1 = arith.constant 0 : i32
    return %arg0, %arg1, %c0_i32, %c0_i32_0 : i32, i32, i32, i32
  }
}

module attributes {stable_mosaic.version = 11 : i64} {
  func.func @kernel(%arg0: i32, %arg1: i32, %arg2: memref<1x8x16x8xf32, #tpu.memory_space<vmem>>, %arg3: memref<1x8x16x8xf32, #tpu.memory_space<vmem>>, %arg4: memref<1x8xf32, #tpu.memory_space<vmem>>, %arg5: memref<1x8xf32, #tpu.memory_space<vmem>>, %arg6: memref<1x8xf32, #tpu.memory_space<vmem>>, %arg7: memref<1x8xf32, #tpu.memory_space<vmem>>, %arg8: memref<8x128xf32, #tpu.memory_space<vmem>>) attributes {dimension_semantics = [#tpu.dimension_semantics<parallel>, #tpu.dimension_semantics<parallel>], iteration_bounds = array<i64: 2, 2>, scalar_prefetch = 0 : i64, scratch_operands = 0 : i64, tpu.core_type = #tpu.core_type<tc>, window_params = [{transform_indices = @transform_0, window_bounds = array<i64: 1, 8, 16, 8>}, {transform_indices = @transform_1, window_bounds = array<i64: 1, 8, 16, 8>}, {pipeline_mode = #tpu.pipeline_mode<synchronous>, transform_indices = @transform_2, window_bounds = array<i64: 1, 8>}, {pipeline_mode = #tpu.pipeline_mode<synchronous>, transform_indices = @transform_3, window_bounds = array<i64: 1, 8>}, {pipeline_mode = #tpu.pipeline_mode<synchronous>, transform_indices = @transform_4, window_bounds = array<i64: 1, 8>}, {pipeline_mode = #tpu.pipeline_mode<synchronous>, transform_indices = @transform_5, window_bounds = array<i64: 1, 8>}, {transform_indices = @transform_6, window_bounds = array<i64: 8, 128>}]} {
    %c0 = arith.constant 0 : index
    %c0_0 = arith.constant 0 : index
    %0 = vector.load %arg4[%c0, %c0_0] : memref<1x8xf32, #tpu.memory_space<vmem>>, vector<1x8xf32>
    %1 = vector.shape_cast %0 : vector<1x8xf32> to vector<1x1x8xf32>
    %c0_1 = arith.constant 0 : index
    %c0_2 = arith.constant 0 : index
    %2 = vector.load %arg5[%c0_1, %c0_2] : memref<1x8xf32, #tpu.memory_space<vmem>>, vector<1x8xf32>
    %3 = vector.shape_cast %2 : vector<1x8xf32> to vector<1x1x8xf32>
    %c0_3 = arith.constant 0 : index
    %c0_4 = arith.constant 0 : index
    %4 = vector.load %arg6[%c0_3, %c0_4] : memref<1x8xf32, #tpu.memory_space<vmem>>, vector<1x8xf32>
    %5 = vector.shape_cast %4 : vector<1x8xf32> to vector<1x1x8xf32>
    %c0_5 = arith.constant 0 : index
    %c0_6 = arith.constant 0 : index
    %6 = vector.load %arg7[%c0_5, %c0_6] : memref<1x8xf32, #tpu.memory_space<vmem>>, vector<1x8xf32>
    %7 = vector.shape_cast %6 : vector<1x8xf32> to vector<1x1x8xf32>
    %c0_7 = arith.constant 0 : index
    %c0_8 = arith.constant 0 : index
    %c0_9 = arith.constant 0 : index
    %c0_10 = arith.constant 0 : index
    %8 = vector.load %arg2[%c0_7, %c0_8, %c0_9, %c0_10] : memref<1x8x16x8xf32, #tpu.memory_space<vmem>>, vector<1x8x16x8xf32>
    %9 = vector.shape_cast %8 : vector<1x8x16x8xf32> to vector<8x16x8xf32>
    %10 = vector.broadcast %1 : vector<1x1x8xf32> to vector<8x16x8xf32>
    %11 = arith.mulf %9, %10 : vector<8x16x8xf32>
    %12 = vector.broadcast %3 : vector<1x1x8xf32> to vector<8x16x8xf32>
    %13 = arith.addf %11, %12 : vector<8x16x8xf32>
    %c0_11 = arith.constant 0 : index
    %c0_12 = arith.constant 0 : index
    %c0_13 = arith.constant 0 : index
    %c0_14 = arith.constant 0 : index
    %14 = vector.load %arg3[%c0_11, %c0_12, %c0_13, %c0_14] : memref<1x8x16x8xf32, #tpu.memory_space<vmem>>, vector<1x8x16x8xf32>
    %15 = vector.shape_cast %14 : vector<1x8x16x8xf32> to vector<8x16x8xf32>
    %16 = vector.broadcast %5 : vector<1x1x8xf32> to vector<8x16x8xf32>
    %17 = arith.mulf %15, %16 : vector<8x16x8xf32>
    %18 = vector.broadcast %7 : vector<1x1x8xf32> to vector<8x16x8xf32>
    %19 = arith.addf %17, %18 : vector<8x16x8xf32>
    %20 = arith.addf %13, %19 : vector<8x16x8xf32>
    %cst = arith.constant 0.000000e+00 : f32
    %21 = vector.broadcast %cst : f32 to vector<8x16x8xf32>
    %22 = arith.maximumf %20, %21 : vector<8x16x8xf32>
    %23 = vector.shape_cast %22 : vector<8x16x8xf32> to vector<8x128xf32>
    %c0_15 = arith.constant 0 : index
    %c0_16 = arith.constant 0 : index
    %24 = vector.load %arg8[%c0_15, %c0_16] : memref<8x128xf32, #tpu.memory_space<vmem>>, vector<8x128xf32>
    tpu.vector_store %arg8[%c0_15, %c0_16], %23 {strides = array<i32>} : memref<8x128xf32, #tpu.memory_space<vmem>>, vector<8x128xf32>,
    return
  }
  func.func @transform_0(%arg0: i32, %arg1: i32) -> (i32, i32, i32, i32) {
    %c0_i32 = arith.constant 0 : i32
    %c0_i32_0 = arith.constant 0 : i32
    %c0_i32_1 = arith.constant 0 : i32
    return %arg0, %arg1, %c0_i32, %c0_i32_0 : i32, i32, i32, i32
  }
  func.func @transform_1(%arg0: i32, %arg1: i32) -> (i32, i32, i32, i32) {
    %c0_i32 = arith.constant 0 : i32
    %c0_i32_0 = arith.constant 0 : i32
    %c0_i32_1 = arith.constant 0 : i32
    return %arg0, %arg1, %c0_i32, %c0_i32_0 : i32, i32, i32, i32
  }
  func.func @transform_2(%arg0: i32, %arg1: i32) -> (i32, i32) {
    %c0_i32 = arith.constant 0 : i32
    %c0_i32_0 = arith.constant 0 : i32
    %c0_i32_1 = arith.constant 0 : i32
    return %c0_i32, %c0_i32_0 : i32, i32
  }
  func.func @transform_3(%arg0: i32, %arg1: i32) -> (i32, i32) {
    %c0_i32 = arith.constant 0 : i32
    %c0_i32_0 = arith.constant 0 : i32
    %c0_i32_1 = arith.constant 0 : i32
    return %c0_i32, %c0_i32_0 : i32, i32
  }
  func.func @transform_4(%arg0: i32, %arg1: i32) -> (i32, i32) {
    %c0_i32 = arith.constant 0 : i32
    %c0_i32_0 = arith.constant 0 : i32
    %c0_i32_1 = arith.constant 0 : i32
    return %c0_i32, %c0_i32_0 : i32, i32
  }
  func.func @transform_5(%arg0: i32, %arg1: i32) -> (i32, i32) {
    %c0_i32 = arith.constant 0 : i32
    %c0_i32_0 = arith.constant 0 : i32
    %c0_i32_1 = arith.constant 0 : i32
    return %c0_i32, %c0_i32_0 : i32, i32
  }
  func.func @transform_6(%arg0: i32, %arg1: i32) -> (i32, i32) {
    %c2_i32 = arith.constant 2 : i32
    %0 = arith.muli %arg0, %c2_i32 : i32
    %1 = arith.addi %0, %arg1 : i32
    %c0_i32 = arith.constant 0 : i32
    %c0_i32_0 = arith.constant 0 : i32
    return %1, %c0_i32 : i32, i32
  }
}

module attributes {stable_mosaic.version = 11 : i64} {
  func.func @kernel(%arg0: i32, %arg1: i32, %arg2: memref<1x16x16x8xf32, #tpu.memory_space<vmem>>, %arg3: memref<1x8xf32, #tpu.memory_space<vmem>>, %arg4: memref<1x8xf32, #tpu.memory_space<vmem>>, %arg5: memref<72x8xbf16, #tpu.memory_space<vmem>>, %arg6: memref<1x8x16x8xf32, #tpu.memory_space<vmem>>, %arg7: memref<1x1x2x8xf32, #tpu.memory_space<vmem>>, %arg8: memref<18x18x8xf32, #tpu.memory_space<vmem>>) attributes {dimension_semantics = [#tpu.dimension_semantics<parallel>, #tpu.dimension_semantics<arbitrary>], iteration_bounds = array<i64: 2, 2>, scalar_prefetch = 0 : i64, scratch_operands = 1 : i64, tpu.core_type = #tpu.core_type<tc>, window_params = [{transform_indices = @transform_0, window_bounds = array<i64: 1, 16, 16, 8>}, {pipeline_mode = #tpu.pipeline_mode<synchronous>, transform_indices = @transform_1, window_bounds = array<i64: 1, 8>}, {pipeline_mode = #tpu.pipeline_mode<synchronous>, transform_indices = @transform_2, window_bounds = array<i64: 1, 8>}, {pipeline_mode = #tpu.pipeline_mode<synchronous>, transform_indices = @transform_3, window_bounds = array<i64: 72, 8>}, {transform_indices = @transform_4, window_bounds = array<i64: 1, 8, 16, 8>}, {transform_indices = @transform_5, window_bounds = array<i64: 1, 1, 2, 8>}]} {
    %c0_i32 = arith.constant 0 : i32
    %0 = arith.cmpi eq, %arg1, %c0_i32 : i32
    %1 = arith.extui %0 : i1 to i32
    %c0_i32_0 = arith.constant 0 : i32
    %2 = arith.cmpi ne, %1, %c0_i32_0 : i32
    scf.if %2 {
      %c0_35 = arith.constant 0 : index
      %c0_36 = arith.constant 0 : index
      %c0_37 = arith.constant 0 : index
      %c0_38 = arith.constant 0 : index
      %47 = vector.load %arg2[%c0_35, %c0_36, %c0_37, %c0_38] : memref<1x16x16x8xf32, #tpu.memory_space<vmem>>, vector<1x16x16x8xf32>
      %48 = vector.shape_cast %47 : vector<1x16x16x8xf32> to vector<16x16x8xf32>
      %c0_39 = arith.constant 0 : index
      %c0_40 = arith.constant 0 : index
      %49 = vector.load %arg3[%c0_39, %c0_40] : memref<1x8xf32, #tpu.memory_space<vmem>>, vector<1x8xf32>
      %50 = vector.shape_cast %49 : vector<1x8xf32> to vector<1x1x8xf32>
      %51 = vector.broadcast %50 : vector<1x1x8xf32> to vector<16x16x8xf32>
      %52 = arith.mulf %48, %51 : vector<16x16x8xf32>
      %c0_41 = arith.constant 0 : index
      %c0_42 = arith.constant 0 : index
      %53 = vector.load %arg4[%c0_41, %c0_42] : memref<1x8xf32, #tpu.memory_space<vmem>>, vector<1x8xf32>
      %54 = vector.shape_cast %53 : vector<1x8xf32> to vector<1x1x8xf32>
      %55 = vector.broadcast %54 : vector<1x1x8xf32> to vector<16x16x8xf32>
      %56 = arith.addf %52, %55 : vector<16x16x8xf32>
      %cst_43 = arith.constant 0.000000e+00 : f32
      %57 = vector.broadcast %cst_43 : f32 to vector<16x16x8xf32>
      %58 = arith.maximumf %56, %57 : vector<16x16x8xf32>
      %cst_44 = arith.constant 0.000000e+00 : f32
      %59 = vector.broadcast %cst_44 : f32 to vector<16x1x8xf32>
      %cst_45 = arith.constant 0.000000e+00 : f32
      %60 = vector.broadcast %cst_45 : f32 to vector<1x18x8xf32>
      %61 = tpu.concatenate %59, %58, %59 in 1 : vector<16x1x8xf32>, vector<16x16x8xf32>, vector<16x1x8xf32> -> vector<16x18x8xf32>
      %62 = tpu.concatenate %60, %61, %60 in 0 : vector<1x18x8xf32>, vector<16x18x8xf32>, vector<1x18x8xf32> -> vector<18x18x8xf32>
      %c0_46 = arith.constant 0 : index
      %c0_47 = arith.constant 0 : index
      %c0_48 = arith.constant 0 : index
      %63 = vector.load %arg8[%c0_46, %c0_47, %c0_48] : memref<18x18x8xf32, #tpu.memory_space<vmem>>, vector<18x18x8xf32>
      tpu.vector_store %arg8[%c0_46, %c0_47, %c0_48], %62 {strides = array<i32>} : memref<18x18x8xf32, #tpu.memory_space<vmem>>, vector<18x18x8xf32>,
    } else {
    }
    %c8_i32 = arith.constant 8 : i32
    %3 = arith.muli %arg1, %c8_i32 : i32
    %4 = tpu.assume_multiple %3, 8 : i32
    %c0_i32_1 = arith.constant 0 : i32
    %5 = arith.addi %4, %c0_i32_1 : i32
    %6 = arith.index_cast %5 : i32 to index
    %c0 = arith.constant 0 : index
    %c0_2 = arith.constant 0 : index
    %7 = vector.load %arg8[%6, %c0, %c0_2] : memref<18x18x8xf32, #tpu.memory_space<vmem>>, vector<8x16x8xf32>
    %c0_i32_3 = arith.constant 0 : i32
    %8 = arith.addi %4, %c0_i32_3 : i32
    %9 = arith.index_cast %8 : i32 to index
    %c1 = arith.constant 1 : index
    %c0_4 = arith.constant 0 : index
    %10 = vector.load %arg8[%9, %c1, %c0_4] : memref<18x18x8xf32, #tpu.memory_space<vmem>>, vector<8x16x8xf32>
    %c0_i32_5 = arith.constant 0 : i32
    %11 = arith.addi %4, %c0_i32_5 : i32
    %12 = arith.index_cast %11 : i32 to index
    %c2 = arith.constant 2 : index
    %c0_6 = arith.constant 0 : index
    %13 = vector.load %arg8[%12, %c2, %c0_6] : memref<18x18x8xf32, #tpu.memory_space<vmem>>, vector<8x16x8xf32>
    %c1_i32 = arith.constant 1 : i32
    %14 = arith.addi %4, %c1_i32 : i32
    %15 = arith.index_cast %14 : i32 to index
    %c0_7 = arith.constant 0 : index
    %c0_8 = arith.constant 0 : index
    %16 = vector.load %arg8[%15, %c0_7, %c0_8] : memref<18x18x8xf32, #tpu.memory_space<vmem>>, vector<8x16x8xf32>
    %c1_i32_9 = arith.constant 1 : i32
    %17 = arith.addi %4, %c1_i32_9 : i32
    %18 = arith.index_cast %17 : i32 to index
    %c1_10 = arith.constant 1 : index
    %c0_11 = arith.constant 0 : index
    %19 = vector.load %arg8[%18, %c1_10, %c0_11] : memref<18x18x8xf32, #tpu.memory_space<vmem>>, vector<8x16x8xf32>
    %c1_i32_12 = arith.constant 1 : i32
    %20 = arith.addi %4, %c1_i32_12 : i32
    %21 = arith.index_cast %20 : i32 to index
    %c2_13 = arith.constant 2 : index
    %c0_14 = arith.constant 0 : index
    %22 = vector.load %arg8[%21, %c2_13, %c0_14] : memref<18x18x8xf32, #tpu.memory_space<vmem>>, vector<8x16x8xf32>
    %c2_i32 = arith.constant 2 : i32
    %23 = arith.addi %4, %c2_i32 : i32
    %24 = arith.index_cast %23 : i32 to index
    %c0_15 = arith.constant 0 : index
    %c0_16 = arith.constant 0 : index
    %25 = vector.load %arg8[%24, %c0_15, %c0_16] : memref<18x18x8xf32, #tpu.memory_space<vmem>>, vector<8x16x8xf32>
    %c2_i32_17 = arith.constant 2 : i32
    %26 = arith.addi %4, %c2_i32_17 : i32
    %27 = arith.index_cast %26 : i32 to index
    %c1_18 = arith.constant 1 : index
    %c0_19 = arith.constant 0 : index
    %28 = vector.load %arg8[%27, %c1_18, %c0_19] : memref<18x18x8xf32, #tpu.memory_space<vmem>>, vector<8x16x8xf32>
    %c2_i32_20 = arith.constant 2 : i32
    %29 = arith.addi %4, %c2_i32_20 : i32
    %30 = arith.index_cast %29 : i32 to index
    %c2_21 = arith.constant 2 : index
    %c0_22 = arith.constant 0 : index
    %31 = vector.load %arg8[%30, %c2_21, %c0_22] : memref<18x18x8xf32, #tpu.memory_space<vmem>>, vector<8x16x8xf32>
    %32 = tpu.concatenate %7, %10, %13, %16, %19, %22, %25, %28, %31 in 2 : vector<8x16x8xf32>, vector<8x16x8xf32>, vector<8x16x8xf32>, vector<8x16x8xf32>, vector<8x16x8xf32>, vector<8x16x8xf32>, vector<8x16x8xf32>, vector<8x16x8xf32>, vector<8x16x8xf32> -> vector<8x16x72xf32>
    %33 = vector.shape_cast %32 : vector<8x16x72xf32> to vector<128x72xf32>
    %34 = arith.truncf %33 : vector<128x72xf32> to vector<128x72xbf16>
    %c0_23 = arith.constant 0 : index
    %c0_24 = arith.constant 0 : index
    %35 = vector.load %arg5[%c0_23, %c0_24] : memref<72x8xbf16, #tpu.memory_space<vmem>>, vector<72x8xbf16>
    %cst = arith.constant dense<0.000000e+00> : vector<128x8xf32>
    %36 = tpu.matmul %34, %35, %cst {dimension_numbers = #tpu.dot_dimension_numbers<[1], [0], [0], [1], [0, 0, 1, 1], [], []>} : vector<128x72xbf16>, vector<72x8xbf16>, vector<128x8xf32> -> vector<128x8xf32>
    %37 = vector.shape_cast %36 : vector<128x8xf32> to vector<1x8x16x8xf32>
    %c0_25 = arith.constant 0 : index
    %c0_26 = arith.constant 0 : index
    %c0_27 = arith.constant 0 : index
    %c0_28 = arith.constant 0 : index
    %38 = vector.load %arg6[%c0_25, %c0_26, %c0_27, %c0_28] : memref<1x8x16x8xf32, #tpu.memory_space<vmem>>, vector<1x8x16x8xf32>
    tpu.vector_store %arg6[%c0_25, %c0_26, %c0_27, %c0_28], %37 {strides = array<i32>} : memref<1x8x16x8xf32, #tpu.memory_space<vmem>>, vector<1x8x16x8xf32>,
    %cst_29 = arith.constant dense<0.000000e+00> : vector<8xf32>
    %39 = vector.multi_reduction <add>, %36, %cst_29 [0] : vector<128x8xf32> to vector<8xf32>
    %40 = vector.shape_cast %39 : vector<8xf32> to vector<1x8xf32>
    %41 = arith.mulf %36, %36 : vector<128x8xf32>
    %cst_30 = arith.constant dense<0.000000e+00> : vector<8xf32>
    %42 = vector.multi_reduction <add>, %41, %cst_30 [0] : vector<128x8xf32> to vector<8xf32>
    %43 = vector.shape_cast %42 : vector<8xf32> to vector<1x8xf32>
    %44 = tpu.concatenate %40, %43 in 0 : vector<1x8xf32>, vector<1x8xf32> -> vector<2x8xf32>
    %45 = vector.shape_cast %44 : vector<2x8xf32> to vector<1x1x2x8xf32>
    %c0_31 = arith.constant 0 : index
    %c0_32 = arith.constant 0 : index
    %c0_33 = arith.constant 0 : index
    %c0_34 = arith.constant 0 : index
    %46 = vector.load %arg7[%c0_31, %c0_32, %c0_33, %c0_34] : memref<1x1x2x8xf32, #tpu.memory_space<vmem>>, vector<1x1x2x8xf32>
    tpu.vector_store %arg7[%c0_31, %c0_32, %c0_33, %c0_34], %45 {strides = array<i32>} : memref<1x1x2x8xf32, #tpu.memory_space<vmem>>, vector<1x1x2x8xf32>,
    return
  }
  func.func @transform_0(%arg0: i32, %arg1: i32) -> (i32, i32, i32, i32) {
    %c0_i32 = arith.constant 0 : i32
    %c0_i32_0 = arith.constant 0 : i32
    %c0_i32_1 = arith.constant 0 : i32
    %c0_i32_2 = arith.constant 0 : i32
    return %arg0, %c0_i32, %c0_i32_0, %c0_i32_1 : i32, i32, i32, i32
  }
  func.func @transform_1(%arg0: i32, %arg1: i32) -> (i32, i32) {
    %c0_i32 = arith.constant 0 : i32
    %c0_i32_0 = arith.constant 0 : i32
    %c0_i32_1 = arith.constant 0 : i32
    return %c0_i32, %c0_i32_0 : i32, i32
  }
  func.func @transform_2(%arg0: i32, %arg1: i32) -> (i32, i32) {
    %c0_i32 = arith.constant 0 : i32
    %c0_i32_0 = arith.constant 0 : i32
    %c0_i32_1 = arith.constant 0 : i32
    return %c0_i32, %c0_i32_0 : i32, i32
  }
  func.func @transform_3(%arg0: i32, %arg1: i32) -> (i32, i32) {
    %c0_i32 = arith.constant 0 : i32
    %c0_i32_0 = arith.constant 0 : i32
    %c0_i32_1 = arith.constant 0 : i32
    return %c0_i32, %c0_i32_0 : i32, i32
  }
  func.func @transform_4(%arg0: i32, %arg1: i32) -> (i32, i32, i32, i32) {
    %c0_i32 = arith.constant 0 : i32
    %c0_i32_0 = arith.constant 0 : i32
    %c0_i32_1 = arith.constant 0 : i32
    return %arg0, %arg1, %c0_i32, %c0_i32_0 : i32, i32, i32, i32
  }
  func.func @transform_5(%arg0: i32, %arg1: i32) -> (i32, i32, i32, i32) {
    %c0_i32 = arith.constant 0 : i32
    %c0_i32_0 = arith.constant 0 : i32
    %c0_i32_1 = arith.constant 0 : i32
    return %arg0, %arg1, %c0_i32, %c0_i32_0 : i32, i32, i32, i32
  }
}

</mosaic_0001>

<bundles_post_ra>
// kernel: double_conv_forward.5
= control target key start
LH: loop header
LB: loop body
LE: loop exit
PB: predicated region body
PF: predicated region fallthrough
CT: control target
= control target key end

     0   :  { %s1122_s21 = smov 0   ;;  %s1124_s22 = smov 0   ;;  %s1374_s0 = inlined_call_operand.vmem [shape: f32[2,16,16,8], index: 0, kind: input, shape index: {}]   ;;  %s1375_s1 = inlined_call_operand.vmem [shape: f32[2,16,16,8], index: 1, kind: input, shape index: {}]   ;;  %s1376_s2 = inlined_call_operand.vmem [shape: f32[1,8], index: 2, kind: input, shape index: {}]   ;;  %s1377_s3 = inlined_call_operand.vmem [shape: f32[1,8], index: 3, kind: input, shape index: {}]   ;;  %s1378_s4 = inlined_call_operand.vmem [shape: f32[1,8], index: 4, kind: input, shape index: {}]   ;;  %s1379_s5 = inlined_call_operand.vmem [shape: f32[1,8], index: 5, kind: input, shape index: {}]   ;;  %s1380_s6 = inlined_call_operand.vmem [shape: f32[32,128], index: 6, kind: output, shape index: {}]  }
   0x1   :  { %s1126_s23 = smov 0   ;;  %s1128_s24 = smov 0  }
   0x2   :  { %s1130_s25 = smov 0  }
   0x3 LB: > { %s25_s26 = sadd.s32 1, %s1060_s23  ;;  %s28_s27 = sadd.s32 1, %s1064_s24  ;;  %s1068_s25 = sphi %s1130_s25, %s16_s25   ;;  %s1064_s24 = sphi %s1128_s24, %s1384_s24   ;;  %s1060_s23 = sphi %s1126_s23, %s1383_s23   ;;  %s1056_s22 = sphi %s1124_s22, %s1382_s22   ;;  %s1052_s21 = sphi %s1122_s21, %s1381_s21  }
   0x4   : > { %p26_p0 = scmp.ge.s32.totalorder %s25_s26, 2  ;;  %p956_p1 = scmp.ge.s32.totalorder %s1068_s25, 1 }
   0x5   : > { %p254_p2 = scmp.lt.s32.totalorder %s1068_s25, 5 }
   0x6   : > { %s1386_s26 = smov (%p26_p0, %s25_s26), 0  ;;  %s1388_s27 = smov (!%p26_p0, %s28_s27), %s1064_s24 }
   0x7   : > { %p255_p3 = pnand %p956_p1, %p254_p2  ;;  %p30_p4 = scmp.ge.s32.totalorder %s1388_s27, 2 }
   0x8   : > { %s957_s28 = sshll.u32 (!%p255_p3), %s1052_s21, 3  ;;  %p301_p5 = scmp.lt.s32.totalorder (!%p255_p3), %s1056_s22, 1 }
   0x9   : > { %s1390_s27 = smov (%p30_p4, %s1388_s27), 0  ;;  %258 = sbr.rel (%p255_p3) target bundleno = 198 (0xc6), region = 44 }
   0xa   : > { %p303_p6 = scmp.lt.s32.totalorder (!%p255_p3), %s957_s28, 15  ;;  %s1075_s10 = smov (!%p255_p3), 32  }
   0xb   : > { %s1076_s11 = smov (!%p255_p3), 40   ;;  %s1077_s12 = smov (!%p255_p3), 48  }
   0xc   : > { %s1078_s13 = smov (!%p255_p3), 56   ;;  %s1080_s15 = smov (!%p255_p3), 72  }
   0xd   : > { %s1081_s16 = smov (!%p255_p3), 80   ;;  %s1083_s18 = smov (!%p255_p3), 96  }
   0xe   : > { %s302_s29 = scalar_select %p301_p5, %s1056_s22, 1  ;;  %v491_v0 = vlaneseq  ;;  %v1070_v1 = vmov 1983009808   ;;  %v1071_v3 = vmov 1934713408   ;;  %vm818_vm0 = vcmask 64512  }
   0xf   : > { %s1392_s28 = smov (!%p303_p6, %s957_s28), 15  ;;  %v489_v2 = vunpack.c.l.s4 %v1070_v1  ;;  %v553_v4 = vunpack.c.l.s4 %v1071_v3  ;;  %v1162_v7 = vld [vmem:[%s1376_s2] ss:$0 sm:$0xff]  ;;  %s1084_s19 = smov 104   ;;  %vm820_vm1 = vcmask 130048   ;;  %vm822_vm2 = vcmask 195584  }
  0x10   : > { %s959_s30 = sshll.u32 %s302_s29, 5  ;;  %s958_s7 = sshll.u32 %s1392_s28, 1  ;;  %v492_v6 = vshrl.u32 %v491_v0, 7  ;;  %v1177_v9 = vld [vmem:[%s1377_s3] ss:$0 sm:$0xff]  ;;  %vm824_vm3 = vcmask 261120  }
  0x11   : > { %s307_s8 = sadd.s32 %s959_s30, %s958_s7  ;;  %v490_v5 = vunpack.c.0.s8 %v489_v2  ;;  %v554_v8 = vunpack.c.0.s8 %v553_v4  ;;  %v1182_v10 = vld [vmem:[%s1378_s4] ss:$0 sm:$0xff]  ;;  %s1072_s7 = smov 8   ;;  %vm826_vm4 = vcmask 326656   ;;  %vm828_vm5 = vcmask 392192  }
  0x12   : > { %s960_s9 = sshll.u32 %s307_s8, 3  ;;  %v1198_v21 = vld [vmem:[%s1379_s5] ss:$0 sm:$0xff]  ;;  %s1073_s8 = smov 24   ;;  %vm830_vm6 = vcmask 457728   ;;  %vm832_vm7 = vcmask 523264  }
  0x13   : > { %s1167_s14 = scalar_lea.vmem %s1374_s0, %s960_s9  ;;  %s1172_s17 = scalar_lea.vmem %s1375_s1, %s960_s9  ;;  %v1193_v20 = vsub.s32 %v490_v5, %v492_v6  ;;  %v1206_v28 = vsub.s32 %v554_v8, %v492_v6  ;;  %vm834_vm8 = vcmask 588800   ;;  %vm836_vm9 = vcmask 654336  }
  0x14   : > { %v334_v11 = vld [vmem:[%s1167_s14] sm:$0xff]  ;;  %v336_v12 = vld [vmem:[%s1167_s14 + $0x10] sm:$0xff]  ;;  %v335_v4 = vld [vmem:[%s1167_s14 + $0x8] sm:$0xff]  ;;  %s1074_s9 = smov 16   ;;  %s1085_s20 = smov 112   ;;  %vm838_vm10 = vcmask 719872  }
  0x15   : > { %v338_v13 = vld [vmem:[%s1167_s14 + $0x20] sm:$0xff]  ;;  %v340_v14 = vld [vmem:[%s1167_s14 + $0x30] sm:$0xff]  ;;  %v356_v17 = vmul.f32 %v1162_v7, %v334_v11  ;;  %v358_v18 = vmul.f32 %v1162_v7, %v336_v12  ;;  %v337_v5 = vld [vmem:[%s1167_s14 + $0x18] sm:$0xff]  ;;  %s1086_s28 = smov 120   ;;  %s965_s29 = sshll.u32 %s1056_s22, 1  ;;  %vm840_vm11 = vcmask 785408  }
  0x16   : > { %v342_v15 = vld [vmem:[%s1167_s14 + $0x40] sm:$0xff]  ;;  %v344_v16 = vld [vmem:[%s1167_s14 + $0x50] sm:$0xff]  ;;  %v360_v19 = vmul.f32 %v1162_v7, %v338_v13  ;;  %v362_v24 = vmul.f32 %v1162_v7, %v340_v14  ;;  %s323_s30 = sadd.s32 %s1052_s21, %s965_s29  ;;  %vm842_vm12 = vcmask 850944   ;;  %vm844_vm13 = vcmask 916480  }
  0x17   : > { %v346_v22 = vld [vmem:[%s1167_s14 + $0x60] sm:$0xff]  ;;  %v348_v23 = vld [vmem:[%s1167_s14 + $0x70] sm:$0xff]  ;;  %v364_v25 = vmul.f32 %v1162_v7, %v342_v15  ;;  %v366_v26 = vmul.f32 %v1162_v7, %v344_v16  ;;  %v378_v31 = vadd.f32 %v1177_v9, %v356_v17  ;;  %v380_v32 = vadd.f32 %v1177_v9, %v358_v18  ;;  %p324_p7 = scmp.lt.s32.totalorder %s323_s30, 3 }
  0x18   : > { %v394_v27 = vld [vmem:[%s1172_s17] sm:$0xff]  ;;  %v368_v29 = vmul.f32 %v1162_v7, %v346_v22  ;;  %v370_v30 = vmul.f32 %v1162_v7, %v348_v23  ;;  %v396_v33 = vld [vmem:[%s1172_s17 + $0x10] sm:$0xff]  ;;  %v382_v36 = vadd.f32 %v1177_v9, %v360_v19  ;;  %v384_v37 = vadd.f32 %v1177_v9, %v362_v24 }
  0x19   : > { %v398_v34 = vld [vmem:[%s1172_s17 + $0x20] sm:$0xff]  ;;  %v400_v35 = vld [vmem:[%s1172_s17 + $0x30] sm:$0xff]  ;;  %v386_v38 = vadd.f32 %v1177_v9, %v364_v25  ;;  %v388_v39 = vadd.f32 %v1177_v9, %v366_v26  ;;  %v416_v46 = vmul.f32 %v1182_v10, %v394_v27  ;;  %v418_v47 = vmul.f32 %v1182_v10, %v396_v33  ;;  %s1394_s30 = smov (!%p324_p7, %s323_s30), 3 }
  0x1a   : > { %v402_v40 = vld [vmem:[%s1172_s17 + $0x40] sm:$0xff]  ;;  %v404_v41 = vld [vmem:[%s1172_s17 + $0x50] sm:$0xff]  ;;  %v390_v43 = vadd.f32 %v1177_v9, %v368_v29  ;;  %v392_v44 = vadd.f32 %v1177_v9, %v370_v30  ;;  %v420_v48 = vmul.f32 %v1182_v10, %v398_v34  ;;  %v422_v49 = vmul.f32 %v1182_v10, %v400_v35  ;;  %s966_s22 = sshll.u32 %s1394_s30, 3 }
  0x1b   : > { %v406_v42 = vld [vmem:[%s1172_s17 + $0x60] sm:$0xff]  ;;  %v408_v45 = vld [vmem:[%s1172_s17 + $0x70] sm:$0xff]  ;;  %v424_v50 = vmul.f32 %v1182_v10, %v402_v40  ;;  %v426_v51 = vmul.f32 %v1182_v10, %v404_v41  ;;  %v438_v54 = vadd.f32 %v1198_v21, %v416_v46  ;;  %v440_v55 = vadd.f32 %v1198_v21, %v418_v47 }
  0x1c   : > { %v428_v52 = vmul.f32 %v1182_v10, %v406_v42  ;;  %v430_v53 = vmul.f32 %v1182_v10, %v408_v45  ;;  %v442_v56 = vadd.f32 %v1198_v21, %v420_v48  ;;  %v444_v57 = vadd.f32 %v1198_v21, %v422_v49  ;;  %v341_v49 = vld [vmem:[%s1167_s14 + $0x38] sm:$0xff] }
  0x1d   : > { %v446_v58 = vadd.f32 %v1198_v21, %v424_v50  ;;  %v448_v59 = vadd.f32 %v1198_v21, %v426_v51  ;;  %v454_v62 = vadd.f32 %v438_v54, %v378_v31  ;;  %v456_v63 = vadd.f32 %v440_v55, %v380_v32  ;;  %v343_v50 = vld [vmem:[%s1167_s14 + $0x48] sm:$0xff]  ;;  %v345_v51 = vld [vmem:[%s1167_s14 + $0x58] sm:$0xff] }
  0x1e   : > { %v450_v60 = vadd.f32 %v1198_v21, %v428_v52  ;;  %v452_v61 = vadd.f32 %v1198_v21, %v430_v53  ;;  %v458_v0 = vadd.f32 %v442_v56, %v382_v36  ;;  %v460_v1 = vadd.f32 %v444_v57, %v384_v37 }
  0x1f   : > { %v462_v2 = vadd.f32 %v446_v58, %v386_v38  ;;  %v464_v3 = vadd.f32 %v448_v59, %v388_v39  ;;  %v470_v11 = vmax.f32 %v454_v62, 0.0  ;;  %v472_v12 = vmax.f32 %v456_v63, 0.0 }
  0x20   : > { %v466_v6 = vadd.f32 %v450_v60, %v390_v43  ;;  %v468_v8 = vadd.f32 %v452_v61, %v392_v44  ;;  %v474_v13 = vmax.f32 %v458_v0, 0.0  ;;  %v476_v14 = vmax.f32 %v460_v1, 0.0  ;;  %v339_v44 = vld [vmem:[%s1167_s14 + $0x28] sm:$0xff]  ;;  %v349_v61 = vld [vmem:[%s1167_s14 + $0x78] sm:$0xff] }
  0x21   : > { %v478_v15 = vmax.f32 %v462_v2, 0.0  ;;  %v480_v16 = vmax.f32 %v464_v3, 0.0  ;;  %v357_v19 = vmul.f32 %v1162_v7, %v335_v4  ;;  %v1245_v22 = vmul.f32 %v1162_v7, %v337_v5  ;;  %v347_v60 = vld [vmem:[%s1167_s14 + $0x68] sm:$0xff]  ;;  %s1079_s14 = smov 64  }
  0x22   : > { %v482_v17 = vmax.f32 %v466_v6, 0.0  ;;  %v484_v18 = vmax.f32 %v468_v8, 0.0  ;;  %v486_v23 = vcombine.low %v470_v11, %v474_v13  ;;  %v502_v24 = vcombine.low %v472_v12, %v476_v14 }
  0x23   : > { %v487_v25 = vcombine.high %v470_v11, %v474_v13  ;;  %v503_v26 = vcombine.high %v472_v12, %v476_v14  ;;  %v361_v62 = vmul.f32 %v1162_v7, %v339_v44  ;;  %v363_v63 = vmul.f32 %v1162_v7, %v341_v49  ;;  %v395_v13 = vld [vmem:[%s1172_s17 + $0x8] sm:$0xff]  ;;  %v397_v14 = vld [vmem:[%s1172_s17 + $0x18] sm:$0xff] }
  0x24   : > { %v518_v27 = vcombine.low %v478_v15, %v482_v17  ;;  %v534_v29 = vcombine.low %v480_v16, %v484_v18  ;;  %v519_v30 = vcombine.high %v478_v15, %v482_v17  ;;  %v535_v31 = vcombine.high %v480_v16, %v484_v18  ;;  %v399_v15 = vld [vmem:[%s1172_s17 + $0x28] sm:$0xff] }
  0x25   : > { %v494_v32 = vrot.slane %v486_v23, %v1193_v20  ;;  %v510_v33 = vrot.slane %v502_v24, %v1193_v20  ;;  %v501_v34 = vrot.slane %v487_v25, %v1193_v20  ;;  %v517_v35 = vrot.slane %v503_v26, %v1193_v20  ;;  %v401_v23 = vld [vmem:[%s1172_s17 + $0x38] sm:$0xff]  ;;  %v403_v24 = vld [vmem:[%s1172_s17 + $0x48] sm:$0xff] }
  0x26   : > { %v526_v36 = vrot.slane %v518_v27, %v1193_v20  ;;  %v542_v37 = vrot.slane %v534_v29, %v1193_v20  ;;  %v533_v38 = vrot.slane %v519_v30, %v1193_v20  ;;  %v549_v39 = vrot.slane %v535_v31, %v1193_v20  ;;  %v405_v30 = vld [vmem:[%s1172_s17 + $0x58] sm:$0xff]  ;;  %v407_v31 = vld [vmem:[%s1172_s17 + $0x68] sm:$0xff] }
  0x27   : > { %v550_v40 = vcombine.low %v494_v32, %v510_v33  ;;  %v551_v41 = vcombine.high %v494_v32, %v510_v33  ;;  %v566_v42 = vcombine.low %v501_v34, %v517_v35  ;;  %v567_v43 = vcombine.high %v501_v34, %v517_v35  ;;  %v409_v32 = vld [vmem:[%s1172_s17 + $0x78] sm:$0xff]  ;;  %s1082_s17 = smov 88  }
  0x28   : > { %v582_v45 = vcombine.low %v526_v36, %v542_v37  ;;  %v583_v46 = vcombine.high %v526_v36, %v542_v37  ;;  %v598_v47 = vcombine.low %v533_v38, %v549_v39  ;;  %v599_v48 = vcombine.high %v533_v38, %v549_v39 }
  0x29   : > { %v1260_v52 = vrot.slane %v550_v40, %v1206_v28  ;;  %v565_v53 = vrot.slane %v551_v41, %v1206_v28  ;;  %v1264_v54 = vrot.slane %v566_v42, %v1206_v28  ;;  %v1267_v55 = vrot.slane %v567_v43, %v1206_v28 }
  0x2a   : > { %v1270_v56 = vrot.slane %v582_v45, %v1206_v28  ;;  %v597_v57 = vrot.slane %v583_v46, %v1206_v28  ;;  %v1274_v58 = vrot.slane %v598_v47, %v1206_v28  ;;  %v1277_v59 = vrot.slane %v599_v48, %v1206_v28 }
  0x2b   : > { %v365_v0 = vmul.f32 %v1162_v7, %v343_v50  ;;  %v367_v1 = vmul.f32 %v1162_v7, %v345_v51  ;;  %v369_v16 = vmul.f32 %v1162_v7, %v347_v60  ;;  %v371_v17 = vmul.f32 %v1162_v7, %v349_v61 }
  0x2c   : > { %v615_v2 = vcombine.high %v1260_v52, %v1270_v56  ;;  %v614_v3 = vcombine.low %v1260_v52, %v1270_v56  ;;  %v617_v4 = vcombine.high %v565_v53, %v597_v57  ;;  %v616_v5 = vcombine.low %v565_v53, %v597_v57 }
  0x2d   : > { %v618_v6 = vcombine.low %v1264_v54, %v1274_v58  ;;  %v619_v8 = vcombine.high %v1264_v54, %v1274_v58  ;;  %v620_v11 = vcombine.low %v1267_v55, %v1277_v59  ;;  %v621_v12 = vcombine.high %v1267_v55, %v1277_v59 }
  0x2e   : > { %759 = vrot.lane.b32.xlu0 %v615_v2, %s1072_s7  ;;  %767 = vrot.lane.b32.xlu1 %v617_v4, %s1073_s8  ;;  %v379_v18 = vadd.f32 %v1177_v9, %v357_v19  ;;  %v381_v25 = vadd.f32 %v1177_v9, %v1245_v22  ;;  %v383_v26 = vadd.f32 %v1177_v9, %v361_v62  ;;  %vm846_vm14 = vcmask 982016   ;;  %s327_s8 = scalar_lea.vmem %s1380_s6, %s966_s22 }
  0x2f   : > { %v385_v27 = vadd.f32 %v1177_v9, %v363_v63  ;;  %v387_v29 = vadd.f32 %v1177_v9, %v365_v0  ;;  %v389_v33 = vadd.f32 %v1177_v9, %v367_v1  ;;  %v391_v7 = vadd.f32 %v1177_v9, %v369_v16 }
  0x30   : > { %v393_v19 = vadd.f32 %v1177_v9, %v371_v17  ;;  %v417_v34 = vmul.f32 %v1182_v10, %v395_v13  ;;  %v419_v35 = vmul.f32 %v1182_v10, %v397_v14  ;;  %v421_v22 = vmul.f32 %v1182_v10, %v399_v15 }
  0x31   : > { %v423_v36 = vmul.f32 %v1182_v10, %v401_v23  ;;  %v425_v37 = vmul.f32 %v1182_v10, %v403_v24  ;;  %v427_v38 = vmul.f32 %v1182_v10, %v405_v30  ;;  %v429_v39 = vmul.f32 %v1182_v10, %v407_v31 }
  0x32   : > { %763 = vrot.lane.b32.xlu0 %v616_v5, %s1074_s9  ;;  %771 = vrot.lane.b32.xlu1 %v618_v6, %s1075_s10  ;;  %v431_v9 = vmul.f32 %v1182_v10, %v409_v32  ;;  %v439_v40 = vadd.f32 %v1198_v21, %v417_v34  ;;  %v441_v41 = vadd.f32 %v1198_v21, %v419_v35 }
  0x33   : > { %v443_v42 = vadd.f32 %v1198_v21, %v421_v22  ;;  %v445_v43 = vadd.f32 %v1198_v21, %v423_v36  ;;  %v447_v44 = vadd.f32 %v1198_v21, %v425_v37  ;;  %v449_v45 = vadd.f32 %v1198_v21, %v427_v38 }
  0x34   : > { %v451_v46 = vadd.f32 %v1198_v21, %v429_v39  ;;  %v453_v47 = vadd.f32 %v1198_v21, %v431_v9  ;;  %v455_v48 = vadd.f32 %v439_v40, %v379_v18  ;;  %v457_v49 = vadd.f32 %v441_v41, %v381_v25 }
  0x35   : > { %v459_v50 = vadd.f32 %v443_v42, %v383_v26  ;;  %v461_v10 = vadd.f32 %v445_v43, %v385_v27  ;;  %v463_v51 = vadd.f32 %v447_v44, %v387_v29  ;;  %v465_v53 = vadd.f32 %v449_v45, %v389_v33 }
  0x36   : > { %775 = vrot.lane.b32.xlu0 %v619_v8, %s1076_s11  ;;  %779 = vrot.lane.b32.xlu1 %v620_v11, %s1077_s12  ;;  %v467_v54 = vadd.f32 %v451_v46, %v391_v7  ;;  %v469_v57 = vadd.f32 %v453_v47, %v393_v19  ;;  %v471_v58 = vmax.f32 %v455_v48, 0.0  ;;  %v473_v60 = vmax.f32 %v457_v49, 0.0 }
  0x37   : > { %v475_v61 = vmax.f32 %v459_v50, 0.0  ;;  %v477_v62 = vmax.f32 %v461_v10, 0.0  ;;  %v479_v63 = vmax.f32 %v463_v51, 0.0  ;;  %v481_v0 = vmax.f32 %v465_v53, 0.0 }
  0x38   : > { %v483_v1 = vmax.f32 %v467_v54, 0.0  ;;  %v485_v21 = vmax.f32 %v469_v57, 0.0 }
  0x39   : > { %v622_v2 = vcombine.low %v471_v58, %v475_v61  ;;  %v623_v4 = vcombine.high %v471_v58, %v475_v61  ;;  %v638_v5 = vcombine.low %v473_v60, %v477_v62  ;;  %v639_v8 = vcombine.high %v473_v60, %v477_v62 }
  0x3a   : > { %783 = vrot.lane.b32.xlu0 %v621_v12, %s1078_s13  ;;  %v654_v6 = vcombine.low %v479_v63, %v483_v1  ;;  %v655_v11 = vcombine.high %v479_v63, %v483_v1  ;;  %v670_v14 = vcombine.low %v481_v0, %v485_v21  ;;  %v671_v15 = vcombine.high %v481_v0, %v485_v21 }
  0x3b   : > { %v630_v13 = vrot.slane %v622_v2, %v1193_v20  ;;  %v646_v16 = vrot.slane %v638_v5, %v1193_v20  ;;  %v637_v18 = vrot.slane %v623_v4, %v1193_v20  ;;  %v653_v23 = vrot.slane %v639_v8, %v1193_v20 }
  0x3c   : > { %v662_v17 = vrot.slane %v654_v6, %v1193_v20  ;;  %v678_v24 = vrot.slane %v670_v14, %v1193_v20  ;;  %v669_v55 = vrot.slane %v655_v11, %v1193_v20  ;;  %v685_v59 = vrot.slane %v671_v15, %v1193_v20 }
  0x3d   : > { %v686_v12 = vcombine.low %v630_v13, %v646_v16  ;;  %v687_v25 = vcombine.high %v630_v13, %v646_v16  ;;  %v702_v30 = vcombine.low %v637_v18, %v653_v23  ;;  %v703_v22 = vcombine.high %v637_v18, %v653_v23 }
  0x3e   : > { %v718_v26 = vcombine.low %v662_v17, %v678_v24  ;;  %v719_v27 = vcombine.high %v662_v17, %v678_v24  ;;  %v734_v7 = vcombine.low %v669_v55, %v685_v59  ;;  %v735_v20 = vcombine.high %v669_v55, %v685_v59 }
  0x3f   : > { %v694_v29 = vrot.slane %v686_v12, %v1206_v28  ;;  %v701_v32 = vrot.slane %v687_v25, %v1206_v28  ;;  %v710_v35 = vrot.slane %v702_v30, %v1206_v28  ;;  %v717_v39 = vrot.slane %v703_v22, %v1206_v28 }
  0x40   : > { %v726_v31 = vrot.slane %v718_v26, %v1206_v28  ;;  %v733_v33 = vrot.slane %v719_v27, %v1206_v28  ;;  %v742_v38 = vrot.slane %v734_v7, %v1206_v28  ;;  %v749_v41 = vrot.slane %v735_v20, %v1206_v28 }
  0x42   : > { %v750_v19 = vcombine.low %v694_v29, %v726_v31  ;;  %v751_v34 = vcombine.high %v694_v29, %v726_v31  ;;  %v752_v36 = vcombine.low %v701_v32, %v733_v33  ;;  %v753_v37 = vcombine.high %v701_v32, %v733_v33 }
  0x43   : > { %v754_v9 = vcombine.low %v710_v35, %v742_v38  ;;  %v755_v40 = vcombine.high %v710_v35, %v742_v38  ;;  %v756_v42 = vcombine.low %v717_v39, %v749_v41  ;;  %v757_v43 = vcombine.high %v717_v39, %v749_v41 }
  0x44   : > { %787 = vrot.lane.b32.xlu1 %v750_v19, %s1079_s14  ;;  %791 = vrot.lane.b32.xlu0 %v751_v34, %s1080_s15 }
  0x48   : > { %795 = vrot.lane.b32.xlu1 %v752_v36, %s1081_s16  ;;  %799 = vrot.lane.b32.xlu0 %v753_v37, %s1082_s17 }
  0x4c   : > { %803 = vrot.lane.b32.xlu1 %v754_v9, %s1083_s18  ;;  %807 = vrot.lane.b32.xlu0 %v755_v40, %s1084_s19 }
  0x50   : > { %811 = vrot.lane.b32.xlu1 %v756_v42, %s1085_s20  ;;  %815 = vrot.lane.b32.xlu0 %v757_v43, %s1086_s28 }
  0xa0   : > { %v760_v44 = vpop.permute.xlu0 %759  ;;  %v768_v45 = vpop.permute.xlu1 %767 }
  0xa1   : > { %v819_v28 = vsel %vm818_vm0, %v614_v3, %v760_v44 }
  0xa4   : > { %v764_v46 = vpop.permute.xlu0 %763  ;;  %v772_v48 = vpop.permute.xlu1 %771 }
  0xa5   : > { %v821_v47 = vsel %vm820_vm1, %v819_v28, %v764_v46 }
  0xa6   : > { %v823_v49 = vsel %vm822_vm2, %v821_v47, %v768_v45 }
  0xa7   : > { %v825_v10 = vsel %vm824_vm3, %v823_v49, %v772_v48 }
  0xa8   : > { %v776_v50 = vpop.permute.xlu0 %775  ;;  %v780_v53 = vpop.permute.xlu1 %779 }
  0xa9   : > { %v827_v51 = vsel %vm826_vm4, %v825_v10, %v776_v50 }
  0xaa   : > { %v829_v57 = vsel %vm828_vm5, %v827_v51, %v780_v53 }
  0xac   : > { %v784_v54 = vpop.permute.xlu0 %783 }
  0xad   : > { %v831_v58 = vsel %vm830_vm6, %v829_v57, %v784_v54 }
  0xb6   : > { %v788_v52 = vpop.permute.xlu1 %787  ;;  %v792_v56 = vpop.permute.xlu0 %791 }
  0xb7   : > { %v833_v3 = vsel %vm832_vm7, %v831_v58, %v788_v52 }
  0xb8   : > { %v835_v60 = vsel %vm834_vm8, %v833_v3, %v792_v56 }
  0xba   : > { %v796_v61 = vpop.permute.xlu1 %795  ;;  %v800_v62 = vpop.permute.xlu0 %799 }
  0xbb   : > { %v837_v63 = vsel %vm836_vm9, %v835_v60, %v796_v61 }
  0xbc   : > { %v839_v0 = vsel %vm838_vm10, %v837_v63, %v800_v62 }
  0xbe   : > { %v804_v1 = vpop.permute.xlu1 %803  ;;  %v808_v21 = vpop.permute.xlu0 %807 }
  0xbf   : > { %v841_v2 = vsel %vm840_vm11, %v839_v0, %v804_v1 }
  0xc0   : > { %v843_v4 = vsel %vm842_vm12, %v841_v2, %v808_v21 }
  0xc2   : > { %v812_v5 = vpop.permute.xlu1 %811  ;;  %v816_v6 = vpop.permute.xlu0 %815 }
  0xc3   : > { %v845_v8 = vsel %vm844_vm13, %v843_v4, %v812_v5 }
  0xc4   : > { %v847_v11 = vsel %vm846_vm14, %v845_v8, %v816_v6 }
  0xc5   : > { %848 = vst [vmem:[%s327_s8] sm:$0xff] %v847_v11 }
  0xc6 PF: > { %s16_s25 = sadd.s32 1, %s1068_s25   ;;  %s1381_s21 = smov %s1060_s23 }
  0xc7   : > { %p13_p8 = scmp.ge.s32.totalorder %s16_s25, 6   ;;  %s1382_s22 = smov %s1064_s24 }
  0xc8   : > { %s1383_s23 = smov %s1386_s26  ;;  %s1384_s24 = smov %s1390_s27 }
  0xc9   :  { %15 = sbr.rel (!%p13_p8) target bundleno = 3 (0x3), region = 77 }

// kernel: double_conv_forward.4
= control target key start
LH: loop header
LB: loop body
LE: loop exit
PB: predicated region body
PF: predicated region fallthrough
CT: control target
= control target key end

     0   :  { %s2501_s18 = smov 0   ;;  %s2503_s19 = smov 0   ;;  %s3202_s0 = inlined_call_operand.vmem [shape: f32[2,16,16,8], index: 0, kind: input, shape index: {}]   ;;  %s3203_s1 = inlined_call_operand.vmem [shape: f32[1,8], index: 1, kind: input, shape index: {}]   ;;  %s3204_s2 = inlined_call_operand.vmem [shape: f32[1,8], index: 2, kind: input, shape index: {}]   ;;  %s3205_s3 = inlined_call_operand.vmem [shape: bf16[72,8], index: 3, kind: input, shape index: {}]   ;;  %s3206_s4 = inlined_call_operand.vmem [shape: f32[2,16,16,8], index: 4, kind: output, shape index: {0}]   ;;  %s3207_s5 = inlined_call_operand.vmem [shape: f32[2,2,2,8], index: 5, kind: output, shape index: {1}]  }
   0x1   :  { %s2505_s20 = smov 0   ;;  %s2507_s21 = smov 0  }
   0x2   :  { %s2509_s22 = smov 0  }
   0x3 LB: > { %s25_s23 = sadd.s32 1, %s2452_s20  ;;  %s28_s24 = sadd.s32 1, %s2456_s21  ;;  %s2460_s22 = sphi %s2509_s22, %s16_s22   ;;  %s2456_s21 = sphi %s2507_s21, %s3213_s21   ;;  %s2452_s20 = sphi %s2505_s20, %s3212_s20   ;;  %s2448_s19 = sphi %s2503_s19, %s3211_s19   ;;  %s2444_s18 = sphi %s2501_s18, %s3210_s18  }
   0x4   : > { %p26_p0 = scmp.ge.s32.totalorder %s25_s23, 2  ;;  %p1867_p1 = scmp.ge.s32.totalorder %s2460_s22, 1 }
   0x5   : > { %p206_p2 = scmp.lt.s32.totalorder %s2460_s22, 5 }
   0x6   : > { %s3215_s23 = smov (%p26_p0, %s25_s23), 0  ;;  %s3217_s24 = smov (!%p26_p0, %s28_s24), %s2456_s21 }
   0x7   : > { %p207_p3 = pnand %p1867_p1, %p206_p2  ;;  %p30_p4 = scmp.ge.s32.totalorder %s3217_s24, 2 }
   0x8   : > { %p247_p5 = scmp.lt.s32.totalorder (!%p207_p3), %s2448_s19, 1  ;;  %s1870_s25 = sshll.u32 (!%p207_p3), %s2444_s18, 3 }
   0x9   : > { %s3219_s24 = smov (%p30_p4, %s3217_s24), 0  ;;  %210 = sbr.rel (%p207_p3) target bundleno = 555 (0x22b), region = 36 }
   0xa   : > { %3208 = sst [smem:[#allocation3_spill]] %s3219_s24  ;;  %p255_p6 = scmp.lt.s32.totalorder (!%p207_p3), %s1870_s25, 15 }
   0xb   : > { %p265_p7 = scmp.lt.s32.totalorder (!%p207_p3), %s2444_s18, 1  ;;  %p1876_p8 = scmp.ne.s32.totalorder (!%p207_p3), %s2444_s18, 0 }
   0xe   : > { %s3221_s19 = smov (!%p247_p5, %s2448_s19), 1  ;;  %s3223_s25 = smov (!%p255_p6, %s1870_s25), 15 }
   0xf   : > { %s1996_s26 = sshll.u32 %s3221_s19, 8  ;;  %s1872_s27 = sshll.u32 %s3221_s19, 5 }
  0x10   : > { %s2538_s30 = scalar_lea.vmem %s3202_s0, %s1996_s26  ;;  %s1871_s6 = sshll.u32 %s3223_s25, 1 }
  0x11   : > { %s259_s7 = sadd.s32 %s1872_s27, %s1871_s6  ;;  %s1874_s12 = sshll.u32 %s3221_s19, 1 }
  0x12   : > { %s1873_s8 = sshll.u32 %s259_s7, 3 }
  0x13   : > { %s2543_s11 = scalar_lea.vmem %s3206_s4, %s1873_s8 }
  0x14   : > { %s266_s13 = scalar_select %p265_p7, %s2444_s18, 1 }
  0x15   : > { %275 = sbr.rel (%p1876_p8) target bundleno = 78 (0x4e), region = 40 }
  0x16   : > { %s268_s14 = sadd.s32 %s1874_s12, %s266_s13 }
  0x17   : > { %s1875_s15 = sshll.u32 %s268_s14, 1 }
  0x18   : > { %s2549_s24 = scalar_lea.vmem %s3207_s5, %s1875_s15 }
  0x1a   : > { %vm579_vm0 = vcmask 64512   ;;  %vm582_vm1 = vcmask 58368   ;;  %v276_v0 = vld [vmem:[%s2538_s30] sm:$0xff]  ;;  %v2462_v2 = vmov 0.0   ;;  %v277_v5 = vld [vmem:[%s2538_s30 + $0x8] sm:$0xff]  ;;  %v278_v6 = vld [vmem:[%s2538_s30 + $0x10] sm:$0xff] }
  0x1b   : > { %v2556_v1 = vld [vmem:[%s3203_s1] ss:$0 sm:$0xff]  ;;  %580 = vst.msk [vmem:[#allocation2] sm:$0xff] %vm579_vm0, %v2462_v2  ;;  %581 = vst.msk [vmem:[#allocation2 + $0x8] sm:$0xff] %vm579_vm0, %v2462_v2  ;;  %vm450_vm2 = vcmask 1040384   ;;  %v279_v9 = vld [vmem:[%s2538_s30 + $0x18] sm:$0xff] }
  0x1c   : > { %632 = vst.msk [vmem:[#allocation2 + $0x198] sm:$0xff] %vm579_vm0, %v2462_v2  ;;  %633 = vst.msk [vmem:[#allocation2 + $0x1a0] sm:$0xff] %vm579_vm0, %v2462_v2  ;;  %v315_v3 = vmul.f32 %v2556_v1, %v276_v0  ;;  %v2568_v4 = vld [vmem:[%s3204_s2] ss:$0 sm:$0xff]  ;;  %v316_v7 = vmul.f32 %v2556_v1, %v277_v5  ;;  %v317_v8 = vmul.f32 %v2556_v1, %v278_v6  ;;  %v281_v11 = vld [vmem:[%s2538_s30 + $0x28] sm:$0xff] }
  0x1d   : > { %583 = vst.msk [vmem:[#allocation2 + $0x10] sm:$0x3] %vm582_vm1, %v2462_v2  ;;  %634 = vst.msk [vmem:[#allocation2 + $0x1a8] sm:$0x3] %vm582_vm1, %v2462_v2  ;;  %v280_v10 = vld [vmem:[%s2538_s30 + $0x20] sm:$0xff]  ;;  %v318_v13 = vmul.f32 %v2556_v1, %v279_v9  ;;  %v320_v15 = vmul.f32 %v2556_v1, %v281_v11  ;;  %v282_v16 = vld [vmem:[%s2538_s30 + $0x30] sm:$0xff] }
  0x1e   : > { %v354_v12 = vadd.f32 %v2568_v4, %v315_v3  ;;  %v319_v14 = vmul.f32 %v2556_v1, %v280_v10  ;;  %v283_v17 = vld [vmem:[%s2538_s30 + $0x38] sm:$0xff]  ;;  %v355_v18 = vadd.f32 %v2568_v4, %v316_v7  ;;  %v356_v19 = vadd.f32 %v2568_v4, %v317_v8  ;;  %v284_v42 = vld [vmem:[%s2538_s30 + $0x40] sm:$0xff]  ;;  %v285_v43 = vld [vmem:[%s2538_s30 + $0x48] sm:$0xff] }
  0x1f   : > { %v321_v20 = vmul.f32 %v2556_v1, %v282_v16  ;;  %v322_v21 = vmul.f32 %v2556_v1, %v283_v17  ;;  %v357_v23 = vadd.f32 %v2568_v4, %v318_v13  ;;  %v359_v25 = vadd.f32 %v2568_v4, %v320_v15  ;;  %v286_v48 = vld [vmem:[%s2538_s30 + $0x50] sm:$0xff]  ;;  %v287_v49 = vld [vmem:[%s2538_s30 + $0x58] sm:$0xff]  ;;  %v288_v50 = vld [vmem:[%s2538_s30 + $0x60] sm:$0xff] }
  0x20   : > { %v386_v22 = vmax.f32 %v354_v12, 0.0  ;;  %v358_v24 = vadd.f32 %v2568_v4, %v319_v14  ;;  %v387_v26 = vmax.f32 %v355_v18, 0.0  ;;  %v388_v27 = vmax.f32 %v356_v19, 0.0  ;;  %v289_v55 = vld [vmem:[%s2538_s30 + $0x68] sm:$0xff]  ;;  %v290_v0 = vld [vmem:[%s2538_s30 + $0x70] sm:$0xff]  ;;  %v291_v2 = vld [vmem:[%s2538_s30 + $0x78] sm:$0xff] }
  0x21   : > { %v360_v28 = vadd.f32 %v2568_v4, %v321_v20  ;;  %v361_v29 = vadd.f32 %v2568_v4, %v322_v21  ;;  %v389_v31 = vmax.f32 %v357_v23, 0.0  ;;  %v391_v33 = vmax.f32 %v359_v25, 0.0 }
  0x22   : > { %v451_v30 = vrot.slane %v386_v22, 7  ;;  %v390_v32 = vmax.f32 %v358_v24, 0.0  ;;  %v452_v34 = vrot.slane %v387_v26, 7  ;;  %v454_v35 = vrot.slane %v388_v27, 7 }
  0x23   : > { %v392_v36 = vmax.f32 %v360_v28, 0.0  ;;  %v393_v37 = vmax.f32 %v361_v29, 0.0  ;;  %v455_v39 = vrot.slane %v389_v31, 7  ;;  %v458_v41 = vrot.slane %v391_v33, 7  ;;  %v292_v28 = vld [vmem:[%s2538_s30 + $0x80] sm:$0xff]  ;;  %v293_v33 = vld [vmem:[%s2538_s30 + $0x88] sm:$0xff] }
  0x24   : > { %v547_v38 = vsel %vm450_vm2, 0.0, %v451_v30  ;;  %v457_v40 = vrot.slane %v390_v32, 7  ;;  %v453_v44 = vsel %vm450_vm2, %v451_v30, %v452_v34  ;;  %v563_v45 = vsel %vm450_vm2, %v452_v34, 0.0  ;;  %v294_v34 = vld [vmem:[%s2538_s30 + $0x90] sm:$0xff] }
  0x25   : > { %584 = vst.msk [vmem:[#allocation2 + $0x18] sm:$0xff] %vm579_vm0, %v547_v38  ;;  %v548_v46 = vsel %vm450_vm2, 0.0, %v454_v35  ;;  %v460_v47 = vrot.slane %v392_v36, 7  ;;  %585 = vst.msk [vmem:[#allocation2 + $0x20] sm:$0xff] %vm579_vm0, %v453_v44  ;;  %v456_v51 = vsel %vm450_vm2, %v454_v35, %v455_v39  ;;  %v564_v52 = vsel %vm450_vm2, %v455_v39, 0.0  ;;  %v295_v39 = vld [vmem:[%s2538_s30 + $0x98] sm:$0xff] }
  0x26   : > { %586 = vst.msk [vmem:[#allocation2 + $0x28] sm:$0x3] %vm582_vm1, %v563_v45  ;;  %v549_v53 = vsel %vm450_vm2, 0.0, %v457_v40  ;;  %v459_v54 = vsel %vm450_vm2, %v457_v40, %v458_v41  ;;  %589 = vst.msk [vmem:[#allocation2 + $0x40] sm:$0x3] %vm582_vm1, %v564_v52  ;;  %v565_v56 = vsel %vm450_vm2, %v458_v41, 0.0  ;;  %v323_v59 = vmul.f32 %v2556_v1, %v284_v42 }
  0x27   : > { %587 = vst.msk [vmem:[#allocation2 + $0x30] sm:$0xff] %vm579_vm0, %v548_v46  ;;  %588 = vst.msk [vmem:[#allocation2 + $0x38] sm:$0xff] %vm579_vm0, %v456_v51  ;;  %v550_v57 = vsel %vm450_vm2, 0.0, %v460_v47  ;;  %v461_v58 = vrot.slane %v393_v37, 7  ;;  %v324_v60 = vmul.f32 %v2556_v1, %v285_v43  ;;  %v325_v61 = vmul.f32 %v2556_v1, %v286_v48  ;;  %v296_v40 = vld [vmem:[%s2538_s30 + $0xa0] sm:$0xff]  ;;  %v297_v41 = vld [vmem:[%s2538_s30 + $0xa8] sm:$0xff] }
  0x28   : > { %590 = vst.msk [vmem:[#allocation2 + $0x48] sm:$0xff] %vm579_vm0, %v549_v53  ;;  %591 = vst.msk [vmem:[#allocation2 + $0x50] sm:$0xff] %vm579_vm0, %v459_v54  ;;  %v326_v62 = vmul.f32 %v2556_v1, %v287_v49  ;;  %v327_v63 = vmul.f32 %v2556_v1, %v288_v50  ;;  %v362_v6 = vadd.f32 %v2568_v4, %v323_v59  ;;  %v298_v54 = vld [vmem:[%s2538_s30 + $0xb0] sm:$0xff] }
  0x29   : > { %592 = vst.msk [vmem:[#allocation2 + $0x58] sm:$0x3] %vm582_vm1, %v565_v56  ;;  %v462_v3 = vsel %vm450_vm2, %v460_v47, %v461_v58  ;;  %v566_v5 = vsel %vm450_vm2, %v461_v58, 0.0  ;;  %v328_v7 = vmul.f32 %v2556_v1, %v289_v55  ;;  %v363_v8 = vadd.f32 %v2568_v4, %v324_v60  ;;  %v299_v55 = vld [vmem:[%s2538_s30 + $0xb8] sm:$0xff] }
  0x2a   : > { %593 = vst.msk [vmem:[#allocation2 + $0x60] sm:$0xff] %vm579_vm0, %v550_v57  ;;  %594 = vst.msk [vmem:[#allocation2 + $0x68] sm:$0xff] %vm579_vm0, %v462_v3  ;;  %v364_v9 = vadd.f32 %v2568_v4, %v325_v61  ;;  %v365_v10 = vadd.f32 %v2568_v4, %v326_v62  ;;  %v366_v11 = vadd.f32 %v2568_v4, %v327_v63  ;;  %v394_v12 = vmax.f32 %v362_v6, 0.0 }
  0x2b   : > { %595 = vst.msk [vmem:[#allocation2 + $0x70] sm:$0x3] %vm582_vm1, %v566_v5  ;;  %v367_v13 = vadd.f32 %v2568_v4, %v328_v7  ;;  %v329_v14 = vmul.f32 %v2556_v1, %v290_v0  ;;  %v330_v15 = vmul.f32 %v2556_v1, %v291_v2  ;;  %v395_v16 = vmax.f32 %v363_v8, 0.0 }
  0x2c   : > { %v396_v17 = vmax.f32 %v364_v9, 0.0  ;;  %v397_v18 = vmax.f32 %v365_v10, 0.0  ;;  %v398_v19 = vmax.f32 %v366_v11, 0.0  ;;  %v463_v20 = vrot.slane %v394_v12, 7 }
  0x2d   : > { %v399_v21 = vmax.f32 %v367_v13, 0.0  ;;  %v368_v22 = vadd.f32 %v2568_v4, %v329_v14  ;;  %v369_v23 = vadd.f32 %v2568_v4, %v330_v15  ;;  %v464_v24 = vrot.slane %v395_v16, 7 }
  0x2e   : > { %v466_v25 = vrot.slane %v396_v17, 7  ;;  %v467_v26 = vrot.slane %v397_v18, 7  ;;  %v469_v27 = vrot.slane %v398_v19, 7  ;;  %v551_v29 = vsel %vm450_vm2, 0.0, %v463_v20  ;;  %v300_v18 = vld [vmem:[%s2538_s30 + $0xc0] sm:$0xff] }
  0x2f   : > { %v470_v30 = vrot.slane %v399_v21, 7  ;;  %v400_v31 = vmax.f32 %v368_v22, 0.0  ;;  %v401_v32 = vmax.f32 %v369_v23, 0.0  ;;  %596 = vst.msk [vmem:[#allocation2 + $0x78] sm:$0xff] %vm579_vm0, %v551_v29  ;;  %v465_v35 = vsel %vm450_vm2, %v463_v20, %v464_v24  ;;  %v301_v23 = vld [vmem:[%s2538_s30 + $0xc8] sm:$0xff]  ;;  %v303_v29 = vld [vmem:[%s2538_s30 + $0xd8] sm:$0xff] }
  0x30   : > { %v567_v36 = vsel %vm450_vm2, %v464_v24, 0.0  ;;  %v552_v37 = vsel %vm450_vm2, 0.0, %v466_v25  ;;  %v468_v38 = vsel %vm450_vm2, %v466_v25, %v467_v26  ;;  %597 = vst.msk [vmem:[#allocation2 + $0x80] sm:$0xff] %vm579_vm0, %v465_v35  ;;  %v568_v42 = vsel %vm450_vm2, %v467_v26, 0.0  ;;  %v302_v24 = vld [vmem:[%s2538_s30 + $0xd0] sm:$0xff] }
  0x31   : > { %598 = vst.msk [vmem:[#allocation2 + $0x88] sm:$0x3] %vm582_vm1, %v567_v36  ;;  %v553_v43 = vsel %vm450_vm2, 0.0, %v469_v27  ;;  %v471_v44 = vsel %vm450_vm2, %v469_v27, %v470_v30  ;;  %v569_v45 = vsel %vm450_vm2, %v470_v30, 0.0  ;;  %601 = vst.msk [vmem:[#allocation2 + $0xa0] sm:$0x3] %vm582_vm1, %v568_v42  ;;  %v331_v48 = vmul.f32 %v2556_v1, %v292_v28 }
  0x32   : > { %599 = vst.msk [vmem:[#allocation2 + $0x90] sm:$0xff] %vm579_vm0, %v552_v37  ;;  %600 = vst.msk [vmem:[#allocation2 + $0x98] sm:$0xff] %vm579_vm0, %v468_v38  ;;  %v472_v46 = vrot.slane %v400_v31, 7  ;;  %v473_v47 = vrot.slane %v401_v32, 7  ;;  %v332_v49 = vmul.f32 %v2556_v1, %v293_v33  ;;  %v333_v50 = vmul.f32 %v2556_v1, %v294_v34  ;;  %v304_v30 = vld [vmem:[%s2538_s30 + $0xe0] sm:$0xff]  ;;  %v305_v31 = vld [vmem:[%s2538_s30 + $0xe8] sm:$0xff] }
  0x33   : > { %602 = vst.msk [vmem:[#allocation2 + $0xa8] sm:$0xff] %vm579_vm0, %v553_v43  ;;  %603 = vst.msk [vmem:[#allocation2 + $0xb0] sm:$0xff] %vm579_vm0, %v471_v44  ;;  %v334_v51 = vmul.f32 %v2556_v1, %v295_v39  ;;  %v335_v52 = vmul.f32 %v2556_v1, %v296_v40  ;;  %v336_v53 = vmul.f32 %v2556_v1, %v297_v41  ;;  %v306_v44 = vld [vmem:[%s2538_s30 + $0xf0] sm:$0xff] }
  0x34   : > { %604 = vst.msk [vmem:[#allocation2 + $0xb8] sm:$0x3] %vm582_vm1, %v569_v45  ;;  %v554_v56 = vsel %vm450_vm2, 0.0, %v472_v46  ;;  %v474_v57 = vsel %vm450_vm2, %v472_v46, %v473_v47  ;;  %v570_v58 = vsel %vm450_vm2, %v473_v47, 0.0  ;;  %v370_v59 = vadd.f32 %v2568_v4, %v331_v48  ;;  %v307_v45 = vld [vmem:[%s2538_s30 + $0xf8] sm:$0xff] }
  0x35   : > { %605 = vst.msk [vmem:[#allocation2 + $0xc0] sm:$0xff] %vm579_vm0, %v554_v56  ;;  %606 = vst.msk [vmem:[#allocation2 + $0xc8] sm:$0xff] %vm579_vm0, %v474_v57  ;;  %v371_v60 = vadd.f32 %v2568_v4, %v332_v49  ;;  %v372_v61 = vadd.f32 %v2568_v4, %v333_v50  ;;  %v373_v62 = vadd.f32 %v2568_v4, %v334_v51 }
  0x36   : > { %607 = vst.msk [vmem:[#allocation2 + $0xd0] sm:$0x3] %vm582_vm1, %v570_v58  ;;  %v374_v63 = vadd.f32 %v2568_v4, %v335_v52  ;;  %v402_v0 = vmax.f32 %v370_v59, 0.0  ;;  %v375_v2 = vadd.f32 %v2568_v4, %v336_v53  ;;  %v337_v3 = vmul.f32 %v2556_v1, %v298_v54 }
  0x37   : > { %v338_v5 = vmul.f32 %v2556_v1, %v299_v55  ;;  %v403_v6 = vmax.f32 %v371_v60, 0.0  ;;  %v404_v7 = vmax.f32 %v372_v61, 0.0  ;;  %v405_v8 = vmax.f32 %v373_v62, 0.0 }
  0x38   : > { %v406_v9 = vmax.f32 %v374_v63, 0.0  ;;  %v475_v10 = vrot.slane %v402_v0, 7  ;;  %v407_v11 = vmax.f32 %v375_v2, 0.0  ;;  %v376_v12 = vadd.f32 %v2568_v4, %v337_v3 }
  0x39   : > { %v377_v13 = vadd.f32 %v2568_v4, %v338_v5  ;;  %v476_v14 = vrot.slane %v403_v6, 7  ;;  %v478_v15 = vrot.slane %v404_v7, 7  ;;  %v479_v16 = vrot.slane %v405_v8, 7 }
  0x3a   : > { %v481_v17 = vrot.slane %v406_v9, 7  ;;  %v555_v19 = vsel %vm450_vm2, 0.0, %v475_v10  ;;  %v482_v20 = vrot.slane %v407_v11, 7  ;;  %v408_v21 = vmax.f32 %v376_v12, 0.0 }
  0x3b   : > { %v409_v22 = vmax.f32 %v377_v13, 0.0  ;;  %608 = vst.msk [vmem:[#allocation2 + $0xd8] sm:$0xff] %vm579_vm0, %v555_v19  ;;  %v477_v25 = vsel %vm450_vm2, %v475_v10, %v476_v14  ;;  %v571_v26 = vsel %vm450_vm2, %v476_v14, 0.0  ;;  %v556_v27 = vsel %vm450_vm2, 0.0, %v478_v15 }
  0x3c   : > { %v480_v28 = vsel %vm450_vm2, %v478_v15, %v479_v16  ;;  %609 = vst.msk [vmem:[#allocation2 + $0xe0] sm:$0xff] %vm579_vm0, %v477_v25  ;;  %611 = vst.msk [vmem:[#allocation2 + $0xf0] sm:$0xff] %vm579_vm0, %v556_v27  ;;  %v572_v32 = vsel %vm450_vm2, %v479_v16, 0.0  ;;  %v557_v33 = vsel %vm450_vm2, 0.0, %v481_v17  ;;  %v483_v34 = vsel %vm450_vm2, %v481_v17, %v482_v20 }
  0x3d   : > { %610 = vst.msk [vmem:[#allocation2 + $0xe8] sm:$0x3] %vm582_vm1, %v571_v26  ;;  %v573_v35 = vsel %vm450_vm2, %v482_v20, 0.0  ;;  %613 = vst.msk [vmem:[#allocation2 + $0x100] sm:$0x3] %vm582_vm1, %v572_v32  ;;  %v484_v36 = vrot.slane %v408_v21, 7  ;;  %v339_v38 = vmul.f32 %v2556_v1, %v300_v18  ;;  %v340_v39 = vmul.f32 %v2556_v1, %v301_v23 }
  0x3e   : > { %612 = vst.msk [vmem:[#allocation2 + $0xf8] sm:$0xff] %vm579_vm0, %v480_v28  ;;  %614 = vst.msk [vmem:[#allocation2 + $0x108] sm:$0xff] %vm579_vm0, %v557_v33  ;;  %v485_v37 = vrot.slane %v409_v22, 7  ;;  %v341_v40 = vmul.f32 %v2556_v1, %v302_v24  ;;  %v342_v41 = vmul.f32 %v2556_v1, %v303_v29  ;;  %v343_v42 = vmul.f32 %v2556_v1, %v304_v30 }
  0x3f   : > { %615 = vst.msk [vmem:[#allocation2 + $0x110] sm:$0xff] %vm579_vm0, %v483_v34  ;;  %v344_v43 = vmul.f32 %v2556_v1, %v305_v31  ;;  %v558_v46 = vsel %vm450_vm2, 0.0, %v484_v36  ;;  %v378_v49 = vadd.f32 %v2568_v4, %v339_v38  ;;  %v379_v50 = vadd.f32 %v2568_v4, %v340_v39 }
  0x40   : > { %616 = vst.msk [vmem:[#allocation2 + $0x118] sm:$0x3] %vm582_vm1, %v573_v35  ;;  %v486_v47 = vsel %vm450_vm2, %v484_v36, %v485_v37  ;;  %v574_v48 = vsel %vm450_vm2, %v485_v37, 0.0  ;;  %v380_v51 = vadd.f32 %v2568_v4, %v341_v40  ;;  %v381_v52 = vadd.f32 %v2568_v4, %v342_v41 }
  0x41   : > { %617 = vst.msk [vmem:[#allocation2 + $0x120] sm:$0xff] %vm579_vm0, %v558_v46  ;;  %618 = vst.msk [vmem:[#allocation2 + $0x128] sm:$0xff] %vm579_vm0, %v486_v47  ;;  %v382_v53 = vadd.f32 %v2568_v4, %v343_v42  ;;  %v410_v54 = vmax.f32 %v378_v49, 0.0  ;;  %v383_v55 = vadd.f32 %v2568_v4, %v344_v43  ;;  %v345_v56 = vmul.f32 %v2556_v1, %v306_v44 }
  0x42   : > { %619 = vst.msk [vmem:[#allocation2 + $0x130] sm:$0x3] %vm582_vm1, %v574_v48  ;;  %v346_v57 = vmul.f32 %v2556_v1, %v307_v45  ;;  %v411_v58 = vmax.f32 %v379_v50, 0.0  ;;  %v412_v59 = vmax.f32 %v380_v51, 0.0  ;;  %v413_v60 = vmax.f32 %v381_v52, 0.0 }
  0x43   : > { %v414_v61 = vmax.f32 %v382_v53, 0.0  ;;  %v487_v62 = vrot.slane %v410_v54, 7  ;;  %v415_v63 = vmax.f32 %v383_v55, 0.0  ;;  %v384_v0 = vadd.f32 %v2568_v4, %v345_v56 }
  0x44   : > { %v385_v2 = vadd.f32 %v2568_v4, %v346_v57  ;;  %v488_v3 = vrot.slane %v411_v58, 7  ;;  %v490_v5 = vrot.slane %v412_v59, 7  ;;  %v491_v6 = vrot.slane %v413_v60, 7 }
  0x45   : > { %v493_v7 = vrot.slane %v414_v61, 7  ;;  %v559_v8 = vsel %vm450_vm2, 0.0, %v487_v62  ;;  %v494_v9 = vrot.slane %v415_v63, 7  ;;  %v416_v10 = vmax.f32 %v384_v0, 0.0 }
  0x46   : > { %v417_v11 = vmax.f32 %v385_v2, 0.0  ;;  %620 = vst.msk [vmem:[#allocation2 + $0x138] sm:$0xff] %vm579_vm0, %v559_v8  ;;  %v489_v1 = vsel %vm450_vm2, %v487_v62, %v488_v3  ;;  %v575_v12 = vsel %vm450_vm2, %v488_v3, 0.0  ;;  %v560_v13 = vsel %vm450_vm2, 0.0, %v490_v5 }
  0x47   : > { %v492_v14 = vsel %vm450_vm2, %v490_v5, %v491_v6  ;;  %621 = vst.msk [vmem:[#allocation2 + $0x140] sm:$0xff] %vm579_vm0, %v489_v1  ;;  %623 = vst.msk [vmem:[#allocation2 + $0x150] sm:$0xff] %vm579_vm0, %v560_v13  ;;  %v576_v4 = vsel %vm450_vm2, %v491_v6, 0.0  ;;  %v561_v15 = vsel %vm450_vm2, 0.0, %v493_v7  ;;  %v495_v16 = vsel %vm450_vm2, %v493_v7, %v494_v9 }
  0x48   : > { %622 = vst.msk [vmem:[#allocation2 + $0x148] sm:$0x3] %vm582_vm1, %v575_v12  ;;  %v577_v17 = vsel %vm450_vm2, %v494_v9, 0.0  ;;  %625 = vst.msk [vmem:[#allocation2 + $0x160] sm:$0x3] %vm582_vm1, %v576_v4  ;;  %v496_v18 = vrot.slane %v416_v10, 7 }
  0x49   : > { %624 = vst.msk [vmem:[#allocation2 + $0x158] sm:$0xff] %vm579_vm0, %v492_v14  ;;  %626 = vst.msk [vmem:[#allocation2 + $0x168] sm:$0xff] %vm579_vm0, %v561_v15  ;;  %v497_v19 = vrot.slane %v417_v11, 7 }
  0x4a   : > { %627 = vst.msk [vmem:[#allocation2 + $0x170] sm:$0xff] %vm579_vm0, %v495_v16  ;;  %v562_v20 = vsel %vm450_vm2, 0.0, %v496_v18 }
  0x4b   : > { %628 = vst.msk [vmem:[#allocation2 + $0x178] sm:$0x3] %vm582_vm1, %v577_v17  ;;  %v498_v21 = vsel %vm450_vm2, %v496_v18, %v497_v19  ;;  %v578_v22 = vsel %vm450_vm2, %v497_v19, 0.0 }
  0x4c   : > { %629 = vst.msk [vmem:[#allocation2 + $0x180] sm:$0xff] %vm579_vm0, %v562_v20  ;;  %630 = vst.msk [vmem:[#allocation2 + $0x188] sm:$0xff] %vm579_vm0, %v498_v21 }
  0x4d   : > { %631 = vst.msk [vmem:[#allocation2 + $0x190] sm:$0x3] %vm582_vm1, %v578_v22 }
  0x4e PF: > { %s1880_s28 = smul.u32 192, %s2444_s18  ;;  %s2463_s18 = smov 16   ;;  %vm1505_vm3 = vcmask 1043456   ;;  %v2417_v52 = vld [vmem:[%s3205_s3 + $0x20] ss:$0 sps:$4 sm:$0xff]   ;;  %v2418_v53 = vld [vmem:[%s3205_s3 + $0x18] sm:$0xff]  }
  0x4f   : > { %s2464_s30 = smov 8   ;;  %s2465_s6 = smov 24   ;;  %2046 = vmatprep.subr.msk.bf16.mxu0 %vm1505_vm3, %v2417_v52  ;;  %v1507_v54 = vsel %vm1505_vm3, %v2417_v52, 0  ;;  %2047 = vmatprep.subr.msk.bf16.mxu1 %vm1505_vm3, %v2417_v52  ;;  %v2419_v56 = vld [vmem:[%s3205_s3 + $0x10] sm:$0xff]   ;;  %v2420_v57 = vld [vmem:[%s3205_s3 + $0x8] sm:$0xff]   ;;  %v2421_v61 = vld [vmem:[%s3205_s3] sm:$0xff]  }
  0x50   : > { %s2761_s29 = scalar_lea.vmem [#allocation2], %s1880_s28  ;;  %s2466_s7 = smov 32   ;;  %2011 = vmatpush3.bf16.msra.mxu0 %v1507_v54  ;;  %2041 = vmatpush3.bf16.msra.mxu1 %v1507_v54  ;;  %vm1300_vm4 = vcmask 64512   ;;  %vm1317_vm5 = vcmask 130048   ;;  %vm1334_vm6 = vcmask 195584   ;;  %vm1351_vm7 = vcmask 261120  }
  0x51   : > { %s2467_s8 = smov 40   ;;  %s2468_s14 = smov 48   ;;  %2012 = vmatprep.subr.bf16.mxu0 %v2418_v53  ;;  %2037 = vmatprep.subr.bf16.mxu1 %v2418_v53  ;;  %vm1368_vm8 = vcmask 326656   ;;  %vm1385_vm9 = vcmask 392192   ;;  %vm1402_vm10 = vcmask 457728   ;;  %vm1419_vm11 = vcmask 523264  }
  0x52   : > { %s2469_s17 = smov 56   ;;  %s2470_s19 = smov 64   ;;  %vm1480_vm12 = vcmask 588800   ;;  %vm1712_vm13 = vcmask 1040384   ;;  %vm1714_vm14 = vcmask 58368  }
  0x54   : > { %v670_v23 = vld [vmem:[%s2761_s29 + $0x2] sm:$0xff]  ;;  %v671_v24 = vld [vmem:[%s2761_s29 + $0xa] sm:$0xff]  ;;  %v672_v28 = vld [vmem:[%s2761_s29 + $0x1a] sm:$0xff]  ;;  %2013 = vmatpush3.bf16.msra.mxu0 %v2418_v53  ;;  %2042 = vmatpush3.bf16.msra.mxu1 %v2418_v53 }
  0x55   : > { %v654_v25 = vld [vmem:[%s2761_s29 + $0x1] sm:$0xff]  ;;  %v2107_v26 = vpack.i.bf16 %v671_v24, %v670_v23  ;;  %v655_v27 = vld [vmem:[%s2761_s29 + $0x9] sm:$0xff]  ;;  %v656_v31 = vld [vmem:[%s2761_s29 + $0x19] sm:$0xff]  ;;  %2014 = vmatprep.subr.bf16.mxu0 %v2419_v56  ;;  %2038 = vmatprep.subr.bf16.mxu1 %v2419_v56 }
  0x56   : > { %v673_v29 = vld [vmem:[%s2761_s29 + $0x22] sm:$0xff]  ;;  %v2097_v30 = vpack.i.bf16 %v655_v27, %v654_v25  ;;  %v2774_v35 = vld [vmem:[%s2761_s29 + $0x30] sm:$0xff]  ;;  %v2777_v36 = vld [vmem:[%s2761_s29 + $0x38] sm:$0xff] }
  0x57   : > { %v657_v32 = vld [vmem:[%s2761_s29 + $0x21] sm:$0xff]  ;;  %2108 = vrot.lane.b32.xlu1 %v2107_v26, %s2463_s18  ;;  %v2112_v33 = vpack.i.bf16 %v673_v29, %v672_v28  ;;  %v2780_v37 = vld [vmem:[%s2761_s29 + $0x18] sm:$0xff]  ;;  %v2122_v39 = vpack.i.bf16 %v2777_v36, %v2774_v35  ;;  %v2803_v48 = vld [vmem:[%s2761_s29 + $0x50] sm:$0xff] }
  0x58   : > { %2098 = vrot.lane.b32.xlu0 %v2097_v30, %s2464_s30  ;;  %v2102_v34 = vpack.i.bf16 %v657_v32, %v656_v31  ;;  %v2783_v38 = vld [vmem:[%s2761_s29 + $0x20] sm:$0xff]  ;;  %v1901_v41 = vld [vmem:[%s2761_s29 + $0x31] sm:$0xff]  ;;  %v2800_v47 = vld [vmem:[%s2761_s29 + $0x48] sm:$0xff]  ;;  %2015 = vmatpush3.bf16.msra.mxu0 %v2419_v56 }
  0x59   : > { %v2117_v40 = vpack.i.bf16 %v2783_v38, %v2780_v37  ;;  %v1902_v42 = vld [vmem:[%s2761_s29 + $0x39] sm:$0xff]  ;;  %v2152_v49 = vpack.i.bf16 %v2803_v48, %v2800_v47  ;;  %v1951_v50 = vld [vmem:[%s2761_s29 + $0x49] sm:$0xff]  ;;  %v1952_v51 = vld [vmem:[%s2761_s29 + $0x51] sm:$0xff]  ;;  %2016 = vmatprep.subr.bf16.mxu0 %v2420_v57  ;;  %2043 = vmatpush3.bf16.msra.mxu1 %v2419_v56 }
  0x5a   : > { %v2132_v43 = vpack.i.bf16 %v1902_v42, %v1901_v41  ;;  %v1917_v44 = vld [vmem:[%s2761_s29 + $0x32] sm:$0xff]  ;;  %v1918_v45 = vld [vmem:[%s2761_s29 + $0x3a] sm:$0xff]  ;;  %v2162_v55 = vpack.i.bf16 %v1952_v51, %v1951_v50  ;;  %v1967_v58 = vld [vmem:[%s2761_s29 + $0x4a] sm:$0xff]  ;;  %2039 = vmatprep.subr.bf16.mxu1 %v2420_v57 }
  0x5b   : > { %2113 = vrot.lane.b32.xlu1 %v2112_v33, %s2463_s18  ;;  %v2142_v46 = vpack.i.bf16 %v1918_v45, %v1917_v44  ;;  %v1968_v59 = vld [vmem:[%s2761_s29 + $0x52] sm:$0xff]  ;;  %v2837_v62 = vld [vmem:[%s2761_s29 + $0x60] sm:$0xff]  ;;  %v2840_v63 = vld [vmem:[%s2761_s29 + $0x68] sm:$0xff] }
  0x5c   : > { %2103 = vrot.lane.b32.xlu0 %v2102_v34, %s2464_s30  ;;  %v2177_v60 = vpack.i.bf16 %v1968_v59, %v1967_v58  ;;  %2017 = vmatpush3.bf16.msra.mxu0 %v2420_v57  ;;  %v2202_v0 = vpack.i.bf16 %v2840_v63, %v2837_v62  ;;  %v1905_v2 = vld [vmem:[%s2761_s29 + $0x61] sm:$0xff]  ;;  %v1906_v3 = vld [vmem:[%s2761_s29 + $0x69] sm:$0xff]  ;;  %v2855_v9 = vld [vmem:[%s2761_s29 + $0x78] sm:$0xff] }
  0x5d   : > { %2018 = vmatprep.subr.bf16.mxu0 %v2421_v61  ;;  %2044 = vmatpush3.bf16.msra.mxu1 %v2420_v57  ;;  %v2212_v5 = vpack.i.bf16 %v1906_v3, %v1905_v2  ;;  %v1921_v6 = vld [vmem:[%s2761_s29 + $0x62] sm:$0xff]  ;;  %v1922_v7 = vld [vmem:[%s2761_s29 + $0x6a] sm:$0xff]  ;;  %v1955_v1 = vld [vmem:[%s2761_s29 + $0x79] sm:$0xff] }
  0x5e   : > { %2040 = vmatprep.subr.bf16.mxu1 %v2421_v61  ;;  %v2222_v8 = vpack.i.bf16 %v1922_v7, %v1921_v6  ;;  %v2858_v10 = vld [vmem:[%s2761_s29 + $0x80] sm:$0xff]  ;;  %v2877_v16 = vld [vmem:[%s2761_s29 + $0x90] sm:$0xff]  ;;  %v2880_v17 = vld [vmem:[%s2761_s29 + $0x98] sm:$0xff] }
  0x5f   : > { %2123 = vrot.lane.b32.xlu1 %v2122_v39, %s2465_s6  ;;  %v2232_v11 = vpack.i.bf16 %v2858_v10, %v2855_v9  ;;  %v1956_v12 = vld [vmem:[%s2761_s29 + $0x81] sm:$0xff]  ;;  %v2282_v18 = vpack.i.bf16 %v2880_v17, %v2877_v16  ;;  %v1909_v19 = vld [vmem:[%s2761_s29 + $0x91] sm:$0xff]  ;;  %v1910_v20 = vld [vmem:[%s2761_s29 + $0x99] sm:$0xff] }
  0x60   : > { %2118 = vrot.lane.b32.xlu0 %v2117_v40, %s2465_s6  ;;  %2019 = vmatpush3.bf16.msra.mxu0 %v2421_v61  ;;  %v2242_v13 = vpack.i.bf16 %v1956_v12, %v1955_v1  ;;  %v1971_v14 = vld [vmem:[%s2761_s29 + $0x7a] sm:$0xff]  ;;  %v1972_v4 = vld [vmem:[%s2761_s29 + $0x82] sm:$0xff]  ;;  %v2292_v21 = vpack.i.bf16 %v1910_v20, %v1909_v19  ;;  %v1925_v22 = vld [vmem:[%s2761_s29 + $0x92] sm:$0xff] }
  0x61   : > { %2045 = vmatpush3.bf16.msra.mxu1 %v2421_v61  ;;  %v2257_v15 = vpack.i.bf16 %v1972_v4, %v1971_v14  ;;  %v1926_v23 = vld [vmem:[%s2761_s29 + $0x9a] sm:$0xff]  ;;  %v2895_v25 = vld [vmem:[%s2761_s29 + $0xa8] sm:$0xff]  ;;  %v2898_v26 = vld [vmem:[%s2761_s29 + $0xb0] sm:$0xff] }
  0x62   : > { %v2302_v24 = vpack.i.bf16 %v1926_v23, %v1925_v22  ;;  %v2312_v27 = vpack.i.bf16 %v2898_v26, %v2895_v25  ;;  %v1959_v28 = vld [vmem:[%s2761_s29 + $0xa9] sm:$0xff]  ;;  %v1960_v29 = vld [vmem:[%s2761_s29 + $0xb1] sm:$0xff]  ;;  %v1913_v41 = vld [vmem:[%s2761_s29 + $0xc1] sm:$0xff] }
  0x63   : > { %2133 = vrot.lane.b32.xlu1 %v2132_v43, %s2466_s7  ;;  %v2322_v30 = vpack.i.bf16 %v1960_v29, %v1959_v28  ;;  %v1975_v31 = vld [vmem:[%s2761_s29 + $0xaa] sm:$0xff]  ;;  %v1976_v32 = vld [vmem:[%s2761_s29 + $0xb2] sm:$0xff]  ;;  %v1929_v44 = vld [vmem:[%s2761_s29 + $0xc2] sm:$0xff] }
  0x64   : > { %2128 = vrot.lane.b32.xlu0 %v2102_v34, %s2466_s7  ;;  %v1897_v34 = vld [vmem:[%s2761_s29 + $0xc0] sm:$0xff]  ;;  %v1914_v42 = vld [vmem:[%s2761_s29 + $0xc9] sm:$0xff] }
  0x65   : > { %v1930_v45 = vld [vmem:[%s2761_s29 + $0xca] sm:$0xff]  ;;  %v1948_v50 = vld [vmem:[%s2761_s29 + $0xe0] sm:$0xff] }
  0x66   : > { %v1963_v52 = vld [vmem:[%s2761_s29 + $0xd9] sm:$0xff]  ;;  %v1964_v53 = vld [vmem:[%s2761_s29 + $0xe1] sm:$0xff] }
  0x67   : > { %2143 = vrot.lane.b32.xlu1 %v2142_v46, %s2467_s8  ;;  %v2402_v56 = vpack.i.bf16 %v1964_v53, %v1963_v52  ;;  %v1979_v57 = vld [vmem:[%s2761_s29 + $0xda] sm:$0xff]  ;;  %v1980_v58 = vld [vmem:[%s2761_s29 + $0xe2] sm:$0xff] }
  0x68   : > { %2138 = vrot.lane.b32.xlu0 %v2112_v33, %s2467_s8  ;;  %v2337_v33 = vpack.i.bf16 %v1976_v32, %v1975_v31  ;;  %v2412_v61 = vpack.i.bf16 %v1980_v58, %v1979_v57  ;;  %v639_v1 = vld [vmem:[%s2761_s29 + $0x8] sm:$0xff] }
  0x6b   : > { %2153 = vrot.lane.b32.xlu1 %v2152_v49, %s2468_s14 }
  0x6c   : > { %2148 = vrot.lane.b32.xlu0 %v2122_v39, %s2468_s14  ;;  %v1898_v39 = vld [vmem:[%s2761_s29 + $0xc8] sm:$0xff] }
  0x6d   : > { %v2362_v40 = vpack.i.bf16 %v1898_v39, %v1897_v34 }
  0x6f   : > { %2163 = vrot.lane.b32.xlu1 %v2162_v55, %s2469_s17 }
  0x70   : > { %2158 = vrot.lane.b32.xlu0 %v2132_v43, %s2469_s17 }
  0x73   : > { %2173 = vrot.lane.b32.xlu1 %v2132_v43, %s2464_s30  ;;  %v2372_v43 = vpack.i.bf16 %v1914_v42, %v1913_v41 }
  0x74   : > { %2168 = vrot.lane.b32.xlu0 %v2142_v46, %s2470_s19 }
  0x77   : > { %2183 = vrot.lane.b32.xlu1 %v2162_v55, %s2464_s30 }
  0x78   : > { %2178 = vrot.lane.b32.xlu0 %v2177_v60, %s2470_s19 }
  0x7b   : > { %2193 = vrot.lane.b32.xlu1 %v2177_v60, %s2463_s18 }
  0x7c   : > { %2188 = vrot.lane.b32.xlu0 %v2142_v46, %s2463_s18  ;;  %v2382_v46 = vpack.i.bf16 %v1930_v45, %v1929_v44 }
  0x7f   : > { %2203 = vrot.lane.b32.xlu1 %v2202_v0, %s2465_s6 }
  0x80   : > { %2198 = vrot.lane.b32.xlu0 %v2152_v49, %s2465_s6  ;;  %v1947_v49 = vld [vmem:[%s2761_s29 + $0xd8] sm:$0xff] }
  0x81   : > { %v2392_v51 = vpack.i.bf16 %v1948_v50, %v1947_v49 }
  0x83   : > { %2213 = vrot.lane.b32.xlu1 %v2212_v5, %s2466_s7 }
  0x84   : > { %2208 = vrot.lane.b32.xlu0 %v2162_v55, %s2466_s7 }
  0x87   : > { %2223 = vrot.lane.b32.xlu1 %v2222_v8, %s2467_s8 }
  0x88   : > { %2218 = vrot.lane.b32.xlu0 %v2177_v60, %s2467_s8 }
  0x8b   : > { %2233 = vrot.lane.b32.xlu1 %v2232_v11, %s2468_s14 }
  0x8c   : > { %2228 = vrot.lane.b32.xlu0 %v2202_v0, %s2468_s14 }
  0x8f   : > { %2243 = vrot.lane.b32.xlu1 %v2242_v13, %s2469_s17 }
  0x90   : > { %2238 = vrot.lane.b32.xlu0 %v2212_v5, %s2469_s17 }
  0x93   : > { %2253 = vrot.lane.b32.xlu1 %v2212_v5, %s2464_s30 }
  0x94   : > { %2248 = vrot.lane.b32.xlu0 %v2222_v8, %s2470_s19 }
  0x97   : > { %2263 = vrot.lane.b32.xlu1 %v2242_v13, %s2464_s30 }
  0x98   : > { %2258 = vrot.lane.b32.xlu0 %v2257_v15, %s2470_s19 }
  0x9b   : > { %2273 = vrot.lane.b32.xlu1 %v2257_v15, %s2463_s18 }
  0x9c   : > { %2268 = vrot.lane.b32.xlu0 %v2222_v8, %s2463_s18 }
  0x9f   : > { %2283 = vrot.lane.b32.xlu1 %v2282_v18, %s2465_s6 }
  0xa0   : > { %2278 = vrot.lane.b32.xlu0 %v2232_v11, %s2465_s6  ;;  %v638_v11 = vld [vmem:[%s2761_s29] sm:$0xff] }
  0xa3   : > { %2293 = vrot.lane.b32.xlu1 %v2292_v21, %s2466_s7 }
  0xa4   : > { %2288 = vrot.lane.b32.xlu0 %v2242_v13, %s2466_s7 }
  0xa7   : > { %2303 = vrot.lane.b32.xlu1 %v2302_v24, %s2467_s8 }
  0xa8   : > { %2298 = vrot.lane.b32.xlu0 %v2257_v15, %s2467_s8 }
  0xab   : > { %2313 = vrot.lane.b32.xlu1 %v2312_v27, %s2468_s14 }
  0xac   : > { %2308 = vrot.lane.b32.xlu0 %v2282_v18, %s2468_s14 }
  0xaf   : > { %2323 = vrot.lane.b32.xlu1 %v2322_v30, %s2469_s17 }
  0xb0   : > { %2318 = vrot.lane.b32.xlu0 %v2292_v21, %s2469_s17 }
  0xb3   : > { %2333 = vrot.lane.b32.xlu1 %v2292_v21, %s2464_s30 }
  0xb4   : > { %2328 = vrot.lane.b32.xlu0 %v2302_v24, %s2470_s19 }
  0xb7   : > { %2343 = vrot.lane.b32.xlu1 %v2322_v30, %s2464_s30 }
  0xb8   : > { %2338 = vrot.lane.b32.xlu0 %v2337_v33, %s2470_s19 }
  0xbb   : > { %2353 = vrot.lane.b32.xlu1 %v2337_v33, %s2463_s18 }
  0xbc   : > { %2348 = vrot.lane.b32.xlu0 %v2302_v24, %s2463_s18 }
  0xbf   : > { %2363 = vrot.lane.b32.xlu1 %v2362_v40, %s2465_s6 }
  0xc0   : > { %2358 = vrot.lane.b32.xlu0 %v2312_v27, %s2465_s6 }
  0xc3   : > { %2373 = vrot.lane.b32.xlu1 %v2372_v43, %s2466_s7 }
  0xc4   : > { %2368 = vrot.lane.b32.xlu0 %v2322_v30, %s2466_s7 }
  0xc7   : > { %2383 = vrot.lane.b32.xlu1 %v2382_v46, %s2467_s8 }
  0xc8   : > { %2378 = vrot.lane.b32.xlu0 %v2337_v33, %s2467_s8 }
  0xc9   : > { %v2109_v54 = vpop.permute.xlu1 %2108 }
  0xca   : > { %v2099_v55 = vpop.permute.xlu0 %2098  ;;  %v2111_v4 = vunpack.i.h.bf16 %v2109_v54  ;;  %v2110_v15 = vunpack.i.l.bf16 %v2109_v54 }
  0xcb   : > { %2393 = vrot.lane.b32.xlu1 %v2392_v51, %s2468_s14  ;;  %v2101_v6 = vunpack.i.h.bf16 %v2099_v55  ;;  %v2100_v7 = vunpack.i.l.bf16 %v2099_v55 }
  0xcc   : > { %2388 = vrot.lane.b32.xlu0 %v2362_v40, %s2468_s14 }
  0xcd   : > { %v2114_v59 = vpop.permute.xlu1 %2113  ;;  %v1301_v18 = vsel %vm1300_vm4, %v638_v11, %v2100_v7  ;;  %v1302_v19 = vsel %vm1300_vm4, %v639_v1, %v2101_v6 }
  0xce   : > { %v2104_v60 = vpop.permute.xlu0 %2103  ;;  %v2116_v20 = vunpack.i.h.bf16 %v2114_v59  ;;  %v2115_v21 = vunpack.i.l.bf16 %v2114_v59  ;;  %v1318_v32 = vsel %vm1317_vm5, %v1301_v18, %v2110_v15  ;;  %v1319_v33 = vsel %vm1317_vm5, %v1302_v19, %v2111_v4 }
  0xcf   : > { %2403 = vrot.lane.b32.xlu1 %v2402_v56, %s2469_s17  ;;  %v2106_v12 = vunpack.i.h.bf16 %v2104_v60  ;;  %v2105_v13 = vunpack.i.l.bf16 %v2104_v60 }
  0xd0   : > { %2398 = vrot.lane.b32.xlu0 %v2372_v43, %s2469_s17 }
  0xd1   : > { %v2124_v0 = vpop.permute.xlu1 %2123  ;;  %v1303_v23 = vsel %vm1300_vm4, %v2780_v37, %v2105_v13  ;;  %v1304_v24 = vsel %vm1300_vm4, %v2783_v38, %v2106_v12 }
  0xd2   : > { %v2119_v2 = vpop.permute.xlu0 %2118  ;;  %v2126_v27 = vunpack.i.h.bf16 %v2124_v0  ;;  %v2125_v28 = vunpack.i.l.bf16 %v2124_v0  ;;  %v1320_v34 = vsel %vm1317_vm5, %v1303_v23, %v2115_v21  ;;  %v1321_v37 = vsel %vm1317_vm5, %v1304_v24, %v2116_v20 }
  0xd3   : > { %2413 = vrot.lane.b32.xlu1 %v2412_v61, %s2470_s19  ;;  %v2121_v30 = vunpack.i.h.bf16 %v2119_v2  ;;  %v2120_v31 = vunpack.i.l.bf16 %v2119_v2 }
  0xd4   : > { %2408 = vrot.lane.b32.xlu0 %v2382_v46, %s2470_s19  ;;  %v1337_v41 = vsel %vm1334_vm6, %v1320_v34, %v2125_v28  ;;  %v1338_v42 = vsel %vm1334_vm6, %v1321_v37, %v2126_v27 }
  0xd5   : > { %v2942_v3 = vpop.permute.xlu1 %2133  ;;  %v1335_v46 = vsel %vm1334_vm6, %v1318_v32, %v2120_v31  ;;  %v1336_v49 = vsel %vm1334_vm6, %v1319_v33, %v2121_v30 }
  0xd6   : > { %v2129_v5 = vpop.permute.xlu0 %2128  ;;  %v2136_v52 = vunpack.i.h.bf16 %v2942_v3  ;;  %v2135_v53 = vunpack.i.l.bf16 %v2942_v3 }
  0xd7   : > { %v2131_v39 = vunpack.i.h.bf16 %v2129_v5  ;;  %v2130_v40 = vunpack.i.l.bf16 %v2129_v5 }
  0xd8   : > { %v1354_v4 = vsel %vm1351_vm7, %v1337_v41, %v2135_v53  ;;  %v1355_v15 = vsel %vm1351_vm7, %v1338_v42, %v2136_v52 }
  0xd9   : > { %v2944_v8 = vpop.permute.xlu1 %2143  ;;  %v1352_v56 = vsel %vm1351_vm7, %v1335_v46, %v2130_v40  ;;  %v1353_v57 = vsel %vm1351_vm7, %v1336_v49, %v2131_v39 }
  0xda   : > { %v2139_v14 = vpop.permute.xlu0 %2138  ;;  %v2146_v58 = vunpack.i.h.bf16 %v2944_v8  ;;  %v2145_v59 = vunpack.i.l.bf16 %v2944_v8 }
  0xdb   : > { %v2141_v43 = vunpack.i.h.bf16 %v2139_v14  ;;  %v2140_v44 = vunpack.i.l.bf16 %v2139_v14 }
  0xdc   : > { %v1371_v21 = vsel %vm1368_vm8, %v1354_v4, %v2145_v59 }
  0xdd   : > { %v2950_v22 = vpop.permute.xlu1 %2153  ;;  %v1369_v61 = vsel %vm1368_vm8, %v1352_v56, %v2140_v44  ;;  %v1370_v0 = vsel %vm1368_vm8, %v1353_v57, %v2141_v43 }
  0xde   : > { %v2149_v29 = vpop.permute.xlu0 %2148  ;;  %v2156_v2 = vunpack.i.h.bf16 %v2950_v22  ;;  %v2155_v5 = vunpack.i.l.bf16 %v2950_v22  ;;  %v1372_v22 = vsel %vm1368_vm8, %v1355_v15, %v2146_v58 }
  0xdf   : > { %v2151_v50 = vunpack.i.h.bf16 %v2149_v29  ;;  %v2150_v51 = vunpack.i.l.bf16 %v2149_v29 }
  0xe0   : > { %v1388_v27 = vsel %vm1385_vm9, %v1371_v21, %v2155_v5  ;;  %v1389_v28 = vsel %vm1385_vm9, %v1372_v22, %v2156_v2 }
  0xe1   : > { %v2164_v38 = vpop.permute.xlu1 %2163  ;;  %v1386_v6 = vsel %vm1385_vm9, %v1369_v61, %v2150_v51  ;;  %v1387_v7 = vsel %vm1385_vm9, %v1370_v0, %v2151_v50 }
  0xe2   : > { %v2159_v45 = vpop.permute.xlu0 %2158  ;;  %v2166_v12 = vunpack.i.h.bf16 %v2164_v38  ;;  %v2165_v13 = vunpack.i.l.bf16 %v2164_v38 }
  0xe3   : > { %v2161_v54 = vunpack.i.h.bf16 %v2159_v45  ;;  %v2160_v55 = vunpack.i.l.bf16 %v2159_v45 }
  0xe4   : > { %v1405_v31 = vsel %vm1402_vm10, %v1388_v27, %v2165_v13  ;;  %v1406_v32 = vsel %vm1402_vm10, %v1389_v28, %v2166_v12 }
  0xe5   : > { %v2174_v60 = vpop.permute.xlu1 %2173  ;;  %v1403_v8 = vsel %vm1402_vm10, %v1386_v6, %v2160_v55  ;;  %v1404_v14 = vsel %vm1402_vm10, %v1387_v7, %v2161_v54 }
  0xe6   : > { %v2169_v3 = vpop.permute.xlu0 %2168  ;;  %v2176_v50 = vunpack.i.h.bf16 %v2174_v60  ;;  %v2175_v51 = vunpack.i.l.bf16 %v2174_v60 }
  0xe7   : > { %v2171_v11 = vunpack.i.h.bf16 %v2169_v3  ;;  %v2170_v1 = vunpack.i.l.bf16 %v2169_v3 }
  0xe8   : > { %v1305_v3 = vsel %vm1300_vm4, %v2774_v35, %v2175_v51  ;;  %v1306_v60 = vsel %vm1300_vm4, %v2777_v36, %v2176_v50 }
  0xe9   : > { %v2184_v18 = vpop.permute.xlu1 %2183  ;;  %v1420_v19 = vsel %vm1419_vm11, %v1403_v8, %v2170_v1  ;;  %v1421_v20 = vsel %vm1419_vm11, %v1404_v14, %v2171_v11 }
  0xea   : > { %v2179_v23 = vpop.permute.xlu0 %2178  ;;  %v1436_v24 = vpack.c.bf16 %v1421_v20, %v1420_v19  ;;  %v2186_v46 = vunpack.i.h.bf16 %v2184_v18  ;;  %v2185_v49 = vunpack.i.l.bf16 %v2184_v18 }
  0xeb   : > { %v2181_v29 = vunpack.i.h.bf16 %v2179_v23  ;;  %v2180_v30 = vunpack.i.l.bf16 %v2179_v23 }
  0xec   : > { %2020 = vmatprep.mubr.msk.bf16.mxu0 %vm1480_vm12, %v1436_v24  ;;  %v1307_v61 = vsel %vm1300_vm4, %v2800_v47, %v2185_v49  ;;  %v1308_v0 = vsel %vm1300_vm4, %v2803_v48, %v2186_v46 }
  0xed   : > { %v1422_v33 = vsel %vm1419_vm11, %v1405_v31, %v2180_v30  ;;  %v1423_v34 = vsel %vm1419_vm11, %v1406_v32, %v2181_v29  ;;  %v2194_v37 = vpop.permute.xlu1 %2193 }
  0xee   : > { %v1437_v39 = vpack.c.bf16 %v1423_v34, %v1422_v33  ;;  %v2189_v40 = vpop.permute.xlu0 %2188  ;;  %v2196_v52 = vunpack.i.h.bf16 %v2194_v37  ;;  %v2195_v53 = vunpack.i.l.bf16 %v2194_v37 }
  0xef   : > { %v2191_v54 = vunpack.i.h.bf16 %v2189_v40  ;;  %v2190_v55 = vunpack.i.l.bf16 %v2189_v40 }
  0xf0   : > { %2021 = vmatmul.mubr.msk.bf16.vlgmr.msra.gmra.mxu0 %vm1480_vm12, %v1437_v39  ;;  %v1324_v6 = vsel %vm1317_vm5, %v1307_v61, %v2195_v53  ;;  %v1325_v7 = vsel %vm1317_vm5, %v1308_v0, %v2196_v52 }
  0xf1   : > { %v2204_v38 = vpop.permute.xlu1 %2203  ;;  %v1322_v11 = vsel %vm1317_vm5, %v1305_v3, %v2190_v55  ;;  %v1323_v1 = vsel %vm1317_vm5, %v1306_v60, %v2191_v54 }
  0xf2   : > { %v2199_v41 = vpop.permute.xlu0 %2198  ;;  %v2206_v57 = vunpack.i.h.bf16 %v2204_v38  ;;  %v2205_v58 = vunpack.i.l.bf16 %v2204_v38 }
  0xf3   : > { %v2201_v2 = vunpack.i.h.bf16 %v2199_v41  ;;  %v2200_v5 = vunpack.i.l.bf16 %v2199_v41 }
  0xf4   : > { %v1341_v48 = vsel %vm1334_vm6, %v1324_v6, %v2205_v58  ;;  %v1342_v8 = vsel %vm1334_vm6, %v1325_v7, %v2206_v57 }
  0xf5   : > { %v2992_v42 = vpop.permute.xlu1 %2213  ;;  %v1339_v36 = vsel %vm1334_vm6, %v1322_v11, %v2200_v5  ;;  %v1340_v15 = vsel %vm1334_vm6, %v1323_v1, %v2201_v2 }
  0xf6   : > { %v2209_v43 = vpop.permute.xlu0 %2208  ;;  %v2216_v20 = vunpack.i.h.bf16 %v2992_v42  ;;  %v2215_v21 = vunpack.i.l.bf16 %v2992_v42 }
  0xf7   : > { %v2211_v47 = vunpack.i.h.bf16 %v2209_v43  ;;  %v2210_v12 = vunpack.i.l.bf16 %v2209_v43 }
  0xf8   : > { %v1358_v46 = vsel %vm1351_vm7, %v1341_v48, %v2215_v21  ;;  %v1359_v49 = vsel %vm1351_vm7, %v1342_v8, %v2216_v20 }
  0xf9   : > { %v2994_v44 = vpop.permute.xlu1 %2223  ;;  %v1356_v24 = vsel %vm1351_vm7, %v1339_v36, %v2210_v12  ;;  %v1357_v27 = vsel %vm1351_vm7, %v1340_v15, %v2211_v47 }
  0xfa   : > { %v2219_v45 = vpop.permute.xlu0 %2218  ;;  %v2226_v28 = vunpack.i.h.bf16 %v2994_v44  ;;  %v2225_v29 = vunpack.i.l.bf16 %v2994_v44 }
  0xfb   : > { %v2221_v14 = vunpack.i.h.bf16 %v2219_v45  ;;  %v2220_v35 = vunpack.i.l.bf16 %v2219_v45 }
  0xfc   : > { %v1375_v53 = vsel %vm1368_vm8, %v1358_v46, %v2225_v29  ;;  %v1376_v54 = vsel %vm1368_vm8, %v1359_v49, %v2226_v28 }
  0xfd   : > { %v2234_v56 = vpop.permute.xlu1 %2233  ;;  %v1373_v31 = vsel %vm1368_vm8, %v1356_v24, %v2220_v35  ;;  %v1374_v32 = vsel %vm1368_vm8, %v1357_v27, %v2221_v14 }
  0xfe   : > { %v2229_v59 = vpop.permute.xlu0 %2228  ;;  %v2236_v33 = vunpack.i.h.bf16 %v2234_v56  ;;  %v2235_v34 = vunpack.i.l.bf16 %v2234_v56 }
  0xff   : > { %v2231_v18 = vunpack.i.h.bf16 %v2229_v59  ;;  %v2230_v19 = vunpack.i.l.bf16 %v2229_v59 }
 0x100   : > { %v1392_v57 = vsel %vm1385_vm9, %v1375_v53, %v2235_v34  ;;  %v1393_v58 = vsel %vm1385_vm9, %v1376_v54, %v2236_v33 }
 0x101   : > { %v2244_v13 = vpop.permute.xlu1 %2243  ;;  %v1390_v39 = vsel %vm1385_vm9, %v1373_v31, %v2230_v19  ;;  %v1391_v40 = vsel %vm1385_vm9, %v1374_v32, %v2231_v18 }
 0x102   : > { %v2239_v4 = vpop.permute.xlu0 %2238  ;;  %v2246_v42 = vunpack.i.h.bf16 %v2244_v13  ;;  %v2245_v43 = vunpack.i.l.bf16 %v2244_v13 }
 0x103   : > { %v2241_v22 = vunpack.i.h.bf16 %v2239_v4  ;;  %v2240_v23 = vunpack.i.l.bf16 %v2239_v4 }
 0x104   : > { %v1409_v0 = vsel %vm1402_vm10, %v1392_v57, %v2245_v43  ;;  %v1410_v2 = vsel %vm1402_vm10, %v1393_v58, %v2246_v42 }
 0x105   : > { %v2254_v30 = vpop.permute.xlu1 %2253  ;;  %v1407_v45 = vsel %vm1402_vm10, %v1390_v39, %v2240_v23  ;;  %v1408_v44 = vsel %vm1402_vm10, %v1391_v40, %v2241_v22 }
 0x106   : > { %v2249_v37 = vpop.permute.xlu0 %2248  ;;  %v2256_v35 = vunpack.i.h.bf16 %v2254_v30  ;;  %v2255_v4 = vunpack.i.l.bf16 %v2254_v30 }
 0x107   : > { %v2251_v38 = vunpack.i.h.bf16 %v2249_v37  ;;  %v2250_v41 = vunpack.i.l.bf16 %v2249_v37 }
 0x108   : > { %v1309_v31 = vsel %vm1300_vm4, %v2837_v62, %v2255_v4  ;;  %v1310_v30 = vsel %vm1300_vm4, %v2840_v63, %v2256_v35 }
 0x109   : > { %v1424_v50 = vsel %vm1419_vm11, %v1407_v45, %v2250_v41  ;;  %v1425_v51 = vsel %vm1419_vm11, %v1408_v44, %v2251_v38  ;;  %v2264_v52 = vpop.permute.xlu1 %2263 }
 0x10a   : > { %v1438_v55 = vpack.c.bf16 %v1425_v51, %v1424_v50  ;;  %v2259_v56 = vpop.permute.xlu0 %2258  ;;  %v2266_v8 = vunpack.i.h.bf16 %v2264_v52  ;;  %v2265_v14 = vunpack.i.l.bf16 %v2264_v52 }
 0x10b   : > { %v2261_v59 = vunpack.i.h.bf16 %v2259_v56  ;;  %v2260_v61 = vunpack.i.l.bf16 %v2259_v56 }
 0x10c   : > { %2024 = vmatprep.mubr.msk.bf16.mxu0 %vm1480_vm12, %v1438_v55  ;;  %v1311_v24 = vsel %vm1300_vm4, %v2855_v9, %v2265_v14  ;;  %v1312_v27 = vsel %vm1300_vm4, %v2858_v10, %v2266_v8 }
 0x10d   : > { %v1426_v5 = vsel %vm1419_vm11, %v1409_v0, %v2260_v61  ;;  %v1427_v3 = vsel %vm1419_vm11, %v1410_v2, %v2261_v59  ;;  %v2274_v60 = vpop.permute.xlu1 %2273 }
 0x10e   : > { %v1439_v6 = vpack.c.bf16 %v1427_v3, %v1426_v5  ;;  %v2269_v7 = vpop.permute.xlu0 %2268  ;;  %v2276_v36 = vunpack.i.h.bf16 %v2274_v60  ;;  %v2275_v15 = vunpack.i.l.bf16 %v2274_v60 }
 0x10f   : > { %v2271_v18 = vunpack.i.h.bf16 %v2269_v7  ;;  %v2270_v19 = vunpack.i.l.bf16 %v2269_v7 }
 0x110   : > { %2025 = vmatmul.mubr.msk.bf16.gmra.mxu0 %vm1480_vm12, %v1439_v6  ;;  %v1328_v32 = vsel %vm1317_vm5, %v1311_v24, %v2275_v15  ;;  %v1329_v33 = vsel %vm1317_vm5, %v1312_v27, %v2276_v36 }
 0x111   : > { %v2284_v11 = vpop.permute.xlu1 %2283  ;;  %v1326_v34 = vsel %vm1317_vm5, %v1309_v31, %v2270_v19  ;;  %v1327_v37 = vsel %vm1317_vm5, %v1310_v30, %v2271_v18 }
 0x112   : > { %v2279_v1 = vpop.permute.xlu0 %2278  ;;  %v2286_v21 = vunpack.i.h.bf16 %v2284_v11  ;;  %v2285_v22 = vunpack.i.l.bf16 %v2284_v11 }
 0x113   : > { %v2281_v28 = vunpack.i.h.bf16 %v2279_v1  ;;  %v2280_v29 = vunpack.i.l.bf16 %v2279_v1 }
 0x114   : > { %v1345_v10 = vsel %vm1334_vm6, %v1328_v32, %v2285_v22  ;;  %v1346_v38 = vsel %vm1334_vm6, %v1329_v33, %v2286_v21 }
 0x115   : > { %v3038_v47 = vpop.permute.xlu1 %2293  ;;  %v1343_v63 = vsel %vm1334_vm6, %v1326_v34, %v2280_v29  ;;  %v1344_v43 = vsel %vm1334_vm6, %v1327_v37, %v2281_v28 }
 0x116   : > { %v2289_v12 = vpop.permute.xlu0 %2288  ;;  %v2296_v46 = vunpack.i.h.bf16 %v3038_v47  ;;  %v2295_v49 = vunpack.i.l.bf16 %v3038_v47 }
 0x117   : > { %v2291_v9 = vunpack.i.h.bf16 %v2289_v12  ;;  %v2290_v39 = vunpack.i.l.bf16 %v2289_v12 }
 0x118   : > { %v1362_v47 = vsel %vm1351_vm7, %v1345_v10, %v2295_v49  ;;  %v1363_v12 = vsel %vm1351_vm7, %v1346_v38, %v2296_v46 }
 0x119   : > { %v3040_v13 = vpop.permute.xlu1 %2303  ;;  %v1360_v52 = vsel %vm1351_vm7, %v1343_v63, %v2290_v39  ;;  %v1361_v53 = vsel %vm1351_vm7, %v1344_v43, %v2291_v9 }
 0x11a   : > { %v2299_v48 = vpop.permute.xlu0 %2298  ;;  %v2306_v54 = vunpack.i.h.bf16 %v3040_v13  ;;  %v2305_v55 = vunpack.i.l.bf16 %v3040_v13 }
 0x11b   : > { %v2301_v41 = vunpack.i.h.bf16 %v2299_v48  ;;  %v2300_v62 = vunpack.i.l.bf16 %v2299_v48 }
 0x11c   : > { %v1379_v14 = vsel %vm1368_vm8, %v1362_v47, %v2305_v55  ;;  %v1380_v35 = vsel %vm1368_vm8, %v1363_v12, %v2306_v54 }
 0x11d   : > { %v2314_v20 = vpop.permute.xlu1 %2313  ;;  %v1377_v57 = vsel %vm1368_vm8, %v1360_v52, %v2300_v62  ;;  %v1378_v58 = vsel %vm1368_vm8, %v1361_v53, %v2301_v41 }
 0x11e   : > { %v2309_v23 = vpop.permute.xlu0 %2308  ;;  %v2316_v59 = vunpack.i.h.bf16 %v2314_v20  ;;  %v2315_v61 = vunpack.i.l.bf16 %v2314_v20 }
 0x11f   : > { %v2311_v45 = vunpack.i.h.bf16 %v2309_v23  ;;  %v2310_v44 = vunpack.i.l.bf16 %v2309_v23 }
 0x120   : > { %v1396_v15 = vsel %vm1385_vm9, %v1379_v14, %v2315_v61  ;;  %v1397_v18 = vsel %vm1385_vm9, %v1380_v35, %v2316_v59 }
 0x121   : > { %v2324_v40 = vpop.permute.xlu1 %2323  ;;  %v1394_v2 = vsel %vm1385_vm9, %v1377_v57, %v2310_v44  ;;  %v1395_v5 = vsel %vm1385_vm9, %v1378_v58, %v2311_v45 }
 0x122   : > { %v2319_v42 = vpop.permute.xlu0 %2318  ;;  %v2326_v6 = vunpack.i.h.bf16 %v2324_v40  ;;  %v2325_v7 = vunpack.i.l.bf16 %v2324_v40 }
 0x123   : > { %v2321_v50 = vunpack.i.h.bf16 %v2319_v42  ;;  %v2320_v51 = vunpack.i.l.bf16 %v2319_v42 }
 0x124   : > { %v1413_v21 = vsel %vm1402_vm10, %v1396_v15, %v2325_v7  ;;  %v1414_v22 = vsel %vm1402_vm10, %v1397_v18, %v2326_v6 }
 0x125   : > { %v2334_v56 = vpop.permute.xlu1 %2333  ;;  %v1411_v11 = vsel %vm1402_vm10, %v1394_v2, %v2320_v51  ;;  %v1412_v1 = vsel %vm1402_vm10, %v1395_v5, %v2321_v50 }
 0x126   : > { %v2329_v0 = vpop.permute.xlu0 %2328  ;;  %v2336_v9 = vunpack.i.h.bf16 %v2334_v56  ;;  %v2335_v39 = vunpack.i.l.bf16 %v2334_v56 }
 0x127   : > { %v2331_v3 = vunpack.i.h.bf16 %v2329_v0  ;;  %v2330_v60 = vunpack.i.l.bf16 %v2329_v0 }
 0x128   : > { %v1313_v50 = vsel %vm1300_vm4, %v2877_v16, %v2335_v39  ;;  %v1314_v51 = vsel %vm1300_vm4, %v2880_v17, %v2336_v9 }
 0x129   : > { %v2344_v13 = vpop.permute.xlu1 %2343  ;;  %v1428_v48 = vsel %vm1419_vm11, %v1411_v11, %v2330_v60  ;;  %v1429_v8 = vsel %vm1419_vm11, %v1412_v1, %v2331_v3 }
 0x12a   : > { %v2339_v4 = vpop.permute.xlu0 %2338  ;;  %v1440_v36 = vpack.c.bf16 %v1429_v8, %v1428_v48  ;;  %v2346_v34 = vunpack.i.h.bf16 %v2344_v13  ;;  %v2345_v37 = vunpack.i.l.bf16 %v2344_v13 }
 0x12b   : > { %v2341_v19 = vunpack.i.h.bf16 %v2339_v4  ;;  %v2340_v20 = vunpack.i.l.bf16 %v2339_v4 }
 0x12c   : > { %2028 = vmatprep.mubr.msk.bf16.mxu1 %vm1480_vm12, %v1440_v36  ;;  %v1315_v45 = vsel %vm1300_vm4, %v2895_v25, %v2345_v37  ;;  %v1316_v44 = vsel %vm1300_vm4, %v2898_v26, %v2346_v34 }
 0x12d   : > { %v1430_v23 = vsel %vm1419_vm11, %v1413_v21, %v2340_v20  ;;  %v1431_v24 = vsel %vm1419_vm11, %v1414_v22, %v2341_v19  ;;  %v2354_v27 = vpop.permute.xlu1 %2353 }
 0x12e   : > { %v1441_v28 = vpack.c.bf16 %v1431_v24, %v1430_v23  ;;  %v2349_v29 = vpop.permute.xlu0 %2348  ;;  %v2356_v40 = vunpack.i.h.bf16 %v2354_v27  ;;  %v2355_v10 = vunpack.i.l.bf16 %v2354_v27 }
 0x12f   : > { %v2351_v41 = vunpack.i.h.bf16 %v2349_v29  ;;  %v2350_v62 = vunpack.i.l.bf16 %v2349_v29 }
 0x130   : > { %2029 = vmatmul.mubr.msk.bf16.vlgmr.msra.gmra.mxu1 %vm1480_vm12, %v1441_v28  ;;  %v1332_v52 = vsel %vm1317_vm5, %v1315_v45, %v2355_v10  ;;  %v1333_v53 = vsel %vm1317_vm5, %v1316_v44, %v2356_v40 }
 0x131   : > { %v2364_v31 = vpop.permute.xlu1 %2363  ;;  %v1330_v55 = vsel %vm1317_vm5, %v1313_v50, %v2350_v62  ;;  %v1331_v25 = vsel %vm1317_vm5, %v1314_v51, %v2351_v41 }
 0x132   : > { %v2359_v30 = vpop.permute.xlu0 %2358  ;;  %v2366_v63 = vunpack.i.h.bf16 %v2364_v31  ;;  %v2365_v43 = vunpack.i.l.bf16 %v2364_v31 }
 0x133   : > { %v2361_v46 = vunpack.i.h.bf16 %v2359_v30  ;;  %v2360_v49 = vunpack.i.l.bf16 %v2359_v30 }
 0x134   : > { %v1349_v58 = vsel %vm1334_vm6, %v1332_v52, %v2365_v43  ;;  %v1350_v59 = vsel %vm1334_vm6, %v1333_v53, %v2366_v63 }
 0x135   : > { %v2374_v32 = vpop.permute.xlu1 %2373  ;;  %v1347_v17 = vsel %vm1334_vm6, %v1330_v55, %v2360_v49  ;;  %v1348_v0 = vsel %vm1334_vm6, %v1331_v25, %v2361_v46 }
 0x136   : > { %v2369_v33 = vpop.permute.xlu0 %2368  ;;  %v2376_v56 = vunpack.i.h.bf16 %v2374_v32  ;;  %v2375_v57 = vunpack.i.l.bf16 %v2374_v32 }
 0x137   : > { %v2371_v16 = vunpack.i.h.bf16 %v2369_v33  ;;  %v2370_v61 = vunpack.i.l.bf16 %v2369_v33 }
 0x138   : > { %v1366_v1 = vsel %vm1351_vm7, %v1349_v58, %v2375_v57  ;;  %v1367_v47 = vsel %vm1351_vm7, %v1350_v59, %v2376_v56 }
 0x139   : > { %v2384_v38 = vpop.permute.xlu1 %2383  ;;  %v1364_v8 = vsel %vm1351_vm7, %v1347_v17, %v2370_v61  ;;  %v1365_v14 = vsel %vm1351_vm7, %v1348_v0, %v2371_v16 }
 0x13a   : > { %v2379_v42 = vpop.permute.xlu0 %2378  ;;  %v2386_v2 = vunpack.i.h.bf16 %v2384_v38  ;;  %v2385_v5 = vunpack.i.l.bf16 %v2384_v38 }
 0x13b   : > { %v2381_v3 = vunpack.i.h.bf16 %v2379_v42  ;;  %v2380_v60 = vunpack.i.l.bf16 %v2379_v42 }
 0x13c   : > { %v1383_v36 = vsel %vm1368_vm8, %v1366_v1, %v2385_v5  ;;  %v1384_v15 = vsel %vm1368_vm8, %v1367_v47, %v2386_v2 }
 0x13d   : > { %v2394_v54 = vpop.permute.xlu1 %2393  ;;  %v1381_v20 = vsel %vm1368_vm8, %v1364_v8, %v2380_v60  ;;  %v1382_v21 = vsel %vm1368_vm8, %v1365_v14, %v2381_v3 }
 0x13e   : > { %v2389_v26 = vpop.permute.xlu0 %2388  ;;  %v2396_v6 = vunpack.i.h.bf16 %v2394_v54  ;;  %v2395_v7 = vunpack.i.l.bf16 %v2394_v54 }
 0x13f   : > { %v2391_v12 = vunpack.i.h.bf16 %v2389_v26  ;;  %v2390_v13 = vunpack.i.l.bf16 %v2389_v26 }
 0x140   : > { %v1400_v22 = vsel %vm1385_vm9, %v1383_v36, %v2395_v7  ;;  %v1401_v23 = vsel %vm1385_vm9, %v1384_v15, %v2396_v6 }
 0x141   : > { %v2404_v11 = vpop.permute.xlu1 %2403  ;;  %v1398_v27 = vsel %vm1385_vm9, %v1381_v20, %v2390_v13  ;;  %v1399_v28 = vsel %vm1385_vm9, %v1382_v21, %v2391_v12 }
 0x142   : > { %v2399_v48 = vpop.permute.xlu0 %2398  ;;  %v2406_v35 = vunpack.i.h.bf16 %v2404_v11  ;;  %v2405_v4 = vunpack.i.l.bf16 %v2404_v11 }
 0x143   : > { %v2401_v18 = vunpack.i.h.bf16 %v2399_v48  ;;  %v2400_v19 = vunpack.i.l.bf16 %v2399_v48 }
 0x144   : > { %v1417_v32 = vsel %vm1402_vm10, %v1400_v22, %v2405_v4  ;;  %v1418_v33 = vsel %vm1402_vm10, %v1401_v23, %v2406_v35 }
 0x145   : > { %v2414_v24 = vpop.permute.xlu1 %2413  ;;  %v1415_v9 = vsel %vm1402_vm10, %v1398_v27, %v2400_v19  ;;  %v1416_v39 = vsel %vm1402_vm10, %v1399_v28, %v2401_v18 }
 0x146   : > { %v2416_v29 = vunpack.i.h.bf16 %v2414_v24  ;;  %v2415_v31 = vunpack.i.l.bf16 %v2414_v24  ;;  %v2409_v30 = vpop.permute.xlu0 %2408 }
 0x147   : > { %v2411_v34 = vunpack.i.h.bf16 %v2409_v30  ;;  %v2410_v37 = vunpack.i.l.bf16 %v2409_v30 }
 0x148   : > { %v1434_v40 = vsel %vm1419_vm11, %v1417_v32, %v2415_v31  ;;  %v1435_v10 = vsel %vm1419_vm11, %v1418_v33, %v2416_v29 }
 0x149   : > { %v1443_v38 = vpack.c.bf16 %v1435_v10, %v1434_v40  ;;  %v1432_v41 = vsel %vm1419_vm11, %v1415_v9, %v2410_v37  ;;  %v1433_v62 = vsel %vm1419_vm11, %v1416_v39, %v2411_v34 }
 0x14a   : > { %v1442_v42 = vpack.c.bf16 %v1433_v62, %v1432_v41 }
 0x14c   : > { %2032 = vmatprep.mubr.msk.bf16.mxu1 %vm1480_vm12, %v1442_v42 }
 0x14d   : > { %2033 = vmatmul.mubr.msk.bf16.gmra.mxu1 %vm1480_vm12, %v1443_v38 }
 0x1b0   : > { %v2022_v63 = vpop.f32.mrf.mxu0 }
 0x1b1   : > { %1608 = vst.msk [vmem:[%s2543_s11 + $0x10] sm:$0xff] %vm1300_vm4, %v2022_v63  ;;  %v1661_v49 = vmul.f32 %v2022_v63, %v2022_v63  ;;  %v1625_v54 = vsel %vm1300_vm4, %v2022_v63, 0.0 }
 0x1b2   : > { %v1543_v43 = vpop.f32.mrf.mxu0 }
 0x1b3   : > { %1606 = vst.msk [vmem:[%s2543_s11] sm:$0xff] %vm1300_vm4, %v1543_v43  ;;  %v1659_v44 = vmul.f32 %v1543_v43, %v1543_v43  ;;  %v1622_v50 = vsel %vm1300_vm4, %v1543_v43, 0.0  ;;  %v1678_v58 = vsel %vm1300_vm4, %v1661_v49, 0.0 }
 0x1b4   : > { %v2023_v45 = vpop.f32.mrf.mxu0 }
 0x1b5   : > { %1609 = vst.msk [vmem:[%s2543_s11 + $0x18] sm:$0xff] %vm1300_vm4, %v2023_v45  ;;  %v1675_v55 = vsel %vm1300_vm4, %v1659_v44, 0.0  ;;  %v1662_v25 = vmul.f32 %v2023_v45, %v2023_v45  ;;  %v1627_v59 = vsel %vm1300_vm4, %v2023_v45, 0.0 }
 0x1b6   : > { %v1546_v46 = vpop.f32.mrf.mxu0 }
 0x1b7   : > { %1607 = vst.msk [vmem:[%s2543_s11 + $0x8] sm:$0xff] %vm1300_vm4, %v1546_v46  ;;  %v1623_v51 = vsel %vm1300_vm4, %v1546_v46, 0.0  ;;  %v1660_v52 = vmul.f32 %v1546_v46, %v1546_v46  ;;  %v1680_v17 = vsel %vm1300_vm4, %v1662_v25, 0.0 }
 0x1b8   : > { %v1624_v53 = vadd.f32 %v1623_v51, %v1622_v50 }
 0x1b9   : > { %v1676_v56 = vsel %vm1300_vm4, %v1660_v52, 0.0 }
 0x1ba   : > { %v1626_v57 = vadd.f32 %v1625_v54, %v1624_v53  ;;  %v1677_v26 = vadd.f32 %v1676_v56, %v1675_v55 }
 0x1bc   : > { %v1679_v16 = vadd.f32 %v1678_v58, %v1677_v26  ;;  %v1628_v61 = vadd.f32 %v1627_v59, %v1626_v57 }
 0x1be   : > { %v1681_v0 = vadd.f32 %v1680_v17, %v1679_v16 }
 0x1d0   : > { %v2026_v2 = vpop.f32.mrf.mxu0 }
 0x1d1   : > { %1612 = vst.msk [vmem:[%s2543_s11 + $0x30] sm:$0xff] %vm1300_vm4, %v2026_v2  ;;  %v1665_v15 = vmul.f32 %v2026_v2, %v2026_v2  ;;  %v1633_v19 = vsel %vm1300_vm4, %v2026_v2, 0.0 }
 0x1d2   : > { %v1559_v5 = vpop.f32.mrf.mxu0 }
 0x1d3   : > { %1610 = vst.msk [vmem:[%s2543_s11 + $0x20] sm:$0xff] %vm1300_vm4, %v1559_v5  ;;  %v1663_v1 = vmul.f32 %v1559_v5, %v1559_v5  ;;  %v1629_v12 = vsel %vm1300_vm4, %v1559_v5, 0.0  ;;  %v1686_v21 = vsel %vm1300_vm4, %v1665_v15, 0.0 }
 0x1d4   : > { %v2027_v3 = vpop.f32.mrf.mxu0  ;;  %v1630_v14 = vadd.f32 %v1629_v12, %v1628_v61 }
 0x1d5   : > { %1613 = vst.msk [vmem:[%s2543_s11 + $0x38] sm:$0xff] %vm1300_vm4, %v2027_v3  ;;  %v1682_v48 = vsel %vm1300_vm4, %v1663_v1, 0.0  ;;  %v1666_v22 = vmul.f32 %v2027_v3, %v2027_v3  ;;  %v1635_v27 = vsel %vm1300_vm4, %v2027_v3, 0.0 }
 0x1d6   : > { %v1562_v60 = vpop.f32.mrf.mxu0  ;;  %v1683_v4 = vadd.f32 %v1682_v48, %v1681_v0 }
 0x1d7   : > { %1611 = vst.msk [vmem:[%s2543_s11 + $0x28] sm:$0xff] %vm1300_vm4, %v1562_v60  ;;  %v1664_v13 = vmul.f32 %v1562_v60, %v1562_v60  ;;  %v1631_v8 = vsel %vm1300_vm4, %v1562_v60, 0.0  ;;  %v1688_v30 = vsel %vm1300_vm4, %v1666_v22, 0.0 }
 0x1d8   : > { %v1632_v36 = vadd.f32 %v1631_v8, %v1630_v14 }
 0x1d9   : > { %v1684_v35 = vsel %vm1300_vm4, %v1664_v13, 0.0 }
 0x1da   : > { %v1685_v18 = vadd.f32 %v1684_v35, %v1683_v4  ;;  %v1634_v20 = vadd.f32 %v1633_v19, %v1632_v36 }
 0x1dc   : > { %v1687_v24 = vadd.f32 %v1686_v21, %v1685_v18  ;;  %v1636_v31 = vadd.f32 %v1635_v27, %v1634_v20 }
 0x1de   : > { %v1689_v37 = vadd.f32 %v1688_v30, %v1687_v24 }
 0x1f0   : > { %v2030_v6 = vpop.f32.mrf.mxu1 }
 0x1f1   : > { %1616 = vst.msk [vmem:[%s2543_s11 + $0x50] sm:$0xff] %vm1300_vm4, %v2030_v6  ;;  %v1669_v10 = vmul.f32 %v2030_v6, %v2030_v6  ;;  %v1641_v41 = vsel %vm1300_vm4, %v2030_v6, 0.0 }
 0x1f2   : > { %v1575_v7 = vpop.f32.mrf.mxu1 }
 0x1f3   : > { %1614 = vst.msk [vmem:[%s2543_s11 + $0x40] sm:$0xff] %vm1300_vm4, %v1575_v7  ;;  %v1667_v23 = vmul.f32 %v1575_v7, %v1575_v7  ;;  %v1637_v28 = vsel %vm1300_vm4, %v1575_v7, 0.0  ;;  %v1694_v63 = vsel %vm1300_vm4, %v1669_v10, 0.0 }
 0x1f4   : > { %v2031_v11 = vpop.f32.mrf.mxu1  ;;  %v1638_v34 = vadd.f32 %v1637_v28, %v1636_v31 }
 0x1f5   : > { %1617 = vst.msk [vmem:[%s2543_s11 + $0x58] sm:$0xff] %vm1300_vm4, %v2031_v11  ;;  %v1690_v32 = vsel %vm1300_vm4, %v1667_v23, 0.0  ;;  %v1670_v43 = vmul.f32 %v2031_v11, %v2031_v11  ;;  %v1643_v46 = vsel %vm1300_vm4, %v2031_v11, 0.0 }
 0x1f6   : > { %v1578_v47 = vpop.f32.mrf.mxu1  ;;  %v1691_v39 = vadd.f32 %v1690_v32, %v1689_v37 }
 0x1f7   : > { %1615 = vst.msk [vmem:[%s2543_s11 + $0x48] sm:$0xff] %vm1300_vm4, %v1578_v47  ;;  %v1668_v29 = vmul.f32 %v1578_v47, %v1578_v47  ;;  %v1639_v33 = vsel %vm1300_vm4, %v1578_v47, 0.0  ;;  %v1696_v53 = vsel %vm1300_vm4, %v1670_v43, 0.0 }
 0x1f8   : > { %v1640_v40 = vadd.f32 %v1639_v33, %v1638_v34 }
 0x1f9   : > { %v1692_v9 = vsel %vm1300_vm4, %v1668_v29, 0.0 }
 0x1fa   : > { %v1693_v38 = vadd.f32 %v1692_v9, %v1691_v39  ;;  %v1642_v62 = vadd.f32 %v1641_v41, %v1640_v40 }
 0x1fc   : > { %v1695_v45 = vadd.f32 %v1694_v63, %v1693_v38  ;;  %v1644_v51 = vadd.f32 %v1643_v46, %v1642_v62 }
 0x1fe   : > { %v1697_v25 = vadd.f32 %v1696_v53, %v1695_v45 }
 0x20d   : > { %v2034_v42 = vpop.f32.mrf.mxu1 }
 0x20e   : > { %1620 = vst.msk [vmem:[%s2543_s11 + $0x70] sm:$0xff] %vm1300_vm4, %v2034_v42  ;;  %v1673_v57 = vmul.f32 %v2034_v42, %v2034_v42  ;;  %v1649_v61 = vsel %vm1300_vm4, %v2034_v42, 0.0 }
 0x20f   : > { %v1591_v44 = vpop.f32.mrf.mxu1 }
 0x210   : > { %1618 = vst.msk [vmem:[%s2543_s11 + $0x60] sm:$0xff] %vm1300_vm4, %v1591_v44  ;;  %v1645_v49 = vsel %vm1300_vm4, %v1591_v44, 0.0  ;;  %v1671_v50 = vmul.f32 %v1591_v44, %v1591_v44  ;;  %v1702_v3 = vsel %vm1300_vm4, %v1673_v57, 0.0 }
 0x211   : > { %v2035_v52 = vpop.f32.mrf.mxu1  ;;  %v1646_v55 = vadd.f32 %v1645_v49, %v1644_v51 }
 0x212   : > { %v1698_v54 = vsel %vm1300_vm4, %v1671_v50, 0.0  ;;  %1621 = vst.msk [vmem:[%s2543_s11 + $0x78] sm:$0xff] %vm1300_vm4, %v2035_v52  ;;  %v1674_v17 = vmul.f32 %v2035_v52, %v2035_v52  ;;  %v1651_v60 = vsel %vm1300_vm4, %v2035_v52, 0.0 }
 0x213   : > { %v1594_v56 = vpop.f32.mrf.mxu1  ;;  %v1699_v59 = vadd.f32 %v1698_v54, %v1697_v25 }
 0x214   : > { %1619 = vst.msk [vmem:[%s2543_s11 + $0x68] sm:$0xff] %vm1300_vm4, %v1594_v56  ;;  %v1647_v26 = vsel %vm1300_vm4, %v1594_v56, 0.0  ;;  %v1672_v58 = vmul.f32 %v1594_v56, %v1594_v56  ;;  %v1704_v11 = vsel %vm1300_vm4, %v1674_v17, 0.0 }
 0x215   : > { %v1648_v16 = vadd.f32 %v1647_v26, %v1646_v55 }
 0x216   : > { %v1700_v0 = vsel %vm1300_vm4, %v1672_v58, 0.0 }
 0x217   : > { %v1650_v2 = vadd.f32 %v1649_v61, %v1648_v16  ;;  %v1701_v5 = vadd.f32 %v1700_v0, %v1699_v59 }
 0x219   : > { %v1652_v6 = vadd.f32 %v1651_v60, %v1650_v2  ;;  %v1703_v7 = vadd.f32 %v1702_v3, %v1701_v5 }
 0x21b   : > { %v1653_v1 = vrot.slane %v1652_v6, 4  ;;  %v1705_v47 = vadd.f32 %v1704_v11, %v1703_v7 }
 0x21d   : > { %v1654_v12 = vadd.f32 %v1653_v1, %v1652_v6  ;;  %v1706_v13 = vrot.slane %v1705_v47, 4 }
 0x21f   : > { %v1655_v48 = vrot.slane %v1654_v12, 2  ;;  %v1707_v8 = vadd.f32 %v1706_v13, %v1705_v47 }
 0x221   : > { %v1656_v14 = vadd.f32 %v1655_v48, %v1654_v12  ;;  %v1708_v35 = vrot.slane %v1707_v8, 2 }
 0x223   : > { %v1657_v4 = vrot.slane %v1656_v14, 1  ;;  %v1709_v36 = vadd.f32 %v1708_v35, %v1707_v8 }
 0x225   : > { %v1710_v15 = vrot.slane %v1709_v36, 1  ;;  %v1658_v18 = vadd.f32 %v1657_v4, %v1656_v14 }
 0x227   : > { %v1711_v19 = vadd.f32 %v1710_v15, %v1709_v36 }
 0x229   : > { %v1713_v20 = vsel %vm1712_vm13, %v1658_v18, %v1711_v19 }
 0x22a   : > { %1715 = vst.msk [vmem:[%s2549_s24] sm:$0x3] %vm1714_vm14, %v1713_v20 }
 0x22b PF: > { %s16_s22 = sadd.s32 1, %s2460_s22   ;;  %s3209_s11 = sld [smem:[#allocation3_spill]] }
 0x22c   : > { %p13_p9 = scmp.ge.s32.totalorder %s16_s22, 6   ;;  %s3210_s18 = smov %s2452_s20 }
 0x22d   : > { %s3211_s19 = smov %s2456_s21  ;;  %s3212_s20 = smov %s3215_s23 }
 0x22e   :  { %15 = sbr.rel (!%p13_p9) target bundleno = 3 (0x3), region = 85 }
 0x231   : > { %s3213_s21 = smov %s3209_s11 }

// kernel: double_conv_forward.3
= control target key start
LH: loop header
LB: loop body
LE: loop exit
PB: predicated region body
PF: predicated region fallthrough
CT: control target
= control target key end

     0   :  { %s2815_s21 = smov 0   ;;  %s2817_s22 = smov 0   ;;  %s3565_s0 = inlined_call_operand.vmem [shape: f32[2,16,16,4], index: 0, kind: input, shape index: {}]   ;;  %s3566_s1 = inlined_call_operand.vmem [shape: bf16[36,8], index: 1, kind: input, shape index: {}]   ;;  %s3567_s2 = inlined_call_operand.vmem [shape: bf16[4,8], index: 2, kind: input, shape index: {}]   ;;  %s3568_s3 = inlined_call_operand.vmem [shape: f32[2,16,16,8], index: 3, kind: output, shape index: {0}]   ;;  %s3569_s4 = inlined_call_operand.vmem [shape: f32[2,16,16,8], index: 4, kind: output, shape index: {1}]   ;;  %s3570_s5 = inlined_call_operand.vmem [shape: f32[2,2,2,8], index: 5, kind: output, shape index: {2}]   ;;  %s3571_s6 = inlined_call_operand.vmem [shape: f32[2,2,2,8], index: 6, kind: output, shape index: {3}]  }
   0x1   :  { %s2819_s23 = smov 0   ;;  %s2821_s24 = smov 0  }
   0x2   :  { %s2823_s25 = smov 0  }
   0x3 LB: > { %s26_s26 = sadd.s32 1, %s2761_s23  ;;  %s29_s27 = sadd.s32 1, %s2765_s24  ;;  %s2769_s25 = sphi %s2823_s25, %s17_s25   ;;  %s2765_s24 = sphi %s2821_s24, %s3579_s24   ;;  %s2761_s23 = sphi %s2819_s23, %s3578_s23   ;;  %s2757_s22 = sphi %s2817_s22, %s3577_s22   ;;  %s2753_s21 = sphi %s2815_s21, %s3576_s21  }
   0x4   : > { %p27_p0 = scmp.ge.s32.totalorder %s26_s26, 2  ;;  %p2157_p1 = scmp.ge.s32.totalorder %s2769_s25, 1 }
   0x5   : > { %p239_p2 = scmp.lt.s32.totalorder %s2769_s25, 5 }
   0x6   : > { %s3581_s26 = smov (%p27_p0, %s26_s26), 0  ;;  %s3583_s27 = smov (!%p27_p0, %s29_s27), %s2765_s24 }
   0x7   : > { %3572 = sst [smem:[#allocation3_spill]] %s3581_s26  ;;  %p240_p3 = pnand %p2157_p1, %p239_p2 }
   0x8   : > { %p31_p4 = scmp.ge.s32.totalorder %s3583_s27, 2  ;;  %p300_p5 = scmp.lt.s32.totalorder (!%p240_p3), %s2757_s22, 1 }
   0x9   : > { %243 = sbr.rel (%p240_p3) target bundleno = 535 (0x217), region = 32  ;;  %s2160_s28 = sshll.u32 (!%p240_p3), %s2753_s21, 3 }
   0xa   : > { %s3585_s27 = smov (%p31_p4, %s3583_s27), 0  ;;  %p308_p6 = scmp.lt.s32.totalorder (!%p240_p3), %s2160_s28, 15 }
   0xb   : > { %3573 = sst [smem:[#allocation4_spill]] %s3585_s27  ;;  %p329_p7 = scmp.lt.s32.totalorder (!%p240_p3), %s2753_s21, 1 }
   0xc   : > { %p2172_p8 = scmp.ne.s32.totalorder (!%p240_p3), %s2753_s21, 0 }
   0xe   : > { %s3587_s22 = smov (!%p300_p5, %s2757_s22), 1  ;;  %s3589_s28 = smov (!%p308_p6, %s2160_s28), 15 }
   0xf   : > { %s2296_s29 = sshll.u32 %s3587_s22, 8  ;;  %s2162_s30 = sshll.u32 %s3587_s22, 5 }
  0x10   : > { %s2852_s9 = scalar_lea.vmem %s3565_s0, %s2296_s29  ;;  %s2161_s10 = sshll.u32 %s3589_s28, 1 }
  0x11   : > { %s312_s11 = sadd.s32 %s2162_s30, %s2161_s10  ;;  %s2168_s13 = sshll.u32 %s3587_s22, 1 }
  0x12   : > { %s2163_s12 = sshll.u32 %s312_s11, 3 }
  0x13   : > { %s2857_s16 = scalar_lea.vmem %s3568_s3, %s2163_s12  ;;  %s2862_s19 = scalar_lea.vmem %s3569_s4, %s2163_s12 }
  0x14   : > { %s330_s20 = scalar_select %p329_p7, %s2753_s21, 1 }
  0x15   : > { %347 = sbr.rel (%p2172_p8) target bundleno = 58 (0x3a), region = 36 }
  0x16   : > { %s332_s27 = sadd.s32 %s2168_s13, %s330_s20 }
  0x17   : > { %s2169_s26 = sshll.u32 %s332_s27, 1 }
  0x18   : > { %s2868_s28 = scalar_lea.vmem %s3570_s5, %s2169_s26  ;;  %s2873_s8 = scalar_lea.vmem %s3571_s6, %s2169_s26 }
  0x1a   : > { %vm541_vm0 = vcmask 31744   ;;  %vm544_vm1 = vcmask 25600   ;;  %v348_v0 = vld [vmem:[%s2852_s9] sm:$0xff]  ;;  %vm412_vm2 = vcmask 1040384   ;;  %v349_v1 = vld [vmem:[%s2852_s9 + $0x8] sm:$0xff]  ;;  %v2771_v2 = vmov 0.0  }
  0x1b   : > { %542 = vst.msk [vmem:[#allocation2] sm:$0xff] %vm541_vm0, %v2771_v2  ;;  %543 = vst.msk [vmem:[#allocation2 + $0x8] sm:$0xff] %vm541_vm0, %v2771_v2  ;;  %v413_v3 = vrot.slane %v348_v0, 7  ;;  %v414_v4 = vrot.slane %v349_v1, 7  ;;  %v350_v5 = vld [vmem:[%s2852_s9 + $0x10] sm:$0xff]  ;;  %v351_v6 = vld [vmem:[%s2852_s9 + $0x18] sm:$0xff] }
  0x1c   : > { %594 = vst.msk [vmem:[#allocation2 + $0x198] sm:$0xff] %vm541_vm0, %v2771_v2  ;;  %595 = vst.msk [vmem:[#allocation2 + $0x1a0] sm:$0xff] %vm541_vm0, %v2771_v2  ;;  %v352_v7 = vld [vmem:[%s2852_s9 + $0x20] sm:$0xff]  ;;  %v416_v8 = vrot.slane %v350_v5, 7  ;;  %v417_v9 = vrot.slane %v351_v6, 7  ;;  %v353_v11 = vld [vmem:[%s2852_s9 + $0x28] sm:$0xff] }
  0x1d   : > { %545 = vst.msk [vmem:[#allocation2 + $0x10] sm:$0x3] %vm544_vm1, %v2771_v2  ;;  %596 = vst.msk [vmem:[#allocation2 + $0x1a8] sm:$0x3] %vm544_vm1, %v2771_v2  ;;  %v419_v10 = vrot.slane %v352_v7, 7  ;;  %v354_v12 = vld [vmem:[%s2852_s9 + $0x30] sm:$0xff]  ;;  %v415_v15 = vsel %vm412_vm2, %v413_v3, %v414_v4 }
  0x1e   : > { %v355_v13 = vld [vmem:[%s2852_s9 + $0x38] sm:$0xff]  ;;  %v509_v14 = vsel %vm412_vm2, 0.0, %v413_v3  ;;  %v525_v16 = vsel %vm412_vm2, %v414_v4, 0.0  ;;  %v420_v17 = vrot.slane %v353_v11, 7  ;;  %v356_v18 = vld [vmem:[%s2852_s9 + $0x40] sm:$0xff]  ;;  %v357_v19 = vld [vmem:[%s2852_s9 + $0x48] sm:$0xff]  ;;  %v418_v22 = vsel %vm412_vm2, %v416_v8, %v417_v9 }
  0x1f   : > { %v358_v20 = vld [vmem:[%s2852_s9 + $0x50] sm:$0xff]  ;;  %546 = vst.msk [vmem:[#allocation2 + $0x18] sm:$0xff] %vm541_vm0, %v509_v14  ;;  %547 = vst.msk [vmem:[#allocation2 + $0x20] sm:$0xff] %vm541_vm0, %v415_v15  ;;  %v510_v21 = vsel %vm412_vm2, 0.0, %v416_v8  ;;  %v526_v23 = vsel %vm412_vm2, %v417_v9, 0.0  ;;  %v511_v24 = vsel %vm412_vm2, 0.0, %v419_v10 }
  0x20   : > { %548 = vst.msk [vmem:[#allocation2 + $0x28] sm:$0x3] %vm544_vm1, %v525_v16  ;;  %v359_v25 = vld [vmem:[%s2852_s9 + $0x58] sm:$0xff]  ;;  %v360_v26 = vld [vmem:[%s2852_s9 + $0x60] sm:$0xff]  ;;  %551 = vst.msk [vmem:[#allocation2 + $0x40] sm:$0x3] %vm544_vm1, %v526_v23  ;;  %v421_v27 = vsel %vm412_vm2, %v419_v10, %v420_v17 }
  0x21   : > { %549 = vst.msk [vmem:[#allocation2 + $0x30] sm:$0xff] %vm541_vm0, %v510_v21  ;;  %550 = vst.msk [vmem:[#allocation2 + $0x38] sm:$0xff] %vm541_vm0, %v418_v22  ;;  %v527_v28 = vsel %vm412_vm2, %v420_v17, 0.0  ;;  %v422_v29 = vrot.slane %v354_v12, 7  ;;  %v423_v30 = vrot.slane %v355_v13, 7  ;;  %v425_v31 = vrot.slane %v356_v18, 7 }
  0x22   : > { %552 = vst.msk [vmem:[#allocation2 + $0x48] sm:$0xff] %vm541_vm0, %v511_v24  ;;  %553 = vst.msk [vmem:[#allocation2 + $0x50] sm:$0xff] %vm541_vm0, %v421_v27  ;;  %v426_v32 = vrot.slane %v357_v19, 7  ;;  %v428_v33 = vrot.slane %v358_v20, 7  ;;  %v429_v34 = vrot.slane %v359_v25, 7  ;;  %v361_v35 = vld [vmem:[%s2852_s9 + $0x68] sm:$0xff] }
  0x23   : > { %554 = vst.msk [vmem:[#allocation2 + $0x58] sm:$0x3] %vm544_vm1, %v527_v28  ;;  %v362_v36 = vld [vmem:[%s2852_s9 + $0x70] sm:$0xff]  ;;  %v512_v37 = vsel %vm412_vm2, 0.0, %v422_v29  ;;  %v424_v38 = vsel %vm412_vm2, %v422_v29, %v423_v30  ;;  %v528_v39 = vsel %vm412_vm2, %v423_v30, 0.0  ;;  %v431_v40 = vrot.slane %v360_v26, 7 }
  0x24   : > { %v363_v41 = vld [vmem:[%s2852_s9 + $0x78] sm:$0xff]  ;;  %v364_v42 = vld [vmem:[%s2852_s9 + $0x80] sm:$0xff]  ;;  %v365_v43 = vld [vmem:[%s2852_s9 + $0x88] sm:$0xff]  ;;  %555 = vst.msk [vmem:[#allocation2 + $0x60] sm:$0xff] %vm541_vm0, %v512_v37  ;;  %v513_v44 = vsel %vm412_vm2, 0.0, %v425_v31  ;;  %v427_v45 = vsel %vm412_vm2, %v425_v31, %v426_v32  ;;  %v529_v46 = vsel %vm412_vm2, %v426_v32, 0.0  ;;  %v430_v50 = vsel %vm412_vm2, %v428_v33, %v429_v34 }
  0x25   : > { %556 = vst.msk [vmem:[#allocation2 + $0x68] sm:$0xff] %vm541_vm0, %v424_v38  ;;  %v514_v47 = vsel %vm412_vm2, 0.0, %v428_v33  ;;  %v366_v48 = vld [vmem:[%s2852_s9 + $0x90] sm:$0xff]  ;;  %v367_v49 = vld [vmem:[%s2852_s9 + $0x98] sm:$0xff]  ;;  %558 = vst.msk [vmem:[#allocation2 + $0x78] sm:$0xff] %vm541_vm0, %v513_v44  ;;  %v530_v51 = vsel %vm412_vm2, %v429_v34, 0.0 }
  0x26   : > { %557 = vst.msk [vmem:[#allocation2 + $0x70] sm:$0x3] %vm544_vm1, %v528_v39  ;;  %560 = vst.msk [vmem:[#allocation2 + $0x88] sm:$0x3] %vm544_vm1, %v529_v46  ;;  %v515_v52 = vsel %vm412_vm2, 0.0, %v431_v40  ;;  %v432_v53 = vrot.slane %v361_v35, 7 }
  0x27   : > { %559 = vst.msk [vmem:[#allocation2 + $0x80] sm:$0xff] %vm541_vm0, %v427_v45  ;;  %561 = vst.msk [vmem:[#allocation2 + $0x90] sm:$0xff] %vm541_vm0, %v514_v47  ;;  %v434_v54 = vrot.slane %v362_v36, 7  ;;  %v435_v55 = vrot.slane %v363_v41, 7  ;;  %v437_v56 = vrot.slane %v364_v42, 7  ;;  %v438_v57 = vrot.slane %v365_v43, 7 }
  0x28   : > { %562 = vst.msk [vmem:[#allocation2 + $0x98] sm:$0xff] %vm541_vm0, %v430_v50  ;;  %564 = vst.msk [vmem:[#allocation2 + $0xa8] sm:$0xff] %vm541_vm0, %v515_v52  ;;  %v368_v58 = vld [vmem:[%s2852_s9 + $0xa0] sm:$0xff]  ;;  %v433_v59 = vsel %vm412_vm2, %v431_v40, %v432_v53  ;;  %v531_v60 = vsel %vm412_vm2, %v432_v53, 0.0  ;;  %v440_v61 = vrot.slane %v366_v48, 7  ;;  %v441_v62 = vrot.slane %v367_v49, 7 }
  0x29   : > { %563 = vst.msk [vmem:[#allocation2 + $0xa0] sm:$0x3] %vm544_vm1, %v530_v51  ;;  %v369_v63 = vld [vmem:[%s2852_s9 + $0xa8] sm:$0xff]  ;;  %v370_v0 = vld [vmem:[%s2852_s9 + $0xb0] sm:$0xff]  ;;  %v371_v1 = vld [vmem:[%s2852_s9 + $0xb8] sm:$0xff]  ;;  %v516_v2 = vsel %vm412_vm2, 0.0, %v434_v54  ;;  %v436_v3 = vsel %vm412_vm2, %v434_v54, %v435_v55  ;;  %v439_v9 = vsel %vm412_vm2, %v437_v56, %v438_v57 }
  0x2a   : > { %565 = vst.msk [vmem:[#allocation2 + $0xb0] sm:$0xff] %vm541_vm0, %v433_v59  ;;  %v532_v4 = vsel %vm412_vm2, %v435_v55, 0.0  ;;  %v517_v5 = vsel %vm412_vm2, 0.0, %v437_v56  ;;  %v372_v6 = vld [vmem:[%s2852_s9 + $0xc0] sm:$0xff]  ;;  %v373_v7 = vld [vmem:[%s2852_s9 + $0xc8] sm:$0xff]  ;;  %v374_v8 = vld [vmem:[%s2852_s9 + $0xd0] sm:$0xff]  ;;  %v442_v12 = vsel %vm412_vm2, %v440_v61, %v441_v62 }
  0x2b   : > { %566 = vst.msk [vmem:[#allocation2 + $0xb8] sm:$0x3] %vm544_vm1, %v531_v60  ;;  %569 = vst.msk [vmem:[#allocation2 + $0xd0] sm:$0x3] %vm544_vm1, %v532_v4  ;;  %v533_v10 = vsel %vm412_vm2, %v438_v57, 0.0  ;;  %v518_v11 = vsel %vm412_vm2, 0.0, %v440_v61 }
  0x2c   : > { %567 = vst.msk [vmem:[#allocation2 + $0xc0] sm:$0xff] %vm541_vm0, %v516_v2  ;;  %568 = vst.msk [vmem:[#allocation2 + $0xc8] sm:$0xff] %vm541_vm0, %v436_v3  ;;  %v534_v13 = vsel %vm412_vm2, %v441_v62, 0.0  ;;  %v443_v14 = vrot.slane %v368_v58, 7  ;;  %v444_v15 = vrot.slane %v369_v63, 7  ;;  %v446_v16 = vrot.slane %v370_v0, 7 }
  0x2d   : > { %570 = vst.msk [vmem:[#allocation2 + $0xd8] sm:$0xff] %vm541_vm0, %v517_v5  ;;  %571 = vst.msk [vmem:[#allocation2 + $0xe0] sm:$0xff] %vm541_vm0, %v439_v9  ;;  %v447_v17 = vrot.slane %v371_v1, 7  ;;  %v449_v18 = vrot.slane %v372_v6, 7  ;;  %v450_v19 = vrot.slane %v373_v7, 7  ;;  %v452_v20 = vrot.slane %v374_v8, 7 }
  0x2e   : > { %572 = vst.msk [vmem:[#allocation2 + $0xe8] sm:$0x3] %vm544_vm1, %v533_v10  ;;  %575 = vst.msk [vmem:[#allocation2 + $0x100] sm:$0x3] %vm544_vm1, %v534_v13  ;;  %v375_v21 = vld [vmem:[%s2852_s9 + $0xd8] sm:$0xff]  ;;  %v376_v22 = vld [vmem:[%s2852_s9 + $0xe0] sm:$0xff]  ;;  %v445_v24 = vsel %vm412_vm2, %v443_v14, %v444_v15 }
  0x2f   : > { %573 = vst.msk [vmem:[#allocation2 + $0xf0] sm:$0xff] %vm541_vm0, %v518_v11  ;;  %574 = vst.msk [vmem:[#allocation2 + $0xf8] sm:$0xff] %vm541_vm0, %v442_v12  ;;  %v519_v23 = vsel %vm412_vm2, 0.0, %v443_v14  ;;  %v535_v25 = vsel %vm412_vm2, %v444_v15, 0.0  ;;  %v520_v26 = vsel %vm412_vm2, 0.0, %v446_v16  ;;  %v377_v27 = vld [vmem:[%s2852_s9 + $0xe8] sm:$0xff]  ;;  %v448_v30 = vsel %vm412_vm2, %v446_v16, %v447_v17 }
  0x30   : > { %v378_v28 = vld [vmem:[%s2852_s9 + $0xf0] sm:$0xff]  ;;  %v379_v29 = vld [vmem:[%s2852_s9 + $0xf8] sm:$0xff]  ;;  %576 = vst.msk [vmem:[#allocation2 + $0x108] sm:$0xff] %vm541_vm0, %v519_v23  ;;  %577 = vst.msk [vmem:[#allocation2 + $0x110] sm:$0xff] %vm541_vm0, %v445_v24  ;;  %v536_v31 = vsel %vm412_vm2, %v447_v17, 0.0  ;;  %v521_v32 = vsel %vm412_vm2, 0.0, %v449_v18  ;;  %v451_v33 = vsel %vm412_vm2, %v449_v18, %v450_v19 }
  0x31   : > { %578 = vst.msk [vmem:[#allocation2 + $0x118] sm:$0x3] %vm544_vm1, %v535_v25  ;;  %581 = vst.msk [vmem:[#allocation2 + $0x130] sm:$0x3] %vm544_vm1, %v536_v31  ;;  %v537_v34 = vsel %vm412_vm2, %v450_v19, 0.0  ;;  %v522_v35 = vsel %vm412_vm2, 0.0, %v452_v20 }
  0x32   : > { %579 = vst.msk [vmem:[#allocation2 + $0x120] sm:$0xff] %vm541_vm0, %v520_v26  ;;  %580 = vst.msk [vmem:[#allocation2 + $0x128] sm:$0xff] %vm541_vm0, %v448_v30  ;;  %v453_v36 = vrot.slane %v375_v21, 7  ;;  %v455_v37 = vrot.slane %v376_v22, 7  ;;  %v456_v38 = vrot.slane %v377_v27, 7  ;;  %v458_v39 = vrot.slane %v378_v28, 7 }
  0x33   : > { %582 = vst.msk [vmem:[#allocation2 + $0x138] sm:$0xff] %vm541_vm0, %v521_v32  ;;  %583 = vst.msk [vmem:[#allocation2 + $0x140] sm:$0xff] %vm541_vm0, %v451_v33  ;;  %v459_v40 = vrot.slane %v379_v29, 7 }
  0x34   : > { %584 = vst.msk [vmem:[#allocation2 + $0x148] sm:$0x3] %vm544_vm1, %v537_v34  ;;  %v454_v41 = vsel %vm412_vm2, %v452_v20, %v453_v36  ;;  %v538_v42 = vsel %vm412_vm2, %v453_v36, 0.0  ;;  %v523_v43 = vsel %vm412_vm2, 0.0, %v455_v37  ;;  %v457_v44 = vsel %vm412_vm2, %v455_v37, %v456_v38 }
  0x35   : > { %585 = vst.msk [vmem:[#allocation2 + $0x150] sm:$0xff] %vm541_vm0, %v522_v35  ;;  %586 = vst.msk [vmem:[#allocation2 + $0x158] sm:$0xff] %vm541_vm0, %v454_v41  ;;  %v539_v45 = vsel %vm412_vm2, %v456_v38, 0.0  ;;  %v524_v46 = vsel %vm412_vm2, 0.0, %v458_v39  ;;  %v460_v47 = vsel %vm412_vm2, %v458_v39, %v459_v40  ;;  %v540_v48 = vsel %vm412_vm2, %v459_v40, 0.0 }
  0x36   : > { %587 = vst.msk [vmem:[#allocation2 + $0x160] sm:$0x3] %vm544_vm1, %v538_v42  ;;  %590 = vst.msk [vmem:[#allocation2 + $0x178] sm:$0x3] %vm544_vm1, %v539_v45 }
  0x37   : > { %588 = vst.msk [vmem:[#allocation2 + $0x168] sm:$0xff] %vm541_vm0, %v523_v43  ;;  %589 = vst.msk [vmem:[#allocation2 + $0x170] sm:$0xff] %vm541_vm0, %v457_v44 }
  0x38   : > { %591 = vst.msk [vmem:[#allocation2 + $0x180] sm:$0xff] %vm541_vm0, %v524_v46  ;;  %592 = vst.msk [vmem:[#allocation2 + $0x188] sm:$0xff] %vm541_vm0, %v460_v47 }
  0x39   : > { %593 = vst.msk [vmem:[#allocation2 + $0x190] sm:$0x3] %vm544_vm1, %v540_v48 }
  0x3a PF: > { %s2174_s26 = smul.u32 192, %s2753_s21  ;;  %s2772_s21 = smov 8   ;;  %vm1451_vm3 = vcmask 1041408   ;;  %v2728_v15 = vld [vmem:[%s3566_s1 + $0x10] ss:$0 sps:$4 sm:$0x33]  }
  0x3b   : > { %s2773_s9 = smov 4   ;;  %s2774_s10 = smov 12   ;;  %v2729_v16 = vld [vmem:[%s3566_s1 + $0x8] sm:$0xff]   ;;  %2357 = vmatprep.subr.msk.bf16.mxu0 %vm1451_vm3, %v2728_v15  ;;  %v1453_v17 = vsel %vm1451_vm3, %v2728_v15, 0  ;;  %v2730_v19 = vld [vmem:[%s3566_s1] sm:$0xff]   ;;  %vm1262_vm4 = vcmask 31744  }
  0x3c   : > { %s3011_s27 = scalar_lea.vmem [#allocation2], %s2174_s26  ;;  %s2775_s11 = smov 16   ;;  %2318 = vmatpush3.bf16.msra.mxu0 %v1453_v17  ;;  %v1560_v46 = vld [vmem:[%s3567_s2] sm:$0x3]  ;;  %vm1279_vm5 = vcmask 64512   ;;  %vm1296_vm6 = vcmask 97280  }
  0x3d   : > { %s2776_s12 = smov 20   ;;  %s2777_s18 = smov 24   ;;  %2319 = vmatprep.subr.bf16.mxu0 %v2729_v16  ;;  %2358 = vmatprep.subr.msk.bf16.mxu1 %vm1451_vm3, %v1560_v46  ;;  %v1586_v48 = vsel %vm1451_vm3, %v1560_v46, 0  ;;  %vm1313_vm7 = vcmask 130048   ;;  %vm1330_vm8 = vcmask 162816   ;;  %vm1347_vm9 = vcmask 195584  }
  0x3e   : > { %s2778_s29 = smov 28   ;;  %s2779_s30 = smov 32   ;;  %2340 = vmatpush3.bf16.msra.mxu1 %v1586_v48  ;;  %vm1364_vm10 = vcmask 228352   ;;  %vm1381_vm11 = vcmask 261120   ;;  %vm1426_vm12 = vcmask 293888   ;;  %vm1807_vm13 = vcmask 1040384  }
  0x3f   : > { %vm1809_vm14 = vcmask 58368  }
  0x40   : > { %v632_v49 = vld [vmem:[%s3011_s27 + $0x2] sm:$0xff]  ;;  %v633_v50 = vld [vmem:[%s3011_s27 + $0xa] sm:$0xff]  ;;  %v634_v54 = vld [vmem:[%s3011_s27 + $0x1a] sm:$0xff]  ;;  %2320 = vmatpush3.bf16.msra.mxu0 %v2729_v16 }
  0x41   : > { %v616_v51 = vld [vmem:[%s3011_s27 + $0x1] sm:$0xff]  ;;  %v2418_v52 = vpack.i.bf16 %v633_v50, %v632_v49  ;;  %v617_v53 = vld [vmem:[%s3011_s27 + $0x9] sm:$0xff]  ;;  %v3020_v57 = vld [vmem:[%s3011_s27 + $0x19] sm:$0xff]  ;;  %2321 = vmatprep.subr.bf16.mxu0 %v2730_v19 }
  0x42   : > { %v635_v55 = vld [vmem:[%s3011_s27 + $0x22] sm:$0xff]  ;;  %v2408_v56 = vpack.i.bf16 %v617_v53, %v616_v51  ;;  %v3027_v60 = vld [vmem:[%s3011_s27 + $0x30] sm:$0xff]  ;;  %v3033_v62 = vld [vmem:[%s3011_s27 + $0x38] sm:$0xff] }
  0x43   : > { %v3023_v58 = vld [vmem:[%s3011_s27 + $0x21] sm:$0xff]  ;;  %2419 = vrot.lane.b32.xlu1 %v2418_v52, %s2772_s21  ;;  %v2423_v59 = vpack.i.bf16 %v635_v55, %v634_v54  ;;  %v3036_v63 = vld [vmem:[%s3011_s27 + $0x31] sm:$0xff]  ;;  %v3039_v0 = vld [vmem:[%s3011_s27 + $0x39] sm:$0xff]  ;;  %v2433_v4 = vpack.i.bf16 %v3033_v62, %v3027_v60 }
  0x44   : > { %2409 = vrot.lane.b32.xlu0 %v2408_v56, %s2773_s9  ;;  %v2413_v61 = vpack.i.bf16 %v3023_v58, %v3020_v57  ;;  %v3042_v1 = vld [vmem:[%s3011_s27 + $0x18] sm:$0xff]  ;;  %v3045_v2 = vld [vmem:[%s3011_s27 + $0x20] sm:$0xff]  ;;  %v1553_v3 = vpack.c.bf16 %v3039_v0, %v3036_v63  ;;  %v2443_v6 = vpack.i.bf16 %v3039_v0, %v3036_v63  ;;  %v3064_v10 = vld [vmem:[%s3011_s27 + $0x48] sm:$0xff]  ;;  %2322 = vmatpush3.bf16.msra.mxu0 %v2730_v19 }
  0x45   : > { %v2428_v5 = vpack.i.bf16 %v3045_v2, %v3042_v1  ;;  %v2211_v7 = vld [vmem:[%s3011_s27 + $0x32] sm:$0xff]  ;;  %v2212_v8 = vld [vmem:[%s3011_s27 + $0x3a] sm:$0xff]  ;;  %v3073_v13 = vld [vmem:[%s3011_s27 + $0x49] sm:$0xff]  ;;  %v1552_v52 = vpack.c.bf16 %v3023_v58, %v3020_v57 }
  0x46   : > { %v2453_v9 = vpack.i.bf16 %v2212_v8, %v2211_v7  ;;  %v3067_v11 = vld [vmem:[%s3011_s27 + $0x50] sm:$0xff]  ;;  %v3103_v23 = vld [vmem:[%s3011_s27 + $0x60] sm:$0xff]  ;;  %v3106_v24 = vld [vmem:[%s3011_s27 + $0x68] sm:$0xff] }
  0x47   : > { %2424 = vrot.lane.b32.xlu1 %v2423_v59, %s2772_s21  ;;  %v2463_v12 = vpack.i.bf16 %v3067_v11, %v3064_v10  ;;  %v3077_v14 = vld [vmem:[%s3011_s27 + $0x51] sm:$0xff]  ;;  %v2513_v25 = vpack.i.bf16 %v3106_v24, %v3103_v23  ;;  %v3113_v26 = vld [vmem:[%s3011_s27 + $0x61] sm:$0xff]  ;;  %v3116_v27 = vld [vmem:[%s3011_s27 + $0x69] sm:$0xff]  ;;  %2341 = vmatprep.mubr.msk.bf16.mxu1 %vm1262_vm4, %v1552_v52 }
  0x48   : > { %2414 = vrot.lane.b32.xlu0 %v2413_v61, %s2773_s9  ;;  %v2473_v18 = vpack.i.bf16 %v3077_v14, %v3073_v13  ;;  %v2261_v20 = vld [vmem:[%s3011_s27 + $0x4a] sm:$0xff]  ;;  %v2262_v21 = vld [vmem:[%s3011_s27 + $0x52] sm:$0xff]  ;;  %v2523_v28 = vpack.i.bf16 %v3116_v27, %v3113_v26  ;;  %v2215_v29 = vld [vmem:[%s3011_s27 + $0x62] sm:$0xff]  ;;  %v1554_v49 = vpack.c.bf16 %v3077_v14, %v3073_v13  ;;  %2342 = vmatmul.mubr.msk.bf16.vlgmr.msra.gmra.mxu1 %vm1262_vm4, %v1553_v3 }
  0x49   : > { %v2488_v22 = vpack.i.bf16 %v2262_v21, %v2261_v20  ;;  %v2216_v30 = vld [vmem:[%s3011_s27 + $0x6a] sm:$0xff]  ;;  %v3127_v32 = vld [vmem:[%s3011_s27 + $0x78] sm:$0xff]  ;;  %v3130_v33 = vld [vmem:[%s3011_s27 + $0x80] sm:$0xff]  ;;  %v1555_v56 = vpack.c.bf16 %v3116_v27, %v3113_v26 }
  0x4a   : > { %v2533_v31 = vpack.i.bf16 %v2216_v30, %v2215_v29  ;;  %v2543_v34 = vpack.i.bf16 %v3130_v33, %v3127_v32  ;;  %v2249_v35 = vld [vmem:[%s3011_s27 + $0x79] sm:$0xff]  ;;  %v2250_v36 = vld [vmem:[%s3011_s27 + $0x81] sm:$0xff]  ;;  %v3149_v41 = vld [vmem:[%s3011_s27 + $0x90] sm:$0xff]  ;;  %2345 = vmatprep.mubr.msk.bf16.mxu1 %vm1262_vm4, %v1554_v49 }
  0x4b   : > { %2434 = vrot.lane.b32.xlu1 %v2433_v4, %s2774_s10  ;;  %v2553_v37 = vpack.i.bf16 %v2250_v36, %v2249_v35  ;;  %v2265_v38 = vld [vmem:[%s3011_s27 + $0x7a] sm:$0xff]  ;;  %v2266_v39 = vld [vmem:[%s3011_s27 + $0x82] sm:$0xff]  ;;  %v2203_v44 = vld [vmem:[%s3011_s27 + $0x91] sm:$0xff]  ;;  %v1556_v58 = vpack.c.bf16 %v2250_v36, %v2249_v35 }
  0x4c   : > { %2429 = vrot.lane.b32.xlu0 %v2428_v5, %s2774_s10  ;;  %v2568_v40 = vpack.i.bf16 %v2266_v39, %v2265_v38  ;;  %v3152_v42 = vld [vmem:[%s3011_s27 + $0x98] sm:$0xff]  ;;  %v3181_v54 = vld [vmem:[%s3011_s27 + $0xa8] sm:$0xff]  ;;  %v3184_v55 = vld [vmem:[%s3011_s27 + $0xb0] sm:$0xff] }
  0x4d   : > { %v2593_v43 = vpack.i.bf16 %v3152_v42, %v3149_v41  ;;  %v2204_v45 = vld [vmem:[%s3011_s27 + $0x99] sm:$0xff]  ;;  %v2623_v57 = vpack.i.bf16 %v3184_v55, %v3181_v54  ;;  %v2207_v7 = vld [vmem:[%s3011_s27 + $0xc1] sm:$0xff]  ;;  %v2208_v8 = vld [vmem:[%s3011_s27 + $0xc9] sm:$0xff] }
  0x4e   : > { %v2603_v47 = vpack.i.bf16 %v2204_v45, %v2203_v44  ;;  %v2219_v50 = vld [vmem:[%s3011_s27 + $0x92] sm:$0xff]  ;;  %v2220_v51 = vld [vmem:[%s3011_s27 + $0x9a] sm:$0xff]  ;;  %v1557_v0 = vpack.c.bf16 %v2204_v45, %v2203_v44  ;;  %v2192_v13 = vld [vmem:[%s3011_s27 + $0xc8] sm:$0xff]  ;;  %v2683_v15 = vpack.i.bf16 %v2208_v8, %v2207_v7 }
  0x4f   : > { %2444 = vrot.lane.b32.xlu1 %v2443_v6, %s2775_s11  ;;  %v2613_v53 = vpack.i.bf16 %v2220_v51, %v2219_v50  ;;  %v2270_v5 = vld [vmem:[%s3011_s27 + $0xb2] sm:$0xff]  ;;  %v2223_v16 = vld [vmem:[%s3011_s27 + $0xc2] sm:$0xff]  ;;  %v2224_v17 = vld [vmem:[%s3011_s27 + $0xca] sm:$0xff] }
  0x50   : > { %2439 = vrot.lane.b32.xlu0 %v2413_v61, %s2775_s11  ;;  %v2254_v61 = vld [vmem:[%s3011_s27 + $0xb1] sm:$0xff]  ;;  %2346 = vmatmul.mubr.msk.bf16.gmra.mxu1 %vm1262_vm4, %v1555_v56  ;;  %v2242_v20 = vld [vmem:[%s3011_s27 + $0xe0] sm:$0xff]  ;;  %v601_v46 = vld [vmem:[%s3011_s27 + $0x8] sm:$0xff] }
  0x51   : > { %2349 = vmatprep.mubr.msk.bf16.mxu1 %vm1262_vm4, %v1556_v58  ;;  %v2241_v19 = vld [vmem:[%s3011_s27 + $0xd8] sm:$0xff]  ;;  %v2274_v30 = vld [vmem:[%s3011_s27 + $0xe2] sm:$0xff] }
  0x52   : > { %v2703_v21 = vpack.i.bf16 %v2242_v20, %v2241_v19  ;;  %v2273_v29 = vld [vmem:[%s3011_s27 + $0xda] sm:$0xff] }
  0x53   : > { %2454 = vrot.lane.b32.xlu1 %v2453_v9, %s2776_s12  ;;  %v2723_v35 = vpack.i.bf16 %v2274_v30, %v2273_v29  ;;  %v600_v45 = vld [vmem:[%s3011_s27] sm:$0xff] }
  0x54   : > { %2449 = vrot.lane.b32.xlu0 %v2423_v59, %s2776_s12  ;;  %v2253_v59 = vld [vmem:[%s3011_s27 + $0xa9] sm:$0xff] }
  0x55   : > { %v2633_v63 = vpack.i.bf16 %v2254_v61, %v2253_v59  ;;  %v1558_v3 = vpack.c.bf16 %v2254_v61, %v2253_v59 }
  0x57   : > { %2464 = vrot.lane.b32.xlu1 %v2463_v12, %s2777_s18 }
  0x58   : > { %2459 = vrot.lane.b32.xlu0 %v2433_v4, %s2777_s18  ;;  %v2269_v4 = vld [vmem:[%s3011_s27 + $0xaa] sm:$0xff]  ;;  %2350 = vmatmul.mubr.msk.bf16.gmra.mxu1 %vm1262_vm4, %v1557_v0 }
  0x59   : > { %2353 = vmatprep.mubr.msk.bf16.mxu1 %vm1262_vm4, %v1558_v3 }
  0x5b   : > { %2474 = vrot.lane.b32.xlu1 %v2473_v18, %s2778_s29 }
  0x5c   : > { %2469 = vrot.lane.b32.xlu0 %v2443_v6, %s2778_s29 }
  0x5f   : > { %2484 = vrot.lane.b32.xlu1 %v2443_v6, %s2773_s9  ;;  %v2648_v6 = vpack.i.bf16 %v2270_v5, %v2269_v4 }
  0x60   : > { %2479 = vrot.lane.b32.xlu0 %v2453_v9, %s2779_s30 }
  0x63   : > { %2494 = vrot.lane.b32.xlu1 %v2473_v18, %s2773_s9 }
  0x64   : > { %2489 = vrot.lane.b32.xlu0 %v2488_v22, %s2779_s30 }
  0x67   : > { %2504 = vrot.lane.b32.xlu1 %v2488_v22, %s2772_s21 }
  0x68   : > { %2499 = vrot.lane.b32.xlu0 %v2453_v9, %s2772_s21  ;;  %v1559_v9 = vpack.c.bf16 %v2208_v8, %v2207_v7 }
  0x6a   : > { %2354 = vmatmul.mubr.msk.bf16.gmra.mxu1 %vm1262_vm4, %v1559_v9 }
  0x6b   : > { %2514 = vrot.lane.b32.xlu1 %v2513_v25, %s2774_s10 }
  0x6c   : > { %2509 = vrot.lane.b32.xlu0 %v2463_v12, %s2774_s10  ;;  %v2191_v12 = vld [vmem:[%s3011_s27 + $0xc0] sm:$0xff] }
  0x6d   : > { %v2673_v14 = vpack.i.bf16 %v2192_v13, %v2191_v12 }
  0x6f   : > { %2524 = vrot.lane.b32.xlu1 %v2523_v28, %s2775_s11 }
  0x70   : > { %2519 = vrot.lane.b32.xlu0 %v2473_v18, %s2775_s11  ;;  %v2693_v18 = vpack.i.bf16 %v2224_v17, %v2223_v16 }
  0x73   : > { %2534 = vrot.lane.b32.xlu1 %v2533_v31, %s2776_s12 }
  0x74   : > { %2529 = vrot.lane.b32.xlu0 %v2488_v22, %s2776_s12  ;;  %v2257_v22 = vld [vmem:[%s3011_s27 + $0xd9] sm:$0xff] }
  0x77   : > { %2544 = vrot.lane.b32.xlu1 %v2543_v34, %s2777_s18 }
  0x78   : > { %2539 = vrot.lane.b32.xlu0 %v2513_v25, %s2777_s18  ;;  %v2258_v25 = vld [vmem:[%s3011_s27 + $0xe1] sm:$0xff] }
  0x7b   : > { %2554 = vrot.lane.b32.xlu1 %v2553_v37, %s2778_s29 }
  0x7c   : > { %2549 = vrot.lane.b32.xlu0 %v2523_v28, %s2778_s29 }
  0x7f   : > { %2564 = vrot.lane.b32.xlu1 %v2523_v28, %s2773_s9  ;;  %v2713_v28 = vpack.i.bf16 %v2258_v25, %v2257_v22 }
  0x80   : > { %2559 = vrot.lane.b32.xlu0 %v2533_v31, %s2779_s30 }
  0x83   : > { %2574 = vrot.lane.b32.xlu1 %v2553_v37, %s2773_s9 }
  0x84   : > { %2569 = vrot.lane.b32.xlu0 %v2568_v40, %s2779_s30 }
  0x87   : > { %2584 = vrot.lane.b32.xlu1 %v2568_v40, %s2772_s21 }
  0x88   : > { %2579 = vrot.lane.b32.xlu0 %v2533_v31, %s2772_s21 }
  0x8b   : > { %2594 = vrot.lane.b32.xlu1 %v2593_v43, %s2774_s10 }
  0x8c   : > { %2589 = vrot.lane.b32.xlu0 %v2543_v34, %s2774_s10 }
  0x8f   : > { %2604 = vrot.lane.b32.xlu1 %v2603_v47, %s2775_s11 }
  0x90   : > { %2599 = vrot.lane.b32.xlu0 %v2553_v37, %s2775_s11 }
  0x93   : > { %2614 = vrot.lane.b32.xlu1 %v2613_v53, %s2776_s12 }
  0x94   : > { %2609 = vrot.lane.b32.xlu0 %v2568_v40, %s2776_s12 }
  0x97   : > { %2624 = vrot.lane.b32.xlu1 %v2623_v57, %s2777_s18 }
  0x98   : > { %2619 = vrot.lane.b32.xlu0 %v2593_v43, %s2777_s18 }
  0x9b   : > { %2634 = vrot.lane.b32.xlu1 %v2633_v63, %s2778_s29 }
  0x9c   : > { %2629 = vrot.lane.b32.xlu0 %v2603_v47, %s2778_s29 }
  0x9f   : > { %2644 = vrot.lane.b32.xlu1 %v2603_v47, %s2773_s9 }
  0xa0   : > { %2639 = vrot.lane.b32.xlu0 %v2613_v53, %s2779_s30 }
  0xa3   : > { %2654 = vrot.lane.b32.xlu1 %v2633_v63, %s2773_s9 }
  0xa4   : > { %2649 = vrot.lane.b32.xlu0 %v2648_v6, %s2779_s30 }
  0xa7   : > { %2664 = vrot.lane.b32.xlu1 %v2648_v6, %s2772_s21 }
  0xa8   : > { %2659 = vrot.lane.b32.xlu0 %v2613_v53, %s2772_s21 }
  0xab   : > { %2674 = vrot.lane.b32.xlu1 %v2673_v14, %s2774_s10 }
  0xac   : > { %2669 = vrot.lane.b32.xlu0 %v2623_v57, %s2774_s10 }
  0xaf   : > { %2684 = vrot.lane.b32.xlu1 %v2683_v15, %s2775_s11 }
  0xb0   : > { %2679 = vrot.lane.b32.xlu0 %v2633_v63, %s2775_s11 }
  0xb3   : > { %2694 = vrot.lane.b32.xlu1 %v2693_v18, %s2776_s12 }
  0xb4   : > { %2689 = vrot.lane.b32.xlu0 %v2648_v6, %s2776_s12 }
  0xb5   : > { %v2420_v26 = vpop.permute.xlu1 %2419 }
  0xb6   : > { %v2410_v27 = vpop.permute.xlu0 %2409  ;;  %v2422_v50 = vunpack.i.h.bf16 %v2420_v26  ;;  %v2421_v51 = vunpack.i.l.bf16 %v2420_v26 }
  0xb7   : > { %2704 = vrot.lane.b32.xlu1 %v2703_v21, %s2777_s18  ;;  %v2412_v40 = vunpack.i.h.bf16 %v2410_v27  ;;  %v2411_v43 = vunpack.i.l.bf16 %v2410_v27 }
  0xb8   : > { %2699 = vrot.lane.b32.xlu0 %v2673_v14, %s2777_s18 }
  0xb9   : > { %v2425_v31 = vpop.permute.xlu1 %2424  ;;  %v1263_v52 = vsel %vm1262_vm4, %v600_v45, %v2411_v43  ;;  %v1264_v53 = vsel %vm1262_vm4, %v601_v46, %v2412_v40 }
  0xba   : > { %v2415_v34 = vpop.permute.xlu0 %2414  ;;  %v2427_v56 = vunpack.i.h.bf16 %v2425_v31  ;;  %v2426_v57 = vunpack.i.l.bf16 %v2425_v31  ;;  %v1280_v6 = vsel %vm1279_vm5, %v1263_v52, %v2421_v51  ;;  %v1281_v7 = vsel %vm1279_vm5, %v1264_v53, %v2422_v50 }
  0xbb   : > { %2714 = vrot.lane.b32.xlu1 %v2713_v28, %s2778_s29  ;;  %v2417_v47 = vunpack.i.h.bf16 %v2415_v34  ;;  %v2416_v48 = vunpack.i.l.bf16 %v2415_v34 }
  0xbc   : > { %2709 = vrot.lane.b32.xlu0 %v2683_v15, %s2778_s29 }
  0xbd   : > { %v2435_v36 = vpop.permute.xlu1 %2434  ;;  %v1265_v59 = vsel %vm1262_vm4, %v3042_v1, %v2416_v48  ;;  %v1266_v61 = vsel %vm1262_vm4, %v3045_v2, %v2417_v47 }
  0xbe   : > { %v2430_v37 = vpop.permute.xlu0 %2429  ;;  %v2437_v63 = vunpack.i.h.bf16 %v2435_v36  ;;  %v2436_v0 = vunpack.i.l.bf16 %v2435_v36  ;;  %v1282_v8 = vsel %vm1279_vm5, %v1265_v59, %v2426_v57  ;;  %v1283_v1 = vsel %vm1279_vm5, %v1266_v61, %v2427_v56 }
  0xbf   : > { %2724 = vrot.lane.b32.xlu1 %v2723_v35, %s2779_s30  ;;  %v2432_v4 = vunpack.i.h.bf16 %v2430_v37  ;;  %v2431_v5 = vunpack.i.l.bf16 %v2430_v37 }
  0xc0   : > { %2719 = vrot.lane.b32.xlu0 %v2693_v18, %s2779_s30  ;;  %v1299_v13 = vsel %vm1296_vm6, %v1282_v8, %v2436_v0  ;;  %v1300_v14 = vsel %vm1296_vm6, %v1283_v1, %v2437_v63 }
  0xc1   : > { %v3236_v38 = vpop.permute.xlu1 %2444  ;;  %v1297_v18 = vsel %vm1296_vm6, %v1280_v6, %v2431_v5  ;;  %v1298_v19 = vsel %vm1296_vm6, %v1281_v7, %v2432_v4 }
  0xc2   : > { %v2440_v39 = vpop.permute.xlu0 %2439  ;;  %v2447_v22 = vunpack.i.h.bf16 %v3236_v38  ;;  %v2446_v25 = vunpack.i.l.bf16 %v3236_v38 }
  0xc3   : > { %v2442_v9 = vunpack.i.h.bf16 %v2440_v39  ;;  %v2441_v12 = vunpack.i.l.bf16 %v2440_v39 }
  0xc4   : > { %v1316_v50 = vsel %vm1313_vm7, %v1299_v13, %v2446_v25  ;;  %v1317_v51 = vsel %vm1313_vm7, %v1300_v14, %v2447_v22 }
  0xc5   : > { %v3238_v44 = vpop.permute.xlu1 %2454  ;;  %v1314_v28 = vsel %vm1313_vm7, %v1297_v18, %v2441_v12  ;;  %v1315_v29 = vsel %vm1313_vm7, %v1298_v19, %v2442_v9 }
  0xc6   : > { %v2450_v49 = vpop.permute.xlu0 %2449  ;;  %v2457_v30 = vunpack.i.h.bf16 %v3238_v44  ;;  %v2456_v31 = vunpack.i.l.bf16 %v3238_v44 }
  0xc7   : > { %v2452_v15 = vunpack.i.h.bf16 %v2450_v49  ;;  %v2451_v16 = vunpack.i.l.bf16 %v2450_v49 }
  0xc8   : > { %v1333_v57 = vsel %vm1330_vm8, %v1316_v50, %v2456_v31 }
  0xc9   : > { %v3244_v58 = vpop.permute.xlu1 %2464  ;;  %v1331_v35 = vsel %vm1330_vm8, %v1314_v28, %v2451_v16  ;;  %v1332_v36 = vsel %vm1330_vm8, %v1315_v29, %v2452_v15 }
  0xca   : > { %v2460_v3 = vpop.permute.xlu0 %2459  ;;  %v2467_v37 = vunpack.i.h.bf16 %v3244_v58  ;;  %v2466_v39 = vunpack.i.l.bf16 %v3244_v58  ;;  %v1334_v58 = vsel %vm1330_vm8, %v1317_v51, %v2457_v30 }
  0xcb   : > { %v2462_v20 = vunpack.i.h.bf16 %v2460_v3  ;;  %v2461_v21 = vunpack.i.l.bf16 %v2460_v3 }
  0xcc   : > { %v1350_v63 = vsel %vm1347_vm9, %v1333_v57, %v2466_v39  ;;  %v1351_v0 = vsel %vm1347_vm9, %v1334_v58, %v2467_v37 }
  0xcd   : > { %v2475_v2 = vpop.permute.xlu1 %2474  ;;  %v1348_v40 = vsel %vm1347_vm9, %v1331_v35, %v2461_v21  ;;  %v1349_v43 = vsel %vm1347_vm9, %v1332_v36, %v2462_v20 }
  0xce   : > { %v2470_v17 = vpop.permute.xlu0 %2469  ;;  %v2477_v47 = vunpack.i.h.bf16 %v2475_v2  ;;  %v2476_v48 = vunpack.i.l.bf16 %v2475_v2 }
  0xcf   : > { %v2472_v26 = vunpack.i.h.bf16 %v2470_v17  ;;  %v2471_v27 = vunpack.i.l.bf16 %v2470_v17 }
  0xd0   : > { %v1367_v5 = vsel %vm1364_vm10, %v1350_v63, %v2476_v48  ;;  %v1368_v6 = vsel %vm1364_vm10, %v1351_v0, %v2477_v47 }
  0xd1   : > { %v2485_v34 = vpop.permute.xlu1 %2484  ;;  %v1365_v44 = vsel %vm1364_vm10, %v1348_v40, %v2471_v27  ;;  %v1366_v49 = vsel %vm1364_vm10, %v1349_v43, %v2472_v26 }
  0xd2   : > { %v2480_v38 = vpop.permute.xlu0 %2479  ;;  %v2487_v20 = vunpack.i.h.bf16 %v2485_v34  ;;  %v2486_v21 = vunpack.i.l.bf16 %v2485_v34 }
  0xd3   : > { %v2482_v45 = vunpack.i.h.bf16 %v2480_v38  ;;  %v2481_v46 = vunpack.i.l.bf16 %v2480_v38 }
  0xd4   : > { %v1267_v38 = vsel %vm1262_vm4, %v3027_v60, %v2486_v21  ;;  %v1268_v34 = vsel %vm1262_vm4, %v3033_v62, %v2487_v20 }
  0xd5   : > { %v2495_v52 = vpop.permute.xlu1 %2494  ;;  %v1382_v53 = vsel %vm1381_vm11, %v1365_v44, %v2481_v46  ;;  %v1383_v56 = vsel %vm1381_vm11, %v1366_v49, %v2482_v45 }
  0xd6   : > { %v2490_v59 = vpop.permute.xlu0 %2489  ;;  %v1398_v61 = vpack.c.bf16 %v1383_v56, %v1382_v53  ;;  %v2497_v18 = vunpack.i.h.bf16 %v2495_v52  ;;  %v2496_v19 = vunpack.i.l.bf16 %v2495_v52 }
  0xd7   : > { %v2492_v3 = vunpack.i.h.bf16 %v2490_v59  ;;  %v2491_v4 = vunpack.i.l.bf16 %v2490_v59 }
  0xd8   : > { %2323 = vmatprep.mubr.msk.bf16.mxu0 %vm1426_vm12, %v1398_v61  ;;  %v1269_v35 = vsel %vm1262_vm4, %v3064_v10, %v2496_v19  ;;  %v1270_v36 = vsel %vm1262_vm4, %v3067_v11, %v2497_v18 }
  0xd9   : > { %v1384_v7 = vsel %vm1381_vm11, %v1367_v5, %v2491_v4  ;;  %v1385_v8 = vsel %vm1381_vm11, %v1368_v6, %v2492_v3  ;;  %v2505_v1 = vpop.permute.xlu1 %2504 }
  0xda   : > { %v1399_v9 = vpack.c.bf16 %v1385_v8, %v1384_v7  ;;  %v2500_v12 = vpop.permute.xlu0 %2499  ;;  %v2507_v22 = vunpack.i.h.bf16 %v2505_v1  ;;  %v2506_v25 = vunpack.i.l.bf16 %v2505_v1 }
  0xdb   : > { %v2502_v26 = vunpack.i.h.bf16 %v2500_v12  ;;  %v2501_v27 = vunpack.i.l.bf16 %v2500_v12 }
  0xdc   : > { %2324 = vmatmul.mubr.msk.bf16.vlgmr.msra.gmra.mxu0 %vm1426_vm12, %v1399_v9  ;;  %v1286_v40 = vsel %vm1279_vm5, %v1269_v35, %v2506_v25  ;;  %v1287_v43 = vsel %vm1279_vm5, %v1270_v36, %v2507_v22 }
  0xdd   : > { %v2515_v2 = vpop.permute.xlu1 %2514  ;;  %v1284_v45 = vsel %vm1279_vm5, %v1267_v38, %v2501_v27  ;;  %v1285_v46 = vsel %vm1279_vm5, %v1268_v34, %v2502_v26 }
  0xde   : > { %v2510_v13 = vpop.permute.xlu0 %2509  ;;  %v2517_v29 = vunpack.i.h.bf16 %v2515_v2  ;;  %v2516_v30 = vunpack.i.l.bf16 %v2515_v2 }
  0xdf   : > { %v2512_v37 = vunpack.i.h.bf16 %v2510_v13  ;;  %v2511_v39 = vunpack.i.l.bf16 %v2510_v13 }
  0xe0   : > { %v1303_v11 = vsel %vm1296_vm6, %v1286_v40, %v2516_v30  ;;  %v1304_v44 = vsel %vm1296_vm6, %v1287_v43, %v2517_v29 }
  0xe1   : > { %v3286_v14 = vpop.permute.xlu1 %2524  ;;  %v1301_v62 = vsel %vm1296_vm6, %v1284_v45, %v2511_v39  ;;  %v1302_v51 = vsel %vm1296_vm6, %v1285_v46, %v2512_v37 }
  0xe2   : > { %v2520_v15 = vpop.permute.xlu0 %2519  ;;  %v2527_v56 = vunpack.i.h.bf16 %v3286_v14  ;;  %v2526_v57 = vunpack.i.l.bf16 %v3286_v14 }
  0xe3   : > { %v2522_v10 = vunpack.i.h.bf16 %v2520_v15  ;;  %v2521_v47 = vunpack.i.l.bf16 %v2520_v15 }
  0xe4   : > { %v1320_v18 = vsel %vm1313_vm7, %v1303_v11, %v2526_v57  ;;  %v1321_v19 = vsel %vm1313_vm7, %v1304_v44, %v2527_v56 }
  0xe5   : > { %v3288_v16 = vpop.permute.xlu1 %2534  ;;  %v1318_v61 = vsel %vm1313_vm7, %v1301_v62, %v2521_v47  ;;  %v1319_v63 = vsel %vm1313_vm7, %v1302_v51, %v2522_v10 }
  0xe6   : > { %v2530_v17 = vpop.permute.xlu0 %2529  ;;  %v2537_v0 = vunpack.i.h.bf16 %v3288_v16  ;;  %v2536_v3 = vunpack.i.l.bf16 %v3288_v16 }
  0xe7   : > { %v2532_v49 = vunpack.i.h.bf16 %v2530_v17  ;;  %v2531_v60 = vunpack.i.l.bf16 %v2530_v17 }
  0xe8   : > { %v1337_v25 = vsel %vm1330_vm8, %v1320_v18, %v2536_v3  ;;  %v1338_v26 = vsel %vm1330_vm8, %v1321_v19, %v2537_v0 }
  0xe9   : > { %v2545_v28 = vpop.permute.xlu1 %2544  ;;  %v1335_v5 = vsel %vm1330_vm8, %v1318_v61, %v2531_v60  ;;  %v1336_v6 = vsel %vm1330_vm8, %v1319_v63, %v2532_v49 }
  0xea   : > { %v2540_v31 = vpop.permute.xlu0 %2539  ;;  %v2547_v7 = vunpack.i.h.bf16 %v2545_v28  ;;  %v2546_v8 = vunpack.i.l.bf16 %v2545_v28 }
  0xeb   : > { %v2542_v52 = vunpack.i.h.bf16 %v2540_v31  ;;  %v2541_v53 = vunpack.i.l.bf16 %v2540_v31 }
  0xec   : > { %v1354_v29 = vsel %vm1347_vm9, %v1337_v25, %v2546_v8  ;;  %v1355_v30 = vsel %vm1347_vm9, %v1338_v26, %v2547_v7 }
  0xed   : > { %v2555_v48 = vpop.permute.xlu1 %2554  ;;  %v1352_v9 = vsel %vm1347_vm9, %v1335_v5, %v2541_v53  ;;  %v1353_v12 = vsel %vm1347_vm9, %v1336_v6, %v2542_v52 }
  0xee   : > { %v2550_v50 = vpop.permute.xlu0 %2549  ;;  %v2557_v14 = vunpack.i.h.bf16 %v2555_v48  ;;  %v2556_v15 = vunpack.i.l.bf16 %v2555_v48 }
  0xef   : > { %v2552_v58 = vunpack.i.h.bf16 %v2550_v50  ;;  %v2551_v59 = vunpack.i.l.bf16 %v2550_v50 }
  0xf0   : > { %v1371_v36 = vsel %vm1364_vm10, %v1354_v29, %v2556_v15  ;;  %v1372_v37 = vsel %vm1364_vm10, %v1355_v30, %v2557_v14 }
  0xf1   : > { %v2565_v4 = vpop.permute.xlu1 %2564  ;;  %v1369_v17 = vsel %vm1364_vm10, %v1352_v9, %v2551_v59  ;;  %v1370_v16 = vsel %vm1364_vm10, %v1353_v12, %v2552_v58 }
  0xf2   : > { %v2560_v1 = vpop.permute.xlu0 %2559  ;;  %v2567_v60 = vunpack.i.h.bf16 %v2565_v4  ;;  %v2566_v50 = vunpack.i.l.bf16 %v2565_v4 }
  0xf3   : > { %v2562_v2 = vunpack.i.h.bf16 %v2560_v1  ;;  %v2561_v13 = vunpack.i.l.bf16 %v2560_v1 }
  0xf4   : > { %v1271_v5 = vsel %vm1262_vm4, %v3103_v23, %v2566_v50  ;;  %v1272_v4 = vsel %vm1262_vm4, %v3106_v24, %v2567_v60 }
  0xf5   : > { %v1386_v20 = vsel %vm1381_vm11, %v1369_v17, %v2561_v13  ;;  %v1387_v21 = vsel %vm1381_vm11, %v1370_v16, %v2562_v2  ;;  %v2575_v22 = vpop.permute.xlu1 %2574 }
  0xf6   : > { %v1400_v27 = vpack.c.bf16 %v1387_v21, %v1386_v20  ;;  %v2570_v28 = vpop.permute.xlu0 %2569  ;;  %v2577_v44 = vunpack.i.h.bf16 %v2575_v22  ;;  %v2576_v49 = vunpack.i.l.bf16 %v2575_v22 }
  0xf7   : > { %v2572_v31 = vunpack.i.h.bf16 %v2570_v28  ;;  %v2571_v35 = vunpack.i.l.bf16 %v2570_v28 }
  0xf8   : > { %2327 = vmatprep.mubr.msk.bf16.mxu0 %vm1426_vm12, %v1400_v27  ;;  %v1273_v61 = vsel %vm1262_vm4, %v3127_v32, %v2576_v49  ;;  %v1274_v63 = vsel %vm1262_vm4, %v3130_v33, %v2577_v44 }
  0xf9   : > { %v1388_v39 = vsel %vm1381_vm11, %v1371_v36, %v2571_v35  ;;  %v1389_v38 = vsel %vm1381_vm11, %v1372_v37, %v2572_v31  ;;  %v2585_v34 = vpop.permute.xlu1 %2584 }
  0xfa   : > { %v1401_v40 = vpack.c.bf16 %v1389_v38, %v1388_v39  ;;  %v2580_v43 = vpop.permute.xlu0 %2579  ;;  %v2587_v62 = vunpack.i.h.bf16 %v2585_v34  ;;  %v2586_v51 = vunpack.i.l.bf16 %v2585_v34 }
  0xfb   : > { %v2582_v52 = vunpack.i.h.bf16 %v2580_v43  ;;  %v2581_v53 = vunpack.i.l.bf16 %v2580_v43 }
  0xfc   : > { %2328 = vmatmul.mubr.msk.bf16.gmra.mxu0 %vm1426_vm12, %v1401_v40  ;;  %v1290_v6 = vsel %vm1279_vm5, %v1273_v61, %v2586_v51  ;;  %v1291_v7 = vsel %vm1279_vm5, %v1274_v63, %v2587_v62 }
  0xfd   : > { %v2595_v45 = vpop.permute.xlu1 %2594  ;;  %v1288_v8 = vsel %vm1279_vm5, %v1271_v5, %v2581_v53  ;;  %v1289_v1 = vsel %vm1279_vm5, %v1272_v4, %v2582_v52 }
  0xfe   : > { %v2590_v46 = vpop.permute.xlu0 %2589  ;;  %v2597_v57 = vunpack.i.h.bf16 %v2595_v45  ;;  %v2596_v58 = vunpack.i.l.bf16 %v2595_v45 }
  0xff   : > { %v2592_v0 = vunpack.i.h.bf16 %v2590_v46  ;;  %v2591_v3 = vunpack.i.l.bf16 %v2590_v46 }
 0x100   : > { %v1307_v33 = vsel %vm1296_vm6, %v1290_v6, %v2596_v58  ;;  %v1308_v2 = vsel %vm1296_vm6, %v1291_v7, %v2597_v57 }
 0x101   : > { %v3332_v10 = vpop.permute.xlu1 %2604  ;;  %v1305_v24 = vsel %vm1296_vm6, %v1288_v8, %v2591_v3  ;;  %v1306_v15 = vsel %vm1296_vm6, %v1289_v1, %v2592_v0 }
 0x102   : > { %v2600_v47 = vpop.permute.xlu0 %2599  ;;  %v2607_v18 = vunpack.i.h.bf16 %v3332_v10  ;;  %v2606_v19 = vunpack.i.l.bf16 %v3332_v10 }
 0x103   : > { %v2602_v32 = vunpack.i.h.bf16 %v2600_v47  ;;  %v2601_v9 = vunpack.i.l.bf16 %v2600_v47 }
 0x104   : > { %v1324_v10 = vsel %vm1313_vm7, %v1307_v33, %v2606_v19  ;;  %v1325_v47 = vsel %vm1313_vm7, %v1308_v2, %v2607_v18 }
 0x105   : > { %v3334_v48 = vpop.permute.xlu1 %2614  ;;  %v1322_v22 = vsel %vm1313_vm7, %v1305_v24, %v2601_v9  ;;  %v1323_v25 = vsel %vm1313_vm7, %v1306_v15, %v2602_v32 }
 0x106   : > { %v2610_v11 = vpop.permute.xlu0 %2609  ;;  %v2617_v26 = vunpack.i.h.bf16 %v3334_v48  ;;  %v2616_v27 = vunpack.i.l.bf16 %v3334_v48 }
 0x107   : > { %v2612_v13 = vunpack.i.h.bf16 %v2610_v11  ;;  %v2611_v23 = vunpack.i.l.bf16 %v2610_v11 }
 0x108   : > { %v1341_v49 = vsel %vm1330_vm8, %v1324_v10, %v2616_v27  ;;  %v1342_v60 = vsel %vm1330_vm8, %v1325_v47, %v2617_v26 }
 0x109   : > { %v2625_v56 = vpop.permute.xlu1 %2624  ;;  %v1339_v29 = vsel %vm1330_vm8, %v1322_v22, %v2611_v23  ;;  %v1340_v30 = vsel %vm1330_vm8, %v1323_v25, %v2612_v13 }
 0x10a   : > { %v2620_v59 = vpop.permute.xlu0 %2619  ;;  %v2627_v31 = vunpack.i.h.bf16 %v2625_v56  ;;  %v2626_v35 = vunpack.i.l.bf16 %v2625_v56 }
 0x10b   : > { %v2622_v17 = vunpack.i.h.bf16 %v2620_v59  ;;  %v2621_v16 = vunpack.i.l.bf16 %v2620_v59 }
 0x10c   : > { %v1358_v51 = vsel %vm1347_vm9, %v1341_v49, %v2626_v35  ;;  %v1359_v52 = vsel %vm1347_vm9, %v1342_v60, %v2627_v31 }
 0x10d   : > { %v2635_v12 = vpop.permute.xlu1 %2634  ;;  %v1356_v37 = vsel %vm1347_vm9, %v1339_v29, %v2621_v16  ;;  %v1357_v39 = vsel %vm1347_vm9, %v1340_v30, %v2622_v17 }
 0x10e   : > { %v2630_v14 = vpop.permute.xlu0 %2629  ;;  %v2637_v40 = vunpack.i.h.bf16 %v2635_v12  ;;  %v2636_v43 = vunpack.i.l.bf16 %v2635_v12 }
 0x10f   : > { %v2632_v20 = vunpack.i.h.bf16 %v2630_v14  ;;  %v2631_v21 = vunpack.i.l.bf16 %v2630_v14 }
 0x110   : > { %v1375_v57 = vsel %vm1364_vm10, %v1358_v51, %v2636_v43  ;;  %v1376_v58 = vsel %vm1364_vm10, %v1359_v52, %v2637_v40 }
 0x111   : > { %v2645_v28 = vpop.permute.xlu1 %2644  ;;  %v1373_v45 = vsel %vm1364_vm10, %v1356_v37, %v2631_v21  ;;  %v1374_v46 = vsel %vm1364_vm10, %v1357_v39, %v2632_v20 }
 0x112   : > { %v2640_v36 = vpop.permute.xlu0 %2639  ;;  %v2647_v32 = vunpack.i.h.bf16 %v2645_v28  ;;  %v2646_v9 = vunpack.i.l.bf16 %v2645_v28 }
 0x113   : > { %v2642_v38 = vunpack.i.h.bf16 %v2640_v36  ;;  %v2641_v34 = vunpack.i.l.bf16 %v2640_v36 }
 0x114   : > { %v1275_v20 = vsel %vm1262_vm4, %v3149_v41, %v2646_v9  ;;  %v1276_v21 = vsel %vm1262_vm4, %v3152_v42, %v2647_v32 }
 0x115   : > { %v1390_v48 = vsel %vm1381_vm11, %v1373_v45, %v2641_v34  ;;  %v1391_v11 = vsel %vm1381_vm11, %v1374_v46, %v2642_v38  ;;  %v2655_v44 = vpop.permute.xlu1 %2654 }
 0x116   : > { %v1402_v50 = vpack.c.bf16 %v1391_v11, %v1390_v48  ;;  %v2650_v62 = vpop.permute.xlu0 %2649  ;;  %v2657_v8 = vunpack.i.h.bf16 %v2655_v44  ;;  %v2656_v1 = vunpack.i.l.bf16 %v2655_v44 }
 0x117   : > { %v2652_v53 = vunpack.i.h.bf16 %v2650_v62  ;;  %v2651_v56 = vunpack.i.l.bf16 %v2650_v62 }
 0x118   : > { %2331 = vmatprep.mubr.msk.bf16.mxu0 %vm1426_vm12, %v1402_v50  ;;  %v1277_v17 = vsel %vm1262_vm4, %v3181_v54, %v2656_v1  ;;  %v1278_v16 = vsel %vm1262_vm4, %v3184_v55, %v2657_v8 }
 0x119   : > { %v1392_v59 = vsel %vm1381_vm11, %v1375_v57, %v2651_v56  ;;  %v1393_v61 = vsel %vm1381_vm11, %v1376_v58, %v2652_v53  ;;  %v2665_v63 = vpop.permute.xlu1 %2664 }
 0x11a   : > { %v1403_v0 = vpack.c.bf16 %v1393_v61, %v1392_v59  ;;  %v2660_v3 = vpop.permute.xlu0 %2659  ;;  %v2667_v12 = vunpack.i.h.bf16 %v2665_v63  ;;  %v2666_v33 = vunpack.i.l.bf16 %v2665_v63 }
 0x11b   : > { %v2662_v13 = vunpack.i.h.bf16 %v2660_v3  ;;  %v2661_v23 = vunpack.i.l.bf16 %v2660_v3 }
 0x11c   : > { %2332 = vmatmul.mubr.msk.bf16.gmra.mxu0 %vm1426_vm12, %v1403_v0  ;;  %v1294_v22 = vsel %vm1279_vm5, %v1277_v17, %v2666_v33  ;;  %v1295_v25 = vsel %vm1279_vm5, %v1278_v16, %v2667_v12 }
 0x11d   : > { %v2675_v5 = vpop.permute.xlu1 %2674  ;;  %v1292_v27 = vsel %vm1279_vm5, %v1275_v20, %v2661_v23  ;;  %v1293_v54 = vsel %vm1279_vm5, %v1276_v21, %v2662_v13 }
 0x11e   : > { %v2670_v4 = vpop.permute.xlu0 %2669  ;;  %v2677_v24 = vunpack.i.h.bf16 %v2675_v5  ;;  %v2676_v15 = vunpack.i.l.bf16 %v2675_v5 }
 0x11f   : > { %v2672_v18 = vunpack.i.h.bf16 %v2670_v4  ;;  %v2671_v19 = vunpack.i.l.bf16 %v2670_v4 }
 0x120   : > { %v1311_v30 = vsel %vm1296_vm6, %v1294_v22, %v2676_v15  ;;  %v1312_v31 = vsel %vm1296_vm6, %v1295_v25, %v2677_v24  ;;  %v2343_v24 = vpop.f32.mrf.mxu1 }
 0x121   : > { %v2685_v6 = vpop.permute.xlu1 %2684  ;;  %v1309_v42 = vsel %vm1296_vm6, %v1292_v27, %v2671_v19  ;;  %v1310_v36 = vsel %vm1296_vm6, %v1293_v54, %v2672_v18  ;;  %1703 = vst.msk [vmem:[%s2862_s19 + $0x10] sm:$0xff] %vm1279_vm5, %v2343_v24  ;;  %v1850_v18 = vmul.f32 %v2343_v24, %v2343_v24  ;;  %v1814_v20 = vsel %vm1279_vm5, %v2343_v24, 0.0 }
 0x122   : > { %v2680_v7 = vpop.permute.xlu0 %2679  ;;  %v2687_v28 = vunpack.i.h.bf16 %v2685_v6  ;;  %v2686_v29 = vunpack.i.l.bf16 %v2685_v6  ;;  %v1622_v15 = vpop.f32.mrf.mxu1 }
 0x123   : > { %v2682_v41 = vunpack.i.h.bf16 %v2680_v7  ;;  %v2681_v35 = vunpack.i.l.bf16 %v2680_v7  ;;  %1701 = vst.msk [vmem:[%s2862_s19] sm:$0xff] %vm1279_vm5, %v1622_v15  ;;  %v1848_v17 = vmul.f32 %v1622_v15, %v1622_v15  ;;  %v1811_v19 = vsel %vm1279_vm5, %v1622_v15, 0.0 }
 0x124   : > { %v1328_v46 = vsel %vm1313_vm7, %v1311_v30, %v2686_v29  ;;  %v1329_v10 = vsel %vm1313_vm7, %v1312_v31, %v2687_v28  ;;  %v2344_v16 = vpop.f32.mrf.mxu1  ;;  %v1867_v29 = vsel %vm1279_vm5, %v1850_v18, 0.0 }
 0x125   : > { %v2695_v2 = vpop.permute.xlu1 %2694  ;;  %v1326_v44 = vsel %vm1313_vm7, %v1309_v42, %v2681_v35  ;;  %v1327_v49 = vsel %vm1313_vm7, %v1310_v36, %v2682_v41  ;;  %1704 = vst.msk [vmem:[%s2862_s19 + $0x18] sm:$0xff] %vm1279_vm5, %v2344_v16  ;;  %v1864_v22 = vsel %vm1279_vm5, %v1848_v17, 0.0  ;;  %v1851_v25 = vmul.f32 %v2344_v16, %v2344_v16 }
 0x126   : > { %v2690_v14 = vpop.permute.xlu0 %2689  ;;  %v2697_v37 = vunpack.i.h.bf16 %v2695_v2  ;;  %v2696_v39 = vunpack.i.l.bf16 %v2695_v2  ;;  %v1625_v21 = vpop.f32.mrf.mxu1 }
 0x127   : > { %v2692_v38 = vunpack.i.h.bf16 %v2690_v14  ;;  %v2691_v34 = vunpack.i.l.bf16 %v2690_v14  ;;  %1702 = vst.msk [vmem:[%s2862_s19 + $0x8] sm:$0xff] %vm1279_vm5, %v1625_v21  ;;  %v1849_v27 = vmul.f32 %v1625_v21, %v1625_v21  ;;  %v1869_v42 = vsel %vm1279_vm5, %v1851_v25, 0.0 }
 0x128   : > { %v1345_v62 = vsel %vm1330_vm8, %v1328_v46, %v2696_v39  ;;  %v1346_v51 = vsel %vm1330_vm8, %v1329_v10, %v2697_v37  ;;  %v2347_v28 = vpop.f32.mrf.mxu1 }
 0x129   : > { %v2705_v26 = vpop.permute.xlu1 %2704  ;;  %v1343_v56 = vsel %vm1330_vm8, %v1326_v44, %v2691_v34  ;;  %v1344_v57 = vsel %vm1330_vm8, %v1327_v49, %v2692_v38  ;;  %v1865_v30 = vsel %vm1279_vm5, %v1849_v27, 0.0  ;;  %1707 = vst.msk [vmem:[%s2862_s19 + $0x30] sm:$0xff] %vm1279_vm5, %v2347_v28 }
 0x12a   : > { %v2700_v55 = vpop.permute.xlu0 %2699  ;;  %v2707_v40 = vunpack.i.h.bf16 %v2705_v26  ;;  %v2706_v43 = vunpack.i.l.bf16 %v2705_v26  ;;  %v1812_v26 = vsel %vm1279_vm5, %v1625_v21, 0.0  ;;  %v1866_v41 = vadd.f32 %v1865_v30, %v1864_v22  ;;  %v1638_v35 = vpop.f32.mrf.mxu1 }
 0x12b   : > { %v2702_v47 = vunpack.i.h.bf16 %v2700_v55  ;;  %v2701_v48 = vunpack.i.l.bf16 %v2700_v55  ;;  %v1813_v54 = vadd.f32 %v1812_v26, %v1811_v19  ;;  %v1816_v55 = vsel %vm1279_vm5, %v2344_v16, 0.0  ;;  %1705 = vst.msk [vmem:[%s2862_s19 + $0x20] sm:$0xff] %vm1279_vm5, %v1638_v35 }
 0x12c   : > { %v1362_v58 = vsel %vm1347_vm9, %v1345_v62, %v2706_v43  ;;  %v1363_v59 = vsel %vm1347_vm9, %v1346_v51, %v2707_v40  ;;  %v1818_v36 = vsel %vm1279_vm5, %v1638_v35, 0.0  ;;  %v1852_v37 = vmul.f32 %v1638_v35, %v1638_v35  ;;  %v2348_v34 = vpop.f32.mrf.mxu1 }
 0x12d   : > { %v2715_v45 = vpop.permute.xlu1 %2714  ;;  %v1360_v63 = vsel %vm1347_vm9, %v1343_v56, %v2701_v48  ;;  %v1361_v0 = vsel %vm1347_vm9, %v1344_v57, %v2702_v47  ;;  %v1815_v31 = vadd.f32 %v1814_v20, %v1813_v54  ;;  %v1868_v39 = vadd.f32 %v1867_v29, %v1866_v41  ;;  %1708 = vst.msk [vmem:[%s2862_s19 + $0x38] sm:$0xff] %vm1279_vm5, %v2348_v34 }
 0x12e   : > { %v2710_v11 = vpop.permute.xlu0 %2709  ;;  %v2717_v60 = vunpack.i.h.bf16 %v2715_v45  ;;  %v2716_v50 = vunpack.i.l.bf16 %v2715_v45  ;;  %v1854_v40 = vmul.f32 %v2347_v28, %v2347_v28  ;;  %v1871_v43 = vsel %vm1279_vm5, %v1852_v37, 0.0  ;;  %v1641_v10 = vpop.f32.mrf.mxu1 }
 0x12f   : > { %v2712_v52 = vunpack.i.h.bf16 %v2710_v11  ;;  %v2711_v53 = vunpack.i.l.bf16 %v2710_v11  ;;  %v1817_v38 = vadd.f32 %v1816_v55, %v1815_v31  ;;  %v1870_v46 = vadd.f32 %v1869_v42, %v1868_v39  ;;  %1706 = vst.msk [vmem:[%s2862_s19 + $0x28] sm:$0xff] %vm1279_vm5, %v1641_v10 }
 0x130   : > { %v1379_v6 = vsel %vm1364_vm10, %v1362_v58, %v2716_v50  ;;  %v1380_v7 = vsel %vm1364_vm10, %v1363_v59, %v2717_v60  ;;  %v1855_v47 = vmul.f32 %v2348_v34, %v2348_v34  ;;  %v1853_v48 = vmul.f32 %v1641_v10, %v1641_v10  ;;  %v2351_v60 = vpop.f32.mrf.mxu1 }
 0x131   : > { %v2725_v61 = vpop.permute.xlu1 %2724  ;;  %v1377_v32 = vsel %vm1364_vm10, %v1360_v63, %v2711_v53  ;;  %v1378_v9 = vsel %vm1364_vm10, %v1361_v0, %v2712_v52  ;;  %v1819_v45 = vadd.f32 %v1818_v36, %v1817_v38  ;;  %v1822_v11 = vsel %vm1279_vm5, %v2347_v28, 0.0  ;;  %1711 = vst.msk [vmem:[%s2862_s19 + $0x50] sm:$0xff] %vm1279_vm5, %v2351_v60 }
 0x132   : > { %v2727_v3 = vunpack.i.h.bf16 %v2725_v61  ;;  %v2726_v5 = vunpack.i.l.bf16 %v2725_v61  ;;  %v2720_v4 = vpop.permute.xlu0 %2719  ;;  %v1872_v44 = vadd.f32 %v1871_v43, %v1870_v46  ;;  %v1820_v49 = vsel %vm1279_vm5, %v1641_v10, 0.0  ;;  %v1654_v56 = vpop.f32.mrf.mxu1 }
 0x133   : > { %v2722_v8 = vunpack.i.h.bf16 %v2720_v4  ;;  %v2721_v1 = vunpack.i.l.bf16 %v2720_v4  ;;  %v1875_v50 = vsel %vm1279_vm5, %v1854_v40, 0.0  ;;  %v1821_v62 = vadd.f32 %v1820_v49, %v1819_v45  ;;  %1709 = vst.msk [vmem:[%s2862_s19 + $0x40] sm:$0xff] %vm1279_vm5, %v1654_v56 }
 0x134   : > { %v1396_v12 = vsel %vm1381_vm11, %v1379_v6, %v2726_v5  ;;  %v1397_v33 = vsel %vm1381_vm11, %v1380_v7, %v2727_v3  ;;  %v1873_v51 = vsel %vm1279_vm5, %v1853_v48, 0.0  ;;  %v1824_v52 = vsel %vm1279_vm5, %v2348_v34, 0.0  ;;  %v2352_v0 = vpop.f32.mrf.mxu1 }
 0x135   : > { %v1405_v2 = vpack.c.bf16 %v1397_v33, %v1396_v12  ;;  %v1394_v13 = vsel %vm1381_vm11, %v1377_v32, %v2721_v1  ;;  %v1395_v23 = vsel %vm1381_vm11, %v1378_v9, %v2722_v8  ;;  %v1874_v53 = vadd.f32 %v1873_v51, %v1872_v44  ;;  %1712 = vst.msk [vmem:[%s2862_s19 + $0x58] sm:$0xff] %vm1279_vm5, %v2352_v0 }
 0x136   : > { %v1404_v14 = vpack.c.bf16 %v1395_v23, %v1394_v13  ;;  %v1877_v57 = vsel %vm1279_vm5, %v1855_v47, 0.0  ;;  %v1823_v58 = vadd.f32 %v1822_v11, %v1821_v62  ;;  %v1826_v61 = vsel %vm1279_vm5, %v1654_v56, 0.0  ;;  %v1657_v7 = vpop.f32.mrf.mxu1 }
 0x137   : > { %v1876_v59 = vadd.f32 %v1875_v50, %v1874_v53  ;;  %v1856_v63 = vmul.f32 %v1654_v56, %v1654_v56  ;;  %v1858_v3 = vmul.f32 %v2351_v60, %v2351_v60  ;;  %1710 = vst.msk [vmem:[%s2862_s19 + $0x48] sm:$0xff] %vm1279_vm5, %v1657_v7  ;;  %v1857_v1 = vmul.f32 %v1657_v7, %v1657_v7 }
 0x138   : > { %2335 = vmatprep.mubr.msk.bf16.mxu0 %vm1426_vm12, %v1404_v14  ;;  %v1825_v5 = vadd.f32 %v1824_v52, %v1823_v58  ;;  %v1830_v32 = vsel %vm1279_vm5, %v2351_v60, 0.0  ;;  %v2355_v12 = vpop.f32.mrf.mxu1  ;;  %v1828_v13 = vsel %vm1279_vm5, %v1657_v7, 0.0  ;;  %v1832_v17 = vsel %vm1279_vm5, %v2352_v0, 0.0 }
 0x139   : > { %2336 = vmatmul.mubr.msk.bf16.gmra.mxu0 %vm1426_vm12, %v1405_v2  ;;  %v1878_v4 = vadd.f32 %v1877_v57, %v1876_v59  ;;  %v1879_v6 = vsel %vm1279_vm5, %v1856_v63, 0.0  ;;  %v1883_v33 = vsel %vm1279_vm5, %v1858_v3, 0.0  ;;  %v1859_v2 = vmul.f32 %v2352_v0, %v2352_v0  ;;  %1715 = vst.msk [vmem:[%s2862_s19 + $0x70] sm:$0xff] %vm1279_vm5, %v2355_v12 }
 0x13a   : > { %v1827_v8 = vadd.f32 %v1826_v61, %v1825_v5  ;;  %v1881_v23 = vsel %vm1279_vm5, %v1857_v1, 0.0  ;;  %v1670_v15 = vpop.f32.mrf.mxu1  ;;  %v1862_v22 = vmul.f32 %v2355_v12, %v2355_v12  ;;  %v1838_v35 = vsel %vm1279_vm5, %v2355_v12, 0.0 }
 0x13b   : > { %v1880_v9 = vadd.f32 %v1879_v6, %v1878_v4  ;;  %v1885_v16 = vsel %vm1279_vm5, %v1859_v2, 0.0  ;;  %1713 = vst.msk [vmem:[%s2862_s19 + $0x60] sm:$0xff] %vm1279_vm5, %v1670_v15  ;;  %v1860_v18 = vmul.f32 %v1670_v15, %v1670_v15  ;;  %v1834_v25 = vsel %vm1279_vm5, %v1670_v15, 0.0 }
 0x13c   : > { %v1829_v14 = vadd.f32 %v1828_v13, %v1827_v8  ;;  %v2356_v21 = vpop.f32.mrf.mxu1  ;;  %v1891_v42 = vsel %vm1279_vm5, %v1862_v22, 0.0 }
 0x13d   : > { %v1882_v24 = vadd.f32 %v1881_v23, %v1880_v9  ;;  %v1887_v26 = vsel %vm1279_vm5, %v1860_v18, 0.0  ;;  %1716 = vst.msk [vmem:[%s2862_s19 + $0x78] sm:$0xff] %vm1279_vm5, %v2356_v21  ;;  %v1863_v29 = vmul.f32 %v2356_v21, %v2356_v21  ;;  %v1840_v38 = vsel %vm1279_vm5, %v2356_v21, 0.0 }
 0x13e   : > { %v1831_v19 = vadd.f32 %v1830_v32, %v1829_v14  ;;  %v1673_v28 = vpop.f32.mrf.mxu1 }
 0x13f   : > { %v1884_v20 = vadd.f32 %v1883_v33, %v1882_v24  ;;  %1714 = vst.msk [vmem:[%s2862_s19 + $0x68] sm:$0xff] %vm1279_vm5, %v1673_v28  ;;  %v1836_v55 = vsel %vm1279_vm5, %v1673_v28, 0.0  ;;  %v1861_v30 = vmul.f32 %v1673_v28, %v1673_v28  ;;  %v1893_v34 = vsel %vm1279_vm5, %v1863_v29, 0.0 }
 0x140   : > { %v1833_v27 = vadd.f32 %v1832_v17, %v1831_v19 }
 0x141   : > { %v1886_v54 = vadd.f32 %v1885_v16, %v1884_v20  ;;  %v1889_v36 = vsel %vm1279_vm5, %v1861_v30, 0.0 }
 0x142   : > { %v1835_v31 = vadd.f32 %v1834_v25, %v1833_v27 }
 0x143   : > { %v1888_v41 = vadd.f32 %v1887_v26, %v1886_v54 }
 0x144   : > { %v1837_v37 = vadd.f32 %v1836_v55, %v1835_v31 }
 0x145   : > { %v1890_v39 = vadd.f32 %v1889_v36, %v1888_v41 }
 0x146   : > { %v1839_v40 = vadd.f32 %v1838_v35, %v1837_v37 }
 0x147   : > { %v1892_v43 = vadd.f32 %v1891_v42, %v1890_v39 }
 0x148   : > { %v1841_v45 = vadd.f32 %v1840_v38, %v1839_v40 }
 0x149   : > { %v1894_v46 = vadd.f32 %v1893_v34, %v1892_v43 }
 0x14a   : > { %v1842_v10 = vrot.slane %v1841_v45, 4 }
 0x14b   : > { %v1895_v47 = vrot.slane %v1894_v46, 4 }
 0x14c   : > { %v1843_v48 = vadd.f32 %v1842_v10, %v1841_v45 }
 0x14d   : > { %v1896_v11 = vadd.f32 %v1895_v47, %v1894_v46 }
 0x14e   : > { %v1844_v44 = vrot.slane %v1843_v48, 2 }
 0x14f   : > { %v1897_v49 = vrot.slane %v1896_v11, 2 }
 0x150   : > { %v1845_v60 = vadd.f32 %v1844_v44, %v1843_v48 }
 0x151   : > { %v1898_v50 = vadd.f32 %v1897_v49, %v1896_v11 }
 0x152   : > { %v1846_v62 = vrot.slane %v1845_v60, 1 }
 0x153   : > { %v1899_v51 = vrot.slane %v1898_v50, 1 }
 0x154   : > { %v1847_v52 = vadd.f32 %v1846_v62, %v1845_v60 }
 0x155   : > { %v1900_v53 = vadd.f32 %v1899_v51, %v1898_v50 }
 0x157   : > { %v1901_v56 = vsel %vm1807_vm13, %v1847_v52, %v1900_v53 }
 0x158   : > { %1902 = vst.msk [vmem:[%s2873_s8] sm:$0x3] %vm1809_vm14, %v1901_v56 }
 0x19c   : > { %v2325_v57 = vpop.f32.mrf.mxu0 }
 0x19d   : > { %1687 = vst.msk [vmem:[%s2857_s16 + $0x10] sm:$0xff] %vm1279_vm5, %v2325_v57  ;;  %v1756_v0 = vmul.f32 %v2325_v57, %v2325_v57  ;;  %v1720_v7 = vsel %vm1279_vm5, %v2325_v57, 0.0 }
 0x19e   : > { %v1489_v58 = vpop.f32.mrf.mxu0 }
 0x19f   : > { %1685 = vst.msk [vmem:[%s2857_s16] sm:$0xff] %vm1279_vm5, %v1489_v58  ;;  %v1754_v61 = vmul.f32 %v1489_v58, %v1489_v58  ;;  %v1717_v3 = vsel %vm1279_vm5, %v1489_v58, 0.0  ;;  %v1773_v33 = vsel %vm1279_vm5, %v1756_v0, 0.0 }
 0x1a0   : > { %v2326_v59 = vpop.f32.mrf.mxu0 }
 0x1a1   : > { %1688 = vst.msk [vmem:[%s2857_s16 + $0x18] sm:$0xff] %vm1279_vm5, %v2326_v59  ;;  %v1770_v8 = vsel %vm1279_vm5, %v1754_v61, 0.0  ;;  %v1757_v1 = vmul.f32 %v2326_v59, %v2326_v59  ;;  %v1722_v2 = vsel %vm1279_vm5, %v2326_v59, 0.0 }
 0x1a2   : > { %v1492_v63 = vpop.f32.mrf.mxu0 }
 0x1a3   : > { %1686 = vst.msk [vmem:[%s2857_s16 + $0x8] sm:$0xff] %vm1279_vm5, %v1492_v63  ;;  %v1718_v5 = vsel %vm1279_vm5, %v1492_v63, 0.0  ;;  %v1755_v4 = vmul.f32 %v1492_v63, %v1492_v63  ;;  %v1775_v14 = vsel %vm1279_vm5, %v1757_v1, 0.0 }
 0x1a4   : > { %v1719_v6 = vadd.f32 %v1718_v5, %v1717_v3 }
 0x1a5   : > { %v1771_v32 = vsel %vm1279_vm5, %v1755_v4, 0.0 }
 0x1a6   : > { %v1721_v9 = vadd.f32 %v1720_v7, %v1719_v6  ;;  %v1772_v12 = vadd.f32 %v1771_v32, %v1770_v8 }
 0x1a8   : > { %v1774_v13 = vadd.f32 %v1773_v33, %v1772_v12  ;;  %v1723_v23 = vadd.f32 %v1722_v2, %v1721_v9 }
 0x1aa   : > { %v1776_v24 = vadd.f32 %v1775_v14, %v1774_v13 }
 0x1bc   : > { %v2329_v15 = vpop.f32.mrf.mxu0 }
 0x1bd   : > { %1691 = vst.msk [vmem:[%s2857_s16 + $0x30] sm:$0xff] %vm1279_vm5, %v2329_v15  ;;  %v1760_v41 = vmul.f32 %v2329_v15, %v2329_v15  ;;  %v1728_v42 = vsel %vm1279_vm5, %v2329_v15, 0.0 }
 0x1be   : > { %v1505_v17 = vpop.f32.mrf.mxu0 }
 0x1bf   : > { %1689 = vst.msk [vmem:[%s2857_s16 + $0x20] sm:$0xff] %vm1279_vm5, %v1505_v17  ;;  %v1758_v22 = vmul.f32 %v1505_v17, %v1505_v17  ;;  %v1724_v26 = vsel %vm1279_vm5, %v1505_v17, 0.0  ;;  %v1781_v37 = vsel %vm1279_vm5, %v1760_v41, 0.0 }
 0x1c0   : > { %v2330_v16 = vpop.f32.mrf.mxu0  ;;  %v1725_v29 = vadd.f32 %v1724_v26, %v1723_v23 }
 0x1c1   : > { %1692 = vst.msk [vmem:[%s2857_s16 + $0x38] sm:$0xff] %vm1279_vm5, %v2330_v16  ;;  %v1777_v54 = vsel %vm1279_vm5, %v1758_v22, 0.0  ;;  %v1761_v39 = vmul.f32 %v2330_v16, %v2330_v16  ;;  %v1730_v40 = vsel %vm1279_vm5, %v2330_v16, 0.0 }
 0x1c2   : > { %v1508_v18 = vpop.f32.mrf.mxu0  ;;  %v1778_v30 = vadd.f32 %v1777_v54, %v1776_v24 }
 0x1c3   : > { %1690 = vst.msk [vmem:[%s2857_s16 + $0x28] sm:$0xff] %vm1279_vm5, %v1508_v18  ;;  %v1759_v27 = vmul.f32 %v1508_v18, %v1508_v18  ;;  %v1726_v28 = vsel %vm1279_vm5, %v1508_v18, 0.0  ;;  %v1783_v10 = vsel %vm1279_vm5, %v1761_v39, 0.0 }
 0x1c4   : > { %v1727_v31 = vadd.f32 %v1726_v28, %v1725_v29 }
 0x1c5   : > { %v1779_v55 = vsel %vm1279_vm5, %v1759_v27, 0.0 }
 0x1c6   : > { %v1780_v35 = vadd.f32 %v1779_v55, %v1778_v30  ;;  %v1729_v36 = vadd.f32 %v1728_v42, %v1727_v31 }
 0x1c8   : > { %v1782_v34 = vadd.f32 %v1781_v37, %v1780_v35  ;;  %v1731_v46 = vadd.f32 %v1730_v40, %v1729_v36 }
 0x1ca   : > { %v1784_v44 = vadd.f32 %v1783_v10, %v1782_v34 }
 0x1dc   : > { %v2333_v19 = vpop.f32.mrf.mxu0 }
 0x1dd   : > { %1695 = vst.msk [vmem:[%s2857_s16 + $0x50] sm:$0xff] %vm1279_vm5, %v2333_v19  ;;  %v1764_v62 = vmul.f32 %v2333_v19, %v2333_v19  ;;  %v1736_v52 = vsel %vm1279_vm5, %v2333_v19, 0.0 }
 0x1de   : > { %v1521_v20 = vpop.f32.mrf.mxu0 }
 0x1df   : > { %1693 = vst.msk [vmem:[%s2857_s16 + $0x40] sm:$0xff] %vm1279_vm5, %v1521_v20  ;;  %v1762_v38 = vmul.f32 %v1521_v20, %v1521_v20  ;;  %v1732_v43 = vsel %vm1279_vm5, %v1521_v20, 0.0  ;;  %v1789_v57 = vsel %vm1279_vm5, %v1764_v62, 0.0 }
 0x1e0   : > { %v2334_v21 = vpop.f32.mrf.mxu0  ;;  %v1733_v11 = vadd.f32 %v1732_v43, %v1731_v46 }
 0x1e1   : > { %1696 = vst.msk [vmem:[%s2857_s16 + $0x58] sm:$0xff] %vm1279_vm5, %v2334_v21  ;;  %v1785_v47 = vsel %vm1279_vm5, %v1762_v38, 0.0  ;;  %v1765_v58 = vmul.f32 %v2334_v21, %v2334_v21  ;;  %v1738_v63 = vsel %vm1279_vm5, %v2334_v21, 0.0 }
 0x1e2   : > { %v1524_v25 = vpop.f32.mrf.mxu0  ;;  %v1786_v60 = vadd.f32 %v1785_v47, %v1784_v44 }
 0x1e3   : > { %1694 = vst.msk [vmem:[%s2857_s16 + $0x48] sm:$0xff] %vm1279_vm5, %v1524_v25  ;;  %v1763_v45 = vmul.f32 %v1524_v25, %v1524_v25  ;;  %v1734_v48 = vsel %vm1279_vm5, %v1524_v25, 0.0  ;;  %v1791_v6 = vsel %vm1279_vm5, %v1765_v58, 0.0 }
 0x1e4   : > { %v1735_v50 = vadd.f32 %v1734_v48, %v1733_v11 }
 0x1e5   : > { %v1787_v49 = vsel %vm1279_vm5, %v1763_v45, 0.0 }
 0x1e6   : > { %v1788_v51 = vadd.f32 %v1787_v49, %v1786_v60  ;;  %v1737_v53 = vadd.f32 %v1736_v52, %v1735_v50 }
 0x1e8   : > { %v1790_v59 = vadd.f32 %v1789_v57, %v1788_v51  ;;  %v1739_v5 = vadd.f32 %v1738_v63, %v1737_v53 }
 0x1ea   : > { %v1792_v1 = vadd.f32 %v1791_v6, %v1790_v59 }
 0x1f9   : > { %v2337_v56 = vpop.f32.mrf.mxu0 }
 0x1fa   : > { %1699 = vst.msk [vmem:[%s2857_s16 + $0x70] sm:$0xff] %vm1279_vm5, %v2337_v56  ;;  %v1768_v9 = vmul.f32 %v2337_v56, %v2337_v56  ;;  %v1744_v23 = vsel %vm1279_vm5, %v2337_v56, 0.0 }
 0x1fb   : > { %v1537_v61 = vpop.f32.mrf.mxu0 }
 0x1fc   : > { %1697 = vst.msk [vmem:[%s2857_s16 + $0x60] sm:$0xff] %vm1279_vm5, %v1537_v61  ;;  %v1740_v0 = vsel %vm1279_vm5, %v1537_v61, 0.0  ;;  %v1766_v3 = vmul.f32 %v1537_v61, %v1537_v61  ;;  %v1797_v16 = vsel %vm1279_vm5, %v1768_v9, 0.0 }
 0x1fd   : > { %v2338_v4 = vpop.f32.mrf.mxu0  ;;  %v1741_v8 = vadd.f32 %v1740_v0, %v1739_v5 }
 0x1fe   : > { %v1793_v7 = vsel %vm1279_vm5, %v1766_v3, 0.0  ;;  %1700 = vst.msk [vmem:[%s2857_s16 + $0x78] sm:$0xff] %vm1279_vm5, %v2338_v4  ;;  %v1769_v14 = vmul.f32 %v2338_v4, %v2338_v4  ;;  %v1746_v18 = vsel %vm1279_vm5, %v2338_v4, 0.0 }
 0x1ff   : > { %v1540_v32 = vpop.f32.mrf.mxu0  ;;  %v1794_v2 = vadd.f32 %v1793_v7, %v1792_v1 }
 0x200   : > { %1698 = vst.msk [vmem:[%s2857_s16 + $0x68] sm:$0xff] %vm1279_vm5, %v1540_v32  ;;  %v1742_v12 = vsel %vm1279_vm5, %v1540_v32, 0.0  ;;  %v1767_v33 = vmul.f32 %v1540_v32, %v1540_v32  ;;  %v1799_v21 = vsel %vm1279_vm5, %v1769_v14, 0.0 }
 0x201   : > { %v1743_v13 = vadd.f32 %v1742_v12, %v1741_v8 }
 0x202   : > { %v1795_v24 = vsel %vm1279_vm5, %v1767_v33, 0.0 }
 0x203   : > { %v1745_v15 = vadd.f32 %v1744_v23, %v1743_v13  ;;  %v1796_v17 = vadd.f32 %v1795_v24, %v1794_v2 }
 0x205   : > { %v1747_v19 = vadd.f32 %v1746_v18, %v1745_v15  ;;  %v1798_v20 = vadd.f32 %v1797_v16, %v1796_v17 }
 0x207   : > { %v1748_v22 = vrot.slane %v1747_v19, 4  ;;  %v1800_v25 = vadd.f32 %v1799_v21, %v1798_v20 }
 0x209   : > { %v1749_v26 = vadd.f32 %v1748_v22, %v1747_v19  ;;  %v1801_v27 = vrot.slane %v1800_v25, 4 }
 0x20b   : > { %v1750_v54 = vrot.slane %v1749_v26, 2  ;;  %v1802_v28 = vadd.f32 %v1801_v27, %v1800_v25 }
 0x20d   : > { %v1751_v29 = vadd.f32 %v1750_v54, %v1749_v26  ;;  %v1803_v55 = vrot.slane %v1802_v28, 2 }
 0x20f   : > { %v1752_v30 = vrot.slane %v1751_v29, 1  ;;  %v1804_v31 = vadd.f32 %v1803_v55, %v1802_v28 }
 0x211   : > { %v1805_v41 = vrot.slane %v1804_v31, 1  ;;  %v1753_v35 = vadd.f32 %v1752_v30, %v1751_v29 }
 0x213   : > { %v1806_v42 = vadd.f32 %v1805_v41, %v1804_v31 }
 0x215   : > { %v1808_v36 = vsel %vm1807_vm13, %v1753_v35, %v1806_v42 }
 0x216   : > { %1810 = vst.msk [vmem:[%s2868_s28] sm:$0x3] %vm1809_vm14, %v1808_v36 }
 0x217 PF: > { %s17_s25 = sadd.s32 1, %s2769_s25   ;;  %s3574_s16 = sld [smem:[#allocation3_spill]] }
 0x218   : > { %p14_p9 = scmp.ge.s32.totalorder %s17_s25, 6   ;;  %s3575_s19 = sld [smem:[#allocation4_spill]] }
 0x219   : > { %s3576_s21 = smov %s2761_s23  ;;  %s3577_s22 = smov %s2765_s24 }
 0x21a   :  { %16 = sbr.rel (!%p14_p9) target bundleno = 3 (0x3), region = 105 }
 0x21d   : > { %s3578_s23 = smov %s3574_s16 }
 0x21e   : > { %s3579_s24 = smov %s3575_s19 }

</bundles_post_ra>
